<compile_context>
chip_gen: v6e
topology: v6e:2x2x1
jax: 0.10.0
libtpu: 0.0.40
codegen_flags: <defaults>
</compile_context>

<pallas_src>
import math
from functools import partial

import jax
import jax.numpy as jnp
from jax.experimental import pallas as pl
from jax.experimental.pallas import tpu as pltpu

# ---------------- model hyper-parameters (small, synthetic stand-in) ----------------
IMG = 16
IN_CH = 3
PATCH = 4
T = (IMG // PATCH) ** 2          # tokens per image = 16
P = IN_CH * PATCH * PATCH        # raw patch dim = 48
D = 64                           # logical embed dim (stands in for pre_layer)
MLP = 4 * D                      # 256 (already lane dense)
NUM_CLASSES = 3                  # constructor arg of the PyTorch module
LN_EPS = 1e-5

LANE = 128
DP = 128                         # embed dim padded to a full lane tile
PP = 128                         # patch dim padded to a full lane tile
G = 8                            # images packed per attention score tile
GT = G * T                       # 128 kv lanes per score tile
MAX_TB = 128                     # images per grid step (VMEM-safe on v7x 64 MiB)
NEG_INF = -1e30


def _round_up(x, m):
    return ((x + m - 1) // m) * m


def _layer_norm_valid(x, g, b, inv_n):
    """LayerNorm whose statistics only count the first 1/inv_n (valid) columns.

    Padded columns of x are exactly zero, so plain sums over the 128 lanes are
    the sums over the valid columns; padded gamma/beta are zero, so padded
    output columns stay exactly zero.
    """
    s1 = jnp.sum(x, axis=-1, keepdims=True)
    s2 = jnp.sum(x * x, axis=-1, keepdims=True)
    m = s1 * inv_n
    v = s2 * inv_n - m * m
    return (x - m) * jax.lax.rsqrt(v + LN_EPS) * g + b


def _backbone_head_kernel(tok_ref,
                          wp_ref, wqkv_ref, bqkv_ref, wo_ref,
                          w1_ref, bm1_ref, w2_ref, hw_ref,
                          vec_ref, ab_ref,
                          o_ref, *, tb):
    """Processes tb images: tok_ref is (tb*T, PP) bf16, o_ref is (tb, C_pad) f32."""
    bf16, f32 = jnp.bfloat16, jnp.float32
    inv_d = 1.0 / D
    ng = tb // G

    # hoist small constants once (JAX does not CSE re-broadcasts)
    vec = vec_ref[...]                       # (8, 128) packed biases / LN params
    bp, g1, beta1 = vec[0:1, :], vec[1:2, :], vec[2:3, :]
    bo, g2, beta2 = vec[3:4, :], vec[4:5, :], vec[5:6, :]
    bm2, hb = vec[6:7, :], vec[7:8, :]
    bqkv = bqkv_ref[...]                     # (1, 3*DP)
    bm1 = bm1_ref[...]                       # (1, MLP)
    ab = ab_ref[...]                         # (GT, GT) block-diagonal mask bias

    tok = tok_ref[...]                       # (tb*T, PP) bf16

    # --- patch embedding (conv-as-matmul on the merged batch) ---
    x = jnp.dot(tok, wp_ref[...], preferred_element_type=f32) + bp      # (N, DP)

    # --- transformer block: attention ---
    xn = _layer_norm_valid(x, g1, beta1, inv_d)
    qkv = jnp.dot(xn.astype(bf16), wqkv_ref[...],
                  preferred_element_type=f32) + bqkv                    # (N, 3*DP)
    # tile-aligned 128-column slices; 1/sqrt(D) already folded into Q weights
    q = qkv[:, 0:DP].reshape(ng, GT, DP).astype(bf16)
    k = qkv[:, DP:2 * DP].reshape(ng, GT, DP).astype(bf16)
    v = qkv[:, 2 * DP:3 * DP].reshape(ng, GT, DP).astype(bf16)

    # G images per (128,128) score tile; cross-image entries masked by `ab`
    s = jnp.einsum('gtd,gsd->gts', q, k, preferred_element_type=f32) + ab
    s_max = jnp.max(s, axis=-1, keepdims=True)
    e = jnp.exp(s - s_max)
    p = e * pl.reciprocal(jnp.sum(e, axis=-1, keepdims=True), approx=True)
    attn = jnp.einsum('gts,gsd->gtd', p.astype(bf16), v,
                      preferred_element_type=f32).reshape(tb * T, DP)
    x = x + jnp.dot(attn.astype(bf16), wo_ref[...],
                    preferred_element_type=f32) + bo

    # --- transformer block: MLP ---
    xn2 = _layer_norm_valid(x, g2, beta2, inv_d)
    h = jnp.dot(xn2.astype(bf16), w1_ref[...], preferred_element_type=f32) + bm1
    h = jax.nn.gelu(h, approximate=True)     # tanh GELU -> EUP slot
    x = x + jnp.dot(h.astype(bf16), w2_ref[...], preferred_element_type=f32) + bm2

    # --- token sum-pool (1/T folded into head weights) + fused dual head ---
    pooled = jnp.sum(x.reshape(tb, T, DP), axis=1)                      # (tb, DP)
    o_ref[...] = jnp.dot(pooled.astype(bf16), hw_ref[...],
                         preferred_element_type=f32) + hb


def _full_spec(shape):
    zeros = (0,) * len(shape)
    return pl.BlockSpec(shape, lambda b: zeros)


def efficientformer_forward(x_nchw, params, *, max_tb=MAX_TB):
    """x_nchw: (B, 3, 16, 16) float32 -> (B, num_classes) float32."""
    B = x_nchw.shape[0]
    f32, bf16 = jnp.float32, jnp.bfloat16

    # ---- glue: extract non-overlapping 4x4 patches, inner order (C, kh, kw) ----
    xp = x_nchw.reshape(B, IN_CH, IMG // PATCH, PATCH, IMG // PATCH, PATCH)
    xp = xp.transpose(0, 2, 4, 1, 3, 5)             # (B, Hp, Wp, C, kh, kw)
    tokens = xp.reshape(B, T, P)

    # ---- batch blocking: tb multiple of G (attention packing).  One fat grid
    #      step unless B exceeds MAX_TB — the grid is a serial loop on single-TC
    #      chips, so no forced multi-step split for small B. ----
    tb = min(max_tb, _round_up(B, G))
    nb = pl.cdiv(B, tb)
    b_pad = nb * tb
    tokens = jnp.pad(tokens, ((0, b_pad - B), (0, 0), (0, PP - P)))
    tokens2d = tokens.reshape(b_pad * T, PP).astype(bf16)

    # ---- trace-time weight prep: pad D->128 / P->128, fuse QKV with
    #      tile-aligned 128-col segments, fold scales, fuse heads ----
    scale = 1.0 / math.sqrt(D)    # 0.125: exact power of two, bf16-exact fold

    wp_p = jnp.zeros((PP, DP), f32).at[:P, :D].set(params['wp']).astype(bf16)

    wqkv_p = jnp.zeros((DP, 3 * DP), f32)
    wqkv_p = wqkv_p.at[:D, 0:D].set(params['wq'] * scale)
    wqkv_p = wqkv_p.at[:D, DP:DP + D].set(params['wk'])
    wqkv_p = wqkv_p.at[:D, 2 * DP:2 * DP + D].set(params['wv'])
    wqkv_p = wqkv_p.astype(bf16)
    bqkv_p = jnp.zeros((1, 3 * DP), f32)
    bqkv_p = bqkv_p.at[:, 0:D].set(params['bq'] * scale)
    bqkv_p = bqkv_p.at[:, DP:DP + D].set(params['bk'])
    bqkv_p = bqkv_p.at[:, 2 * DP:2 * DP + D].set(params['bv'])

    wo_p = jnp.zeros((DP, DP), f32).at[:D, :D].set(params['wo']).astype(bf16)
    w1_p = jnp.zeros((DP, MLP), f32).at[:D, :].set(params['w1']).astype(bf16)
    w2_p = jnp.zeros((MLP, DP), f32).at[:, :D].set(params['w2']).astype(bf16)
    bm1 = params['bm1']

    # eval-mode timm distillation: output = (head(feat) + head_dist(feat)) / 2;
    # the 1/T of the token mean-pool is folded into the fused head weight.
    # TODO(synk): training-mode returns (head, head_dist) tuple; eval path only.
    hw = 0.5 * (params['head_w'] + params['head_dist_w']) * (1.0 / T)
    hb = 0.5 * (params['head_b'] + params['head_dist_b'])
    C = hw.shape[1]
    c_pad = _round_up(C, LANE)               # num_classes <= 128 assumed here
    hw_p = jnp.zeros((DP, c_pad), f32).at[:D, :C].set(hw).astype(bf16)

    # pack all (1, <=128) bias / LN vectors into one (8, 128) constant block
    def row(v):
        return jnp.zeros((1, LANE), f32).at[:, :v.shape[1]].set(v)

    vecs = jnp.concatenate([
        row(params['bp']),
        row(params['ln1_g']), row(params['ln1_b']),
        row(params['bo']),
        row(params['ln2_g']), row(params['ln2_b']),
        row(params['bm2']),
        row(hb),
    ], axis=0)                                # (8, 128)

    # block-diagonal additive mask for G images packed per score tile
    img_id = jnp.arange(GT, dtype=jnp.int32) // T
    attn_bias = jnp.where(img_id[:, None] == img_id[None, :],
                          0.0, NEG_INF).astype(f32)          # (GT, GT)

    param_list = [wp_p, wqkv_p, bqkv_p, wo_p, w1_p, bm1, w2_p, hw_p,
                  vecs, attn_bias]

    in_specs = [pl.BlockSpec((tb * T, PP), lambda b: (b, 0))]
    in_specs += [_full_spec(p.shape) for p in param_list]

    out = pl.pallas_call(
        partial(_backbone_head_kernel, tb=tb),
        out_shape=jax.ShapeDtypeStruct((b_pad, c_pad), f32),
        grid=(nb,),
        in_specs=in_specs,
        out_specs=pl.BlockSpec((tb, c_pad), lambda b: (b, 0)),
        compiler_params=pltpu.CompilerParams(
            dimension_semantics=("parallel",),
            vmem_limit_bytes=32 * 1024 * 1024),
    )(tokens2d, *param_list)
    return out[:B, :C]


def _reference_forward(x_nchw, params):
    """Pure-JAX reference with the same bf16 matmul-operand casts as the kernel."""
    bf16, f32 = jnp.bfloat16, jnp.float32
    B = x_nchw.shape[0]
    xp = x_nchw.reshape(B, IN_CH, IMG // PATCH, PATCH, IMG // PATCH, PATCH)
    xp = xp.transpose(0, 2, 4, 1, 3, 5)
    tok = xp.reshape(B, T, P)

    def ln(x, g, b):
        m = jnp.mean(x, axis=-1, keepdims=True)
        v = jnp.mean((x - m) ** 2, axis=-1, keepdims=True)
        return (x - m) * jax.lax.rsqrt(v + LN_EPS) * g + b

    def mm(a, w):
        return jnp.einsum('...i,ij->...j', a.astype(bf16), w.astype(bf16),
                          preferred_element_type=f32)

    x = mm(tok, params['wp']) + params['bp']
    xn = ln(x, params['ln1_g'], params['ln1_b'])
    q = mm(xn, params['wq']) + params['bq']
    k = mm(xn, params['wk']) + params['bk']
    v = mm(xn, params['wv']) + params['bv']
    s = jnp.einsum('btd,bsd->bts', q.astype(bf16), k.astype(bf16),
                   preferred_element_type=f32) / math.sqrt(D)
    p = jax.nn.softmax(s, axis=-1)
    attn = jnp.einsum('bts,bsd->btd', p.astype(bf16), v.astype(bf16),
                      preferred_element_type=f32)
    x = x + mm(attn, params['wo']) + params['bo']
    xn2 = ln(x, params['ln2_g'], params['ln2_b'])
    h = jax.nn.gelu(mm(xn2, params['w1']) + params['bm1'], approximate=True)
    x = x + mm(h, params['w2']) + params['bm2']
    pooled = jnp.mean(x, axis=1)
    head = mm(pooled, params['head_w']) + params['head_b']
    head_d = mm(pooled, params['head_dist_w']) + params['head_dist_b']
    return 0.5 * (head + head_d)


def init_params(key, num_classes=NUM_CLASSES):
    ks = jax.random.split(key, 12)
    s = 0.02
    f32 = jnp.float32

    def w(k, shape):
        return (s * jax.random.normal(k, shape)).astype(f32)

    return {
        'wp': w(ks[0], (P, D)),   'bp': jnp.zeros((1, D), f32),
        'ln1_g': jnp.ones((1, D), f32), 'ln1_b': jnp.zeros((1, D), f32),
        'wq': w(ks[1], (D, D)),   'bq': jnp.zeros((1, D), f32),
        'wk': w(ks[2], (D, D)),   'bk': jnp.zeros((1, D), f32),
        'wv': w(ks[3], (D, D)),   'bv': jnp.zeros((1, D), f32),
        'wo': w(ks[4], (D, D)),   'bo': jnp.zeros((1, D), f32),
        'ln2_g': jnp.ones((1, D), f32), 'ln2_b': jnp.zeros((1, D), f32),
        'w1': w(ks[5], (D, MLP)), 'bm1': jnp.zeros((1, MLP), f32),
        'w2': w(ks[6], (MLP, D)), 'bm2': jnp.zeros((1, D), f32),
        'head_w':      w(ks[7], (D, num_classes)),
        'head_b':      jnp.zeros((1, num_classes), f32),
        'head_dist_w': w(ks[8], (D, num_classes)),
        'head_dist_b': jnp.zeros((1, num_classes), f32),
    }


if __name__ == "__main__":
    key = jax.random.PRNGKey(0)
    pkey, xkey = jax.random.split(key)
    params = init_params(pkey)

    # small shapes consistent with the module's image-classifier forward
    B = 2
    x = jax.random.normal(xkey, (B, IN_CH, IMG, IMG), dtype=jnp.float32)

    fwd = jax.jit(efficientformer_forward)
    out = fwd(x, params)
    jax.block_until_ready(out)
    assert out.shape == (B, NUM_CLASSES)
    assert bool(jnp.all(jnp.isfinite(out)))

    # numerics: matches a pure-JAX reference (same bf16 operand casts)
    ref = _reference_forward(x, params)
    assert bool(jnp.allclose(out, ref, atol=2e-2, rtol=2e-2))

    # exercise the packed-attention path with a full group of 8 images
    B2 = 8
    x2 = jax.random.normal(xkey, (B2, IN_CH, IMG, IMG), dtype=jnp.float32)
    out2 = jax.jit(efficientformer_forward)(x2, params)
    jax.block_until_ready(out2)
    assert out2.shape == (B2, NUM_CLASSES)
    assert bool(jnp.all(jnp.isfinite(out2)))

    print("KERNEL_OK")
</pallas_src>

<mosaic_0001>
module attributes {stable_mosaic.version = 11 : i64} {
  func.func @_backbone_head_kernel(%arg0: i32, %arg1: memref<128x128xbf16, #tpu.memory_space<vmem>>, %arg2: memref<128x128xbf16, #tpu.memory_space<vmem>>, %arg3: memref<128x384xbf16, #tpu.memory_space<vmem>>, %arg4: memref<1x384xf32, #tpu.memory_space<vmem>>, %arg5: memref<128x128xbf16, #tpu.memory_space<vmem>>, %arg6: memref<128x256xbf16, #tpu.memory_space<vmem>>, %arg7: memref<1x256xf32, #tpu.memory_space<vmem>>, %arg8: memref<256x128xbf16, #tpu.memory_space<vmem>>, %arg9: memref<128x128xbf16, #tpu.memory_space<vmem>>, %arg10: memref<8x128xf32, #tpu.memory_space<vmem>>, %arg11: memref<128x128xf32, #tpu.memory_space<vmem>>, %arg12: memref<8x128xf32, #tpu.memory_space<vmem>>) attributes {dimension_semantics = [#tpu.dimension_semantics<parallel>], iteration_bounds = array<i64: 1>, scalar_prefetch = 0 : i64, scratch_operands = 0 : i64, tpu.core_type = #tpu.core_type<tc>, window_params = [{transform_indices = @transform_0, window_bounds = array<i64: 128, 128>}, {pipeline_mode = #tpu.pipeline_mode<synchronous>, transform_indices = @transform_1, window_bounds = array<i64: 128, 128>}, {pipeline_mode = #tpu.pipeline_mode<synchronous>, transform_indices = @transform_2, window_bounds = array<i64: 128, 384>}, {pipeline_mode = #tpu.pipeline_mode<synchronous>, transform_indices = @transform_3, window_bounds = array<i64: 1, 384>}, {pipeline_mode = #tpu.pipeline_mode<synchronous>, transform_indices = @transform_4, window_bounds = array<i64: 128, 128>}, {pipeline_mode = #tpu.pipeline_mode<synchronous>, transform_indices = @transform_5, window_bounds = array<i64: 128, 256>}, {pipeline_mode = #tpu.pipeline_mode<synchronous>, transform_indices = @transform_6, window_bounds = array<i64: 1, 256>}, {pipeline_mode = #tpu.pipeline_mode<synchronous>, transform_indices = @transform_7, window_bounds = array<i64: 256, 128>}, {pipeline_mode = #tpu.pipeline_mode<synchronous>, transform_indices = @transform_8, window_bounds = array<i64: 128, 128>}, {pipeline_mode = #tpu.pipeline_mode<synchronous>, transform_indices = @transform_9, window_bounds = array<i64: 8, 128>}, {pipeline_mode = #tpu.pipeline_mode<synchronous>, transform_indices = @transform_10, window_bounds = array<i64: 128, 128>}, {transform_indices = @transform_11, window_bounds = array<i64: 8, 128>}]} {
    %c0 = arith.constant 0 : index
    %c0_0 = arith.constant 0 : index
    %0 = vector.load %arg10[%c0, %c0_0] : memref<8x128xf32, #tpu.memory_space<vmem>>, vector<8x128xf32>
    %1 = vector.extract_strided_slice %0 {offsets = [0, 0], sizes = [1, 128], strides = [1, 1]} : vector<8x128xf32> to vector<1x128xf32>
    %2 = vector.extract_strided_slice %0 {offsets = [1, 0], sizes = [1, 128], strides = [1, 1]} : vector<8x128xf32> to vector<1x128xf32>
    %3 = vector.extract_strided_slice %0 {offsets = [2, 0], sizes = [1, 128], strides = [1, 1]} : vector<8x128xf32> to vector<1x128xf32>
    %4 = vector.extract_strided_slice %0 {offsets = [3, 0], sizes = [1, 128], strides = [1, 1]} : vector<8x128xf32> to vector<1x128xf32>
    %5 = vector.extract_strided_slice %0 {offsets = [4, 0], sizes = [1, 128], strides = [1, 1]} : vector<8x128xf32> to vector<1x128xf32>
    %6 = vector.extract_strided_slice %0 {offsets = [5, 0], sizes = [1, 128], strides = [1, 1]} : vector<8x128xf32> to vector<1x128xf32>
    %7 = vector.extract_strided_slice %0 {offsets = [6, 0], sizes = [1, 128], strides = [1, 1]} : vector<8x128xf32> to vector<1x128xf32>
    %8 = vector.extract_strided_slice %0 {offsets = [7, 0], sizes = [1, 128], strides = [1, 1]} : vector<8x128xf32> to vector<1x128xf32>
    %c0_1 = arith.constant 0 : index
    %c0_2 = arith.constant 0 : index
    %9 = vector.load %arg4[%c0_1, %c0_2] : memref<1x384xf32, #tpu.memory_space<vmem>>, vector<1x384xf32>
    %c0_3 = arith.constant 0 : index
    %c0_4 = arith.constant 0 : index
    %10 = vector.load %arg7[%c0_3, %c0_4] : memref<1x256xf32, #tpu.memory_space<vmem>>, vector<1x256xf32>
    %c0_5 = arith.constant 0 : index
    %c0_6 = arith.constant 0 : index
    %11 = vector.load %arg11[%c0_5, %c0_6] : memref<128x128xf32, #tpu.memory_space<vmem>>, vector<128x128xf32>
    %c0_7 = arith.constant 0 : index
    %c0_8 = arith.constant 0 : index
    %12 = vector.load %arg1[%c0_7, %c0_8] : memref<128x128xbf16, #tpu.memory_space<vmem>>, vector<128x128xbf16>
    %c0_9 = arith.constant 0 : index
    %c0_10 = arith.constant 0 : index
    %13 = vector.load %arg2[%c0_9, %c0_10] : memref<128x128xbf16, #tpu.memory_space<vmem>>, vector<128x128xbf16>
    %cst = arith.constant dense<0.000000e+00> : vector<128x128xf32>
    %14 = tpu.matmul %12, %13, %cst {dimension_numbers = #tpu.dot_dimension_numbers<[1], [0], [0], [1], [0, 0, 1, 1], [], []>} : vector<128x128xbf16>, vector<128x128xbf16>, vector<128x128xf32> -> vector<128x128xf32>
    %15 = vector.broadcast %1 : vector<1x128xf32> to vector<128x128xf32>
    %16 = arith.addf %14, %15 : vector<128x128xf32>
    %cst_11 = arith.constant dense<0.000000e+00> : vector<128xf32>
    %17 = vector.multi_reduction <add>, %16, %cst_11 [1] : vector<128x128xf32> to vector<128xf32>
    %18 = vector.shape_cast %17 : vector<128xf32> to vector<128x1xf32>
    %19 = arith.mulf %16, %16 : vector<128x128xf32>
    %cst_12 = arith.constant dense<0.000000e+00> : vector<128xf32>
    %20 = vector.multi_reduction <add>, %19, %cst_12 [1] : vector<128x128xf32> to vector<128xf32>
    %21 = vector.shape_cast %20 : vector<128xf32> to vector<128x1xf32>
    %cst_13 = arith.constant 1.562500e-02 : f32
    %22 = vector.broadcast %cst_13 : f32 to vector<128x1xf32>
    %23 = arith.mulf %18, %22 : vector<128x1xf32>
    %cst_14 = arith.constant 1.562500e-02 : f32
    %24 = vector.broadcast %cst_14 : f32 to vector<128x1xf32>
    %25 = arith.mulf %21, %24 : vector<128x1xf32>
    %26 = arith.mulf %23, %23 : vector<128x1xf32>
    %27 = arith.subf %25, %26 : vector<128x1xf32>
    %28 = vector.broadcast %23 : vector<128x1xf32> to vector<128x128xf32>
    %29 = arith.subf %16, %28 : vector<128x128xf32>
    %cst_15 = arith.constant 9.99999974E-6 : f32
    %30 = vector.broadcast %cst_15 : f32 to vector<128x1xf32>
    %31 = arith.addf %27, %30 : vector<128x1xf32>
    %32 = math.rsqrt %31 : vector<128x1xf32>
    %33 = vector.broadcast %32 : vector<128x1xf32> to vector<128x128xf32>
    %34 = arith.mulf %29, %33 : vector<128x128xf32>
    %35 = vector.broadcast %2 : vector<1x128xf32> to vector<128x128xf32>
    %36 = arith.mulf %34, %35 : vector<128x128xf32>
    %37 = vector.broadcast %3 : vector<1x128xf32> to vector<128x128xf32>
    %38 = arith.addf %36, %37 : vector<128x128xf32>
    %39 = arith.truncf %38 : vector<128x128xf32> to vector<128x128xbf16>
    %c0_16 = arith.constant 0 : index
    %c0_17 = arith.constant 0 : index
    %40 = vector.load %arg3[%c0_16, %c0_17] : memref<128x384xbf16, #tpu.memory_space<vmem>>, vector<128x384xbf16>
    %cst_18 = arith.constant dense<0.000000e+00> : vector<128x384xf32>
    %41 = tpu.matmul %39, %40, %cst_18 {dimension_numbers = #tpu.dot_dimension_numbers<[1], [0], [0], [1], [0, 0, 1, 1], [], []>} : vector<128x128xbf16>, vector<128x384xbf16>, vector<128x384xf32> -> vector<128x384xf32>
    %42 = vector.broadcast %9 : vector<1x384xf32> to vector<128x384xf32>
    %43 = arith.addf %41, %42 : vector<128x384xf32>
    %44 = vector.extract_strided_slice %43 {offsets = [0, 0], sizes = [128, 128], strides = [1, 1]} : vector<128x384xf32> to vector<128x128xf32>
    %45 = vector.shape_cast %44 : vector<128x128xf32> to vector<1x128x128xf32>
    %46 = arith.truncf %45 : vector<1x128x128xf32> to vector<1x128x128xbf16>
    %47 = vector.extract_strided_slice %43 {offsets = [0, 128], sizes = [128, 128], strides = [1, 1]} : vector<128x384xf32> to vector<128x128xf32>
    %48 = vector.shape_cast %47 : vector<128x128xf32> to vector<1x128x128xf32>
    %49 = arith.truncf %48 : vector<1x128x128xf32> to vector<1x128x128xbf16>
    %50 = vector.extract_strided_slice %43 {offsets = [0, 256], sizes = [128, 128], strides = [1, 1]} : vector<128x384xf32> to vector<128x128xf32>
    %51 = vector.shape_cast %50 : vector<128x128xf32> to vector<1x128x128xf32>
    %52 = arith.truncf %51 : vector<1x128x128xf32> to vector<1x128x128xbf16>
    "tpu.trace_start"() <{level = 10 : i32, message = "gtd,gsd->gts"}> : () -> ()
    %cst_19 = arith.constant dense<0.000000e+00> : vector<1x128x128xf32>
    %53 = tpu.matmul %46, %49, %cst_19 {dimension_numbers = #tpu.dot_dimension_numbers<[2], [2], [1], [1], [0, 0, 0, 1, 1, 1], [0], [0]>} : vector<1x128x128xbf16>, vector<1x128x128xbf16>, vector<1x128x128xf32> -> vector<1x128x128xf32>
    "tpu.trace_stop"() : () -> ()
    %54 = vector.shape_cast %11 : vector<128x128xf32> to vector<1x128x128xf32>
    %55 = arith.addf %53, %54 : vector<1x128x128xf32>
    %cst_20 = arith.constant dense<0xFF800000> : vector<1x128xf32>
    %56 = vector.multi_reduction <maximumf>, %55, %cst_20 [2] : vector<1x128x128xf32> to vector<1x128xf32>
    %57 = vector.shape_cast %56 : vector<1x128xf32> to vector<1x128x1xf32>
    %58 = vector.broadcast %57 : vector<1x128x1xf32> to vector<1x128x128xf32>
    %59 = arith.subf %55, %58 : vector<1x128x128xf32>
    %60 = math.exp %59 : vector<1x128x128xf32>
    %cst_21 = arith.constant dense<0.000000e+00> : vector<1x128xf32>
    %61 = vector.multi_reduction <add>, %60, %cst_21 [2] : vector<1x128x128xf32> to vector<1x128xf32>
    %62 = vector.shape_cast %61 : vector<1x128xf32> to vector<1x128x1xf32>
    %63 = tpu.reciprocal %62 {approx = true} : vector<1x128x1xf32> -> vector<1x128x1xf32>
    %64 = vector.broadcast %63 : vector<1x128x1xf32> to vector<1x128x128xf32>
    %65 = arith.mulf %60, %64 : vector<1x128x128xf32>
    %66 = arith.truncf %65 : vector<1x128x128xf32> to vector<1x128x128xbf16>
    "tpu.trace_start"() <{level = 10 : i32, message = "gts,gsd->gtd"}> : () -> ()
    %cst_22 = arith.constant dense<0.000000e+00> : vector<1x128x128xf32>
    %67 = tpu.matmul %66, %52, %cst_22 {dimension_numbers = #tpu.dot_dimension_numbers<[2], [1], [1], [2], [0, 0, 0, 1, 1, 2], [0], [0]>} : vector<1x128x128xbf16>, vector<1x128x128xbf16>, vector<1x128x128xf32> -> vector<1x128x128xf32>
    "tpu.trace_stop"() : () -> ()
    %68 = vector.shape_cast %67 : vector<1x128x128xf32> to vector<128x128xf32>
    %69 = arith.truncf %68 : vector<128x128xf32> to vector<128x128xbf16>
    %c0_23 = arith.constant 0 : index
    %c0_24 = arith.constant 0 : index
    %70 = vector.load %arg5[%c0_23, %c0_24] : memref<128x128xbf16, #tpu.memory_space<vmem>>, vector<128x128xbf16>
    %cst_25 = arith.constant dense<0.000000e+00> : vector<128x128xf32>
    %71 = tpu.matmul %69, %70, %cst_25 {dimension_numbers = #tpu.dot_dimension_numbers<[1], [0], [0], [1], [0, 0, 1, 1], [], []>} : vector<128x128xbf16>, vector<128x128xbf16>, vector<128x128xf32> -> vector<128x128xf32>
    %72 = arith.addf %16, %71 : vector<128x128xf32>
    %73 = vector.broadcast %4 : vector<1x128xf32> to vector<128x128xf32>
    %74 = arith.addf %72, %73 : vector<128x128xf32>
    %cst_26 = arith.constant dense<0.000000e+00> : vector<128xf32>
    %75 = vector.multi_reduction <add>, %74, %cst_26 [1] : vector<128x128xf32> to vector<128xf32>
    %76 = vector.shape_cast %75 : vector<128xf32> to vector<128x1xf32>
    %77 = arith.mulf %74, %74 : vector<128x128xf32>
    %cst_27 = arith.constant dense<0.000000e+00> : vector<128xf32>
    %78 = vector.multi_reduction <add>, %77, %cst_27 [1] : vector<128x128xf32> to vector<128xf32>
    %79 = vector.shape_cast %78 : vector<128xf32> to vector<128x1xf32>
    %cst_28 = arith.constant 1.562500e-02 : f32
    %80 = vector.broadcast %cst_28 : f32 to vector<128x1xf32>
    %81 = arith.mulf %76, %80 : vector<128x1xf32>
    %cst_29 = arith.constant 1.562500e-02 : f32
    %82 = vector.broadcast %cst_29 : f32 to vector<128x1xf32>
    %83 = arith.mulf %79, %82 : vector<128x1xf32>
    %84 = arith.mulf %81, %81 : vector<128x1xf32>
    %85 = arith.subf %83, %84 : vector<128x1xf32>
    %86 = vector.broadcast %81 : vector<128x1xf32> to vector<128x128xf32>
    %87 = arith.subf %74, %86 : vector<128x128xf32>
    %cst_30 = arith.constant 9.99999974E-6 : f32
    %88 = vector.broadcast %cst_30 : f32 to vector<128x1xf32>
    %89 = arith.addf %85, %88 : vector<128x1xf32>
    %90 = math.rsqrt %89 : vector<128x1xf32>
    %91 = vector.broadcast %90 : vector<128x1xf32> to vector<128x128xf32>
    %92 = arith.mulf %87, %91 : vector<128x128xf32>
    %93 = vector.broadcast %5 : vector<1x128xf32> to vector<128x128xf32>
    %94 = arith.mulf %92, %93 : vector<128x128xf32>
    %95 = vector.broadcast %6 : vector<1x128xf32> to vector<128x128xf32>
    %96 = arith.addf %94, %95 : vector<128x128xf32>
    %97 = arith.truncf %96 : vector<128x128xf32> to vector<128x128xbf16>
    %c0_31 = arith.constant 0 : index
    %c0_32 = arith.constant 0 : index
    %98 = vector.load %arg6[%c0_31, %c0_32] : memref<128x256xbf16, #tpu.memory_space<vmem>>, vector<128x256xbf16>
    %cst_33 = arith.constant dense<0.000000e+00> : vector<128x256xf32>
    %99 = tpu.matmul %97, %98, %cst_33 {dimension_numbers = #tpu.dot_dimension_numbers<[1], [0], [0], [1], [0, 0, 1, 1], [], []>} : vector<128x128xbf16>, vector<128x256xbf16>, vector<128x256xf32> -> vector<128x256xf32>
    %100 = vector.broadcast %10 : vector<1x256xf32> to vector<128x256xf32>
    %101 = arith.addf %99, %100 : vector<128x256xf32>
    %102 = arith.mulf %101, %101 : vector<128x256xf32>
    %103 = arith.mulf %101, %102 : vector<128x256xf32>
    %cst_34 = arith.constant 4.471500e-02 : f32
    %104 = vector.broadcast %cst_34 : f32 to vector<128x256xf32>
    %105 = arith.mulf %104, %103 : vector<128x256xf32>
    %106 = arith.addf %101, %105 : vector<128x256xf32>
    %cst_35 = arith.constant 0.797884583 : f32
    %107 = vector.broadcast %cst_35 : f32 to vector<128x256xf32>
    %108 = arith.mulf %107, %106 : vector<128x256xf32>
    %109 = math.tanh %108 : vector<128x256xf32>
    %cst_36 = arith.constant 1.000000e+00 : f32
    %110 = vector.broadcast %cst_36 : f32 to vector<128x256xf32>
    %111 = arith.addf %110, %109 : vector<128x256xf32>
    %cst_37 = arith.constant 5.000000e-01 : f32
    %112 = vector.broadcast %cst_37 : f32 to vector<128x256xf32>
    %113 = arith.mulf %112, %111 : vector<128x256xf32>
    %114 = arith.mulf %101, %113 : vector<128x256xf32>
    %115 = arith.truncf %114 : vector<128x256xf32> to vector<128x256xbf16>
    %c0_38 = arith.constant 0 : index
    %c0_39 = arith.constant 0 : index
    %116 = vector.load %arg8[%c0_38, %c0_39] : memref<256x128xbf16, #tpu.memory_space<vmem>>, vector<256x128xbf16>
    %cst_40 = arith.constant dense<0.000000e+00> : vector<128x128xf32>
    %117 = tpu.matmul %115, %116, %cst_40 {dimension_numbers = #tpu.dot_dimension_numbers<[1], [0], [0], [1], [0, 0, 1, 1], [], []>} : vector<128x256xbf16>, vector<256x128xbf16>, vector<128x128xf32> -> vector<128x128xf32>
    %118 = arith.addf %74, %117 : vector<128x128xf32>
    %119 = vector.broadcast %7 : vector<1x128xf32> to vector<128x128xf32>
    %120 = arith.addf %118, %119 : vector<128x128xf32>
    %121 = vector.shape_cast %120 : vector<128x128xf32> to vector<8x16x128xf32>
    %cst_41 = arith.constant dense<0.000000e+00> : vector<8x128xf32>
    %122 = vector.multi_reduction <add>, %121, %cst_41 [1] : vector<8x16x128xf32> to vector<8x128xf32>
    %123 = arith.truncf %122 : vector<8x128xf32> to vector<8x128xbf16>
    %c0_42 = arith.constant 0 : index
    %c0_43 = arith.constant 0 : index
    %124 = vector.load %arg9[%c0_42, %c0_43] : memref<128x128xbf16, #tpu.memory_space<vmem>>, vector<128x128xbf16>
    %cst_44 = arith.constant dense<0.000000e+00> : vector<8x128xf32>
    %125 = tpu.matmul %123, %124, %cst_44 {dimension_numbers = #tpu.dot_dimension_numbers<[1], [0], [0], [1], [0, 0, 1, 1], [], []>} : vector<8x128xbf16>, vector<128x128xbf16>, vector<8x128xf32> -> vector<8x128xf32>
    %126 = vector.broadcast %8 : vector<1x128xf32> to vector<8x128xf32>
    %127 = arith.addf %125, %126 : vector<8x128xf32>
    %c0_45 = arith.constant 0 : index
    %c0_46 = arith.constant 0 : index
    %128 = vector.load %arg12[%c0_45, %c0_46] : memref<8x128xf32, #tpu.memory_space<vmem>>, vector<8x128xf32>
    tpu.vector_store %arg12[%c0_45, %c0_46], %127 {strides = array<i32>} : memref<8x128xf32, #tpu.memory_space<vmem>>, vector<8x128xf32>,
    return
  }
  func.func @transform_0(%arg0: i32) -> (i32, i32) {
    %c0_i32 = arith.constant 0 : i32
    %c0_i32_0 = arith.constant 0 : i32
    return %arg0, %c0_i32 : i32, i32
  }
  func.func @transform_1(%arg0: i32) -> (i32, i32) {
    %c0_i32 = arith.constant 0 : i32
    %c0_i32_0 = arith.constant 0 : i32
    %c0_i32_1 = arith.constant 0 : i32
    return %c0_i32, %c0_i32_0 : i32, i32
  }
  func.func @transform_2(%arg0: i32) -> (i32, i32) {
    %c0_i32 = arith.constant 0 : i32
    %c0_i32_0 = arith.constant 0 : i32
    %c0_i32_1 = arith.constant 0 : i32
    return %c0_i32, %c0_i32_0 : i32, i32
  }
  func.func @transform_3(%arg0: i32) -> (i32, i32) {
    %c0_i32 = arith.constant 0 : i32
    %c0_i32_0 = arith.constant 0 : i32
    %c0_i32_1 = arith.constant 0 : i32
    return %c0_i32, %c0_i32_0 : i32, i32
  }
  func.func @transform_4(%arg0: i32) -> (i32, i32) {
    %c0_i32 = arith.constant 0 : i32
    %c0_i32_0 = arith.constant 0 : i32
    %c0_i32_1 = arith.constant 0 : i32
    return %c0_i32, %c0_i32_0 : i32, i32
  }
  func.func @transform_5(%arg0: i32) -> (i32, i32) {
    %c0_i32 = arith.constant 0 : i32
    %c0_i32_0 = arith.constant 0 : i32
    %c0_i32_1 = arith.constant 0 : i32
    return %c0_i32, %c0_i32_0 : i32, i32
  }
  func.func @transform_6(%arg0: i32) -> (i32, i32) {
    %c0_i32 = arith.constant 0 : i32
    %c0_i32_0 = arith.constant 0 : i32
    %c0_i32_1 = arith.constant 0 : i32
    return %c0_i32, %c0_i32_0 : i32, i32
  }
  func.func @transform_7(%arg0: i32) -> (i32, i32) {
    %c0_i32 = arith.constant 0 : i32
    %c0_i32_0 = arith.constant 0 : i32
    %c0_i32_1 = arith.constant 0 : i32
    return %c0_i32, %c0_i32_0 : i32, i32
  }
  func.func @transform_8(%arg0: i32) -> (i32, i32) {
    %c0_i32 = arith.constant 0 : i32
    %c0_i32_0 = arith.constant 0 : i32
    %c0_i32_1 = arith.constant 0 : i32
    return %c0_i32, %c0_i32_0 : i32, i32
  }
  func.func @transform_9(%arg0: i32) -> (i32, i32) {
    %c0_i32 = arith.constant 0 : i32
    %c0_i32_0 = arith.constant 0 : i32
    %c0_i32_1 = arith.constant 0 : i32
    return %c0_i32, %c0_i32_0 : i32, i32
  }
  func.func @transform_10(%arg0: i32) -> (i32, i32) {
    %c0_i32 = arith.constant 0 : i32
    %c0_i32_0 = arith.constant 0 : i32
    %c0_i32_1 = arith.constant 0 : i32
    return %c0_i32, %c0_i32_0 : i32, i32
  }
  func.func @transform_11(%arg0: i32) -> (i32, i32) {
    %c0_i32 = arith.constant 0 : i32
    %c0_i32_0 = arith.constant 0 : i32
    return %arg0, %c0_i32 : i32, i32
  }
}

</mosaic_0001>

<bundles_post_ra>
// kernel: efficientformer_forward.1
= control target key start
LH: loop header
LB: loop body
LE: loop exit
PB: predicated region body
PF: predicated region fallthrough
CT: control target
= control target key end

     0   :  { %v90_v16 = vlaneseq  ;;  %vm3478_vm0 = vmmov 0   ;;  %vm2645_vm1 = vcmask 1041409   ;;  %vm2647_vm2 = vcmask 1042434   ;;  %s4978_s1 = inlined_call_operand.vmem [shape: bf16[128,128], index: 1, kind: input, shape index: {}]   ;;  %s4979_s0 = inlined_call_operand.vmem [shape: bf16[128,128], index: 0, kind: input, shape index: {}]   ;;  %s4980_s9 = inlined_call_operand.vmem [shape: f32[8,128], index: 9, kind: input, shape index: {}]   ;;  %s4981_s2 = inlined_call_operand.vmem [shape: bf16[128,384], index: 2, kind: input, shape index: {}]   ;;  %s4982_s3 = inlined_call_operand.vmem [shape: f32[1,384], index: 3, kind: input, shape index: {}]   ;;  %s4983_s10 = inlined_call_operand.vmem [shape: f32[128,128], index: 10, kind: input, shape index: {}]   ;;  %s4984_s4 = inlined_call_operand.vmem [shape: bf16[128,128], index: 4, kind: input, shape index: {}]   ;;  %s4985_s5 = inlined_call_operand.vmem [shape: bf16[128,256], index: 5, kind: input, shape index: {}]   ;;  %s4986_s7 = inlined_call_operand.vmem [shape: bf16[256,128], index: 7, kind: input, shape index: {}]   ;;  %s4987_s6 = inlined_call_operand.vmem [shape: f32[1,256], index: 6, kind: input, shape index: {}]   ;;  %s4988_s8 = inlined_call_operand.vmem [shape: bf16[128,128], index: 8, kind: input, shape index: {}]   ;;  %s4989_s11 = inlined_call_operand.vmem [shape: f32[8,128], index: 11, kind: output, shape index: {}]  }
   0x1   :  { %v3178_v0 = vld [vmem:[%s4978_s1 + $0x38] sm:$0xff]   ;;  %v3179_v1 = vld [vmem:[%s4978_s1 + $0x30] sm:$0xff]   ;;  %v3180_v2 = vld [vmem:[%s4978_s1 + $0x28] sm:$0xff]   ;;  %vm2649_vm3 = vcmask 1043459   ;;  %vm2651_vm4 = vcmask 1044484   ;;  %vm2653_vm5 = vcmask 1045509  }
   0x2   :  { %2995 = vmatprep.subr.bf16.mxu0 %v3178_v0  ;;  %v3181_v3 = vld [vmem:[%s4978_s1 + $0x20] sm:$0xff]   ;;  %v3182_v5 = vld [vmem:[%s4978_s1 + $0x18] sm:$0xff]   ;;  %v3183_v6 = vld [vmem:[%s4978_s1 + $0x10] sm:$0xff]   ;;  %v3587_v17 = vshrl.u32 %v90_v16, 7  ;;  %vm2655_vm6 = vcmask 1046534   ;;  %vm2657_vm7 = vcmask 1047559  }
   0x3   :  { %2996 = vmatpush3.bf16.msra.mxu0 %v3178_v0  ;;  %v3186_v4 = vld [vmem:[%s4979_s0] sm:$0xff]   ;;  %v3184_v7 = vld [vmem:[%s4978_s1 + $0x8] sm:$0xff]   ;;  %v3188_v10 = vld [vmem:[%s4979_s0 + $0x10] sm:$0xff]  }
   0x4   :  { %2997 = vmatprep.subr.bf16.mxu0 %v3179_v1  ;;  %3011 = vmatprep.mubr.bf16.mxu0 %v3186_v4  ;;  %v3185_v8 = vld [vmem:[%s4978_s1] sm:$0xff]   ;;  %v3187_v9 = vld [vmem:[%s4979_s0 + $0x8] sm:$0xff]   ;;  %v3189_v11 = vld [vmem:[%s4979_s0 + $0x18] sm:$0xff]   ;;  %v3590_v18 = vsub.s32 0, %v3587_v17 }
   0x5   :  { %v3190_v12 = vld [vmem:[%s4979_s0 + $0x20] sm:$0xff]   ;;  %v3191_v13 = vld [vmem:[%s4979_s0 + $0x28] sm:$0xff]   ;;  %v3192_v14 = vld [vmem:[%s4979_s0 + $0x30] sm:$0xff]  }
   0x6   :  { %v3193_v15 = vld [vmem:[%s4979_s0 + $0x38] sm:$0xff]   ;;  %5013 = vst [vmem:[#allocation2_spill] sm:$0xff] %v3590_v18  ;;  %v3595_v19 = vld [vmem:[%s4980_s9] sm:$0xff]  ;;  %v3196_v36 = vld [vmem:[%s4981_s2 + $0xa8] ss:$12 sps:$4 sm:$0xff]  }
   0x7   :  { %2998 = vmatpush3.bf16.msra.mxu0 %v3179_v1  ;;  %v3599_v21 = vrot.slane %v3595_v19, %v3590_v18  ;;  %v3194_v35 = vld [vmem:[%s4981_s2 + $0xac] ss:$12 sps:$4 sm:$0xff]   ;;  %v3197_v40 = vld [vmem:[%s4981_s2 + $0x94] ss:$12 sps:$4 sm:$0xff]   ;;  %v3199_v41 = vld [vmem:[%s4981_s2 + $0x90] ss:$12 sps:$4 sm:$0xff]  }
   0x8   :  { %2999 = vmatprep.subr.bf16.mxu0 %v3180_v2  ;;  %719 = vmatprep.subr.bf16.mxu1 %v3194_v35  ;;  %v3200_v45 = vld [vmem:[%s4981_s2 + $0x7c] ss:$12 sps:$4 sm:$0xff]   ;;  %v3203_v47 = vld [vmem:[%s4981_s2 + $0x78] ss:$12 sps:$4 sm:$0xff]   ;;  %v3207_v53 = vld [vmem:[%s4981_s2 + $0x60] ss:$12 sps:$4 sm:$0xff]  }
   0x9   :  { %720 = vmatpush1.bf16.msra.mxu1 %v3196_v36  ;;  %v3202_v46 = vld [vmem:[%s4981_s2 + $0xb0] ss:$12 sps:$4 sm:$0xff]   ;;  %v3206_v52 = vld [vmem:[%s4981_s2 + $0x98] ss:$12 sps:$4 sm:$0xff]   ;;  %v3210_v58 = vld [vmem:[%s4981_s2 + $0x80] ss:$12 sps:$4 sm:$0xff]  }
   0xa   :  { %721 = vmatprep.subr.bf16.mxu1 %v3197_v40  ;;  %v3204_v51 = vld [vmem:[%s4981_s2 + $0x64] ss:$12 sps:$4 sm:$0xff]   ;;  %v3208_v57 = vld [vmem:[%s4981_s2 + $0x4c] ss:$12 sps:$4 sm:$0xff]   ;;  %v3211_v60 = vld [vmem:[%s4981_s2 + $0x48] ss:$12 sps:$4 sm:$0xff]  }
   0xb   :  { %3000 = vmatpush3.bf16.msra.mxu0 %v3180_v2  ;;  %v3212_v63 = vld [vmem:[%s4981_s2 + $0x34] ss:$12 sps:$4 sm:$0xff]   ;;  %v3215_v2 = vld [vmem:[%s4981_s2 + $0x30] ss:$12 sps:$4 sm:$0xff]  }
   0xc   :  { %3001 = vmatprep.subr.bf16.mxu0 %v3181_v3  ;;  %v3214_v0 = vld [vmem:[%s4981_s2 + $0x68] ss:$12 sps:$4 sm:$0xff]  }
   0xd   :  { %722 = vmatpush1.bf16.msra.mxu1 %v3199_v41 }
   0xe   :  { %723 = vmatprep.subr.bf16.mxu1 %v3200_v45 }
   0xf   :  { %3002 = vmatpush3.bf16.msra.mxu0 %v3181_v3 }
  0x10   :  { %3003 = vmatprep.subr.bf16.mxu0 %v3182_v5 }
  0x11   :  { %724 = vmatpush1.bf16.msra.mxu1 %v3203_v47 }
  0x12   :  { %725 = vmatprep.subr.bf16.mxu1 %v3204_v51 }
  0x13   :  { %3004 = vmatpush3.bf16.msra.mxu0 %v3182_v5  ;;  %v3216_v5 = vld [vmem:[%s4981_s2 + $0x1c] ss:$12 sps:$4 sm:$0xff]  }
  0x14   :  { %3005 = vmatprep.subr.bf16.mxu0 %v3183_v6 }
  0x15   :  { %726 = vmatpush1.bf16.msra.mxu1 %v3207_v53 }
  0x16   :  { %727 = vmatprep.subr.bf16.mxu1 %v3208_v57 }
  0x17   :  { %3006 = vmatpush3.bf16.msra.mxu0 %v3183_v6  ;;  %v3218_v6 = vld [vmem:[%s4981_s2 + $0x50] ss:$12 sps:$4 sm:$0xff]  }
  0x18   :  { %3007 = vmatprep.subr.bf16.mxu0 %v3184_v7 }
  0x19   :  { %728 = vmatpush1.bf16.msra.mxu1 %v3211_v60 }
  0x1a   :  { %729 = vmatprep.subr.bf16.mxu1 %v3212_v63 }
  0x1b   :  { %3008 = vmatpush3.bf16.msra.mxu0 %v3184_v7 }
  0x1c   :  { %3009 = vmatprep.subr.bf16.mxu0 %v3185_v8 }
  0x1d   :  { %730 = vmatpush1.bf16.msra.mxu1 %v3215_v2 }
  0x1e   :  { %731 = vmatprep.subr.bf16.mxu1 %v3216_v5 }
  0x1f   :  { %3010 = vmatpush3.bf16.msra.mxu0 %v3185_v8  ;;  %v3219_v8 = vld [vmem:[%s4981_s2 + $0x18] ss:$12 sps:$4 sm:$0xff]  }
  0x20   :  { %3027 = vmatprep.subr.bf16.mxu0 %v3202_v46 }
  0x21   :  { %732 = vmatpush1.bf16.msra.mxu1 %v3219_v8 }
  0x22   :  { %3012 = vmatmul.mubr.bf16.vlgmr.msra.gmra.mxu0 %v3187_v9 }
  0x23   :  { %3015 = vmatprep.mubr.bf16.mxu0 %v3188_v10  ;;  %3028 = vmatpush3.bf16.msra.mxu0 %v3202_v46 }
  0x24   :  { %3029 = vmatprep.subr.bf16.mxu0 %v3206_v52 }
  0x27   :  { %3030 = vmatpush3.bf16.msra.mxu0 %v3206_v52 }
  0x28   :  { %3031 = vmatprep.subr.bf16.mxu0 %v3210_v58 }
  0x2a   :  { %3016 = vmatmul.mubr.bf16.gmra.mxu0 %v3189_v11  ;;  %v3220_v11 = vld [vmem:[%s4981_s2 + $0x4] ss:$12 sps:$4 sm:$0xff]  }
  0x2b   :  { %3019 = vmatprep.mubr.bf16.mxu0 %v3190_v12  ;;  %3032 = vmatpush3.bf16.msra.mxu0 %v3210_v58  ;;  %v3222_v12 = vld [vmem:[%s4981_s2 + $0x38] ss:$12 sps:$4 sm:$0xff]  }
  0x2c   :  { %3033 = vmatprep.subr.bf16.mxu0 %v3214_v0  ;;  %733 = vmatprep.subr.bf16.mxu1 %v3220_v11 }
  0x2f   :  { %3034 = vmatpush3.bf16.msra.mxu0 %v3214_v0 }
  0x30   :  { %3035 = vmatprep.subr.bf16.mxu0 %v3218_v6 }
  0x32   :  { %3020 = vmatmul.mubr.bf16.gmra.mxu0 %v3191_v13 }
  0x33   :  { %3023 = vmatprep.mubr.bf16.mxu0 %v3192_v14  ;;  %3036 = vmatpush3.bf16.msra.mxu0 %v3218_v6  ;;  %v3223_v14 = vld [vmem:[%s4981_s2] ss:$12 sps:$4 sm:$0xff]  }
  0x34   :  { %3037 = vmatprep.subr.bf16.mxu0 %v3222_v12  ;;  %734 = vmatpush1.bf16.msra.mxu1 %v3223_v14  ;;  %v3783_v14 = vsub.s32 1, %v3587_v17 }
  0x36   :  { %5024 = vst [vmem:[#allocation13_spill] sm:$0xff] %v3783_v14 }
  0x37   :  { %3038 = vmatpush3.bf16.msra.mxu0 %v3222_v12 }
  0x3a   :  { %3024 = vmatmul.mubr.bf16.gmra.mxu0 %v3193_v15 }
  0xe2   :  { %v3013_v20 = vpop.f32.mrf.mxu0 }
  0xe3   :  { %v3614_v31 = vadd.f32 %v3013_v20, %v3599_v21  ;;  %v3224_v20 = vld [vmem:[%s4981_s2 + $0x20] ss:$12 sps:$4 sm:$0xff]  }
  0xe4   :  { %v224_v22 = vpop.f32.mrf.mxu0  ;;  %3039 = vmatprep.subr.bf16.mxu0 %v3224_v20 }
  0xe5   :  { %v3602_v23 = vadd.f32 %v224_v22, %v3599_v21  ;;  %v321_v34 = vmul.f32 %v3614_v31, %v3614_v31  ;;  %3040 = vmatpush3.bf16.msra.mxu0 %v3224_v20 }
  0xe6   :  { %v3014_v24 = vpop.f32.mrf.mxu0 }
  0xe7   :  { %287 = vadd.xlane.f32.xlu0 %v3602_v23  ;;  %v319_v25 = vmul.f32 %v3602_v23, %v3602_v23  ;;  %v3617_v32 = vadd.f32 %v3014_v24, %v3599_v21  ;;  %v4990_v24 = vmov 0  }
  0xe8   :  { %v227_v26 = vpop.f32.mrf.mxu0  ;;  %751 = vmatprep.mubr.bf16.mxu1 %v4990_v24 }
  0xe9   :  { %v3608_v27 = vadd.f32 %v227_v26, %v3599_v21  ;;  %335 = vadd.xlane.f32.xlu1 %v319_v25  ;;  %v322_v37 = vmul.f32 %v3617_v32, %v3617_v32 }
  0xea   :  { %v3017_v28 = vpop.f32.mrf.mxu0 }
  0xeb   :  { %289 = vadd.xlane.f32.xlu0 %v3608_v27  ;;  %v320_v29 = vmul.f32 %v3608_v27, %v3608_v27  ;;  %v3659_v50 = vadd.f32 %v3017_v28, %v3599_v21  ;;  %v3225_v28 = vld [vmem:[%s4981_s2 + $0x8] ss:$12 sps:$4 sm:$0xff]  }
  0xec   :  { %v240_v30 = vpop.f32.mrf.mxu0  ;;  %3041 = vmatprep.subr.bf16.mxu0 %v3225_v28 }
  0xed   :  { %337 = vadd.xlane.f32.xlu1 %v320_v29  ;;  %v3632_v39 = vadd.f32 %v240_v30, %v3599_v21  ;;  %5014 = vst [vmem:[#allocation3_spill] sm:$0xff] %v3659_v50  ;;  %v325_v56 = vmul.f32 %v3659_v50, %v3659_v50  ;;  %3042 = vmatpush3.bf16.msra.mxu0 %v3225_v28 }
  0xee   :  { %v3018_v33 = vpop.f32.mrf.mxu0 }
  0xef   :  { %291 = vadd.xlane.f32.xlu0 %v3614_v31  ;;  %v323_v44 = vmul.f32 %v3632_v39, %v3632_v39  ;;  %v3671_v54 = vadd.f32 %v3018_v33, %v3599_v21 }
  0xf0   :  { %v243_v38 = vpop.f32.mrf.mxu0 }
  0xf1   :  { %293 = vadd.xlane.f32.xlu1 %v3617_v32  ;;  %v3641_v42 = vadd.f32 %v243_v38, %v3599_v21  ;;  %5015 = vst [vmem:[#allocation4_spill] sm:$0xff] %v3671_v54  ;;  %v326_v59 = vmul.f32 %v3671_v54, %v3671_v54 }
  0xf2   :  { %v3021_v43 = vpop.f32.mrf.mxu0 }
  0xf3   :  { %339 = vadd.xlane.f32.xlu0 %v321_v34  ;;  %v324_v48 = vmul.f32 %v3641_v42, %v3641_v42  ;;  %v3719_v10 = vadd.f32 %v3021_v43, %v3599_v21 }
  0xf4   :  { %v256_v49 = vpop.f32.mrf.mxu0 }
  0xf5   :  { %341 = vadd.xlane.f32.xlu1 %v322_v37  ;;  %v3689_v62 = vadd.f32 %v256_v49, %v3599_v21  ;;  %5018 = vst [vmem:[#allocation7_spill] sm:$0xff] %v3719_v10  ;;  %v329_v16 = vmul.f32 %v3719_v10, %v3719_v10 }
  0xf6   :  { %v3022_v55 = vpop.f32.mrf.mxu0 }
  0xf7   :  { %295 = vadd.xlane.f32.xlu0 %v3632_v39  ;;  %5016 = vst [vmem:[#allocation5_spill] sm:$0xff] %v3689_v62  ;;  %v327_v4 = vmul.f32 %v3689_v62, %v3689_v62  ;;  %v3728_v13 = vadd.f32 %v3022_v55, %v3599_v21 }
  0xf8   :  { %v259_v61 = vpop.f32.mrf.mxu0 }
  0xf9   :  { %297 = vadd.xlane.f32.xlu1 %v3641_v42  ;;  %v3698_v1 = vadd.f32 %v259_v61, %v3599_v21  ;;  %5019 = vst [vmem:[#allocation8_spill] sm:$0xff] %v3728_v13  ;;  %v330_v22 = vmul.f32 %v3728_v13, %v3728_v13 }
  0xfa   :  { %v3025_v3 = vpop.f32.mrf.mxu0 }
  0xfb   :  { %343 = vadd.xlane.f32.xlu0 %v323_v44  ;;  %5017 = vst [vmem:[#allocation6_spill] sm:$0xff] %v3698_v1  ;;  %v328_v7 = vmul.f32 %v3698_v1, %v3698_v1  ;;  %v3759_v34 = vadd.f32 %v3025_v3, %v3599_v21 }
  0xfc   :  { %v272_v9 = vpop.f32.mrf.mxu0 }
  0xfd   :  { %345 = vadd.xlane.f32.xlu1 %v324_v48  ;;  %v3744_v26 = vadd.f32 %v272_v9, %v3599_v21  ;;  %5022 = vst [vmem:[#allocation11_spill] sm:$0xff] %v3759_v34  ;;  %v333_v36 = vmul.f32 %v3759_v34, %v3759_v34 }
  0xfe   :  { %v3026_v15 = vpop.f32.mrf.mxu0 }
  0xff   :  { %299 = vadd.xlane.f32.xlu0 %v3659_v50  ;;  %5020 = vst [vmem:[#allocation9_spill] sm:$0xff] %v3744_v26  ;;  %v331_v30 = vmul.f32 %v3744_v26, %v3744_v26  ;;  %v3762_v35 = vadd.f32 %v3026_v15, %v3599_v21 }
 0x100   :  { %v275_v25 = vpop.f32.mrf.mxu0 }
 0x101   :  { %301 = vadd.xlane.f32.xlu1 %v3671_v54  ;;  %v3750_v29 = vadd.f32 %v275_v25, %v3599_v21  ;;  %5023 = vst [vmem:[#allocation12_spill] sm:$0xff] %v3762_v35  ;;  %v334_v37 = vmul.f32 %v3762_v35, %v3762_v35 }
 0x103   :  { %347 = vadd.xlane.f32.xlu0 %v325_v56  ;;  %5021 = vst [vmem:[#allocation10_spill] sm:$0xff] %v3750_v29  ;;  %v332_v33 = vmul.f32 %v3750_v29, %v3750_v29 }
 0x105   :  { %349 = vadd.xlane.f32.xlu1 %v326_v59 }
 0x107   :  { %303 = vadd.xlane.f32.xlu0 %v3689_v62 }
 0x109   :  { %305 = vadd.xlane.f32.xlu1 %v3698_v1 }
 0x10b   :  { %351 = vadd.xlane.f32.xlu0 %v327_v4 }
 0x10d   :  { %353 = vadd.xlane.f32.xlu1 %v328_v7 }
 0x10f   :  { %307 = vadd.xlane.f32.xlu0 %v3719_v10 }
 0x111   :  { %309 = vadd.xlane.f32.xlu1 %v3728_v13 }
 0x113   :  { %355 = vadd.xlane.f32.xlu0 %v329_v16 }
 0x115   :  { %357 = vadd.xlane.f32.xlu1 %v330_v22 }
 0x117   :  { %311 = vadd.xlane.f32.xlu0 %v3744_v26 }
 0x119   :  { %313 = vadd.xlane.f32.xlu1 %v3750_v29 }
 0x11b   :  { %359 = vadd.xlane.f32.xlu0 %v331_v30 }
 0x11d   :  { %361 = vadd.xlane.f32.xlu1 %v332_v33 }
 0x11f   :  { %315 = vadd.xlane.f32.xlu0 %v3759_v34 }
 0x121   :  { %317 = vadd.xlane.f32.xlu1 %v3762_v35 }
 0x123   :  { %363 = vadd.xlane.f32.xlu0 %v333_v36 }
 0x125   :  { %365 = vadd.xlane.f32.xlu1 %v334_v37 }
 0x170   :  { %v288_v38 = vpop.xlane.xlu0 %287 }
 0x171   :  { %v367_v40 = vmul.f32 0.015625, %v288_v38  ;;  %v3792_v38 = vrot.slane %v3595_v19, %v3783_v14 }
 0x172   :  { %v336_v41 = vpop.xlane.xlu1 %335 }
 0x173   :  { %v399_v43 = vmul.f32 %v367_v40, %v367_v40  ;;  %v383_v44 = vmul.f32 0.015625, %v336_v41  ;;  %v431_v22 = vsub.f32 %v3602_v23, %v367_v40  ;;  %v4992_v41 = vsub.s32 2, %v3587_v17 }
 0x174   :  { %v290_v45 = vpop.xlane.xlu0 %289 }
 0x175   :  { %v415_v21 = vsub.f32 %v383_v44, %v399_v43  ;;  %v368_v46 = vmul.f32 0.015625, %v290_v45 }
 0x176   :  { %v338_v47 = vpop.xlane.xlu1 %337 }
 0x177   :  { %v447_v48 = vadd.f32 1e-05, %v415_v21  ;;  %v400_v49 = vmul.f32 %v368_v46, %v368_v46  ;;  %v384_v51 = vmul.f32 0.015625, %v338_v47  ;;  %v432_v40 = vsub.f32 %v3608_v27, %v368_v46 }
 0x178   :  { %v292_v52 = vpop.xlane.xlu0 %291 }
 0x179   :  { %3282 = vrsqrt.f32 %v447_v48  ;;  %v416_v53 = vsub.f32 %v384_v51, %v400_v49  ;;  %v3770_v55 = vmul.f32 0.015625, %v292_v52 }
 0x17a   :  { %v294_v56 = vpop.xlane.xlu1 %293 }
 0x17b   :  { %v448_v57 = vadd.f32 1e-05, %v416_v53  ;;  %v3772_v58 = vmul.f32 0.015625, %v294_v56  ;;  %v401_v60 = vmul.f32 %v3770_v55, %v3770_v55  ;;  %v3804_v56 = vrot.slane %v3595_v19, %v4992_v41 }
 0x17c   :  { %v340_v59 = vpop.xlane.xlu0 %339 }
 0x17d   :  { %3284 = vrsqrt.f32 %v448_v57  ;;  %v385_v61 = vmul.f32 0.015625, %v340_v59  ;;  %v402_v0 = vmul.f32 %v3772_v58, %v3772_v58 }
 0x17e   :  { %v342_v63 = vpop.xlane.xlu1 %341 }
 0x17f   :  { %v417_v2 = vsub.f32 %v385_v61, %v401_v60  ;;  %v386_v3 = vmul.f32 0.015625, %v342_v63  ;;  %v433_v61 = vsub.f32 %v3614_v31, %v3770_v55  ;;  %v434_v55 = vsub.f32 %v3617_v32, %v3772_v58 }
 0x180   :  { %v296_v4 = vpop.xlane.xlu0 %295 }
 0x181   :  { %v449_v5 = vadd.f32 1e-05, %v417_v2  ;;  %v418_v6 = vsub.f32 %v386_v3, %v402_v0  ;;  %v3778_v7 = vmul.f32 0.015625, %v296_v4 }
 0x182   :  { %v298_v8 = vpop.xlane.xlu1 %297 }
 0x183   :  { %3286 = vrsqrt.f32 %v449_v5  ;;  %v450_v9 = vadd.f32 1e-05, %v418_v6  ;;  %v3780_v11 = vmul.f32 0.015625, %v298_v8  ;;  %v403_v15 = vmul.f32 %v3778_v7, %v3778_v7 }
 0x184   :  { %v344_v12 = vpop.xlane.xlu0 %343 }
 0x185   :  { %3288 = vrsqrt.f32 %v450_v9  ;;  %v387_v16 = vmul.f32 0.015625, %v344_v12  ;;  %v404_v28 = vmul.f32 %v3780_v11, %v3780_v11 }
 0x186   :  { %v3283_v20 = vpop.eup %3282  ;;  %v346_v25 = vpop.xlane.xlu1 %345 }
 0x187   :  { %v419_v30 = vsub.f32 %v387_v16, %v403_v15  ;;  %v388_v33 = vmul.f32 0.015625, %v346_v25  ;;  %v479_v37 = vmul.f32 %v3283_v20, %v431_v22 }
 0x188   :  { %v300_v36 = vpop.xlane.xlu0 %299 }
 0x189   :  { %v451_v43 = vadd.f32 1e-05, %v419_v30  ;;  %v420_v44 = vsub.f32 %v388_v33, %v404_v28  ;;  %v3795_v45 = vmul.f32 0.015625, %v300_v36  ;;  %v499_v53 = vmul.f32 %v3792_v38, %v479_v37 }
 0x18a   :  { %v3285_v21 = vpop.eup %3284  ;;  %v302_v47 = vpop.xlane.xlu1 %301 }
 0x18b   :  { %3290 = vrsqrt.f32 %v451_v43  ;;  %v452_v48 = vadd.f32 1e-05, %v420_v44  ;;  %v3798_v49 = vmul.f32 0.015625, %v302_v47  ;;  %v480_v52 = vmul.f32 %v3285_v21, %v432_v40 }
 0x18c   :  { %v348_v51 = vpop.xlane.xlu0 %347  ;;  %v405_v57 = vmul.f32 %v3795_v45, %v3795_v45  ;;  %v519_v19 = vadd.f32 %v3804_v56, %v499_v53  ;;  %v435_v44 = vsub.f32 %v3632_v39, %v3778_v7  ;;  %v436_v7 = vsub.f32 %v3641_v42, %v3780_v11 }
 0x18d   :  { %3292 = vrsqrt.f32 %v452_v48  ;;  %v389_v59 = vmul.f32 0.015625, %v348_v51  ;;  %v500_v60 = vmul.f32 %v3792_v38, %v480_v52  ;;  %v406_v63 = vmul.f32 %v3798_v49, %v3798_v49 }
 0x18e   :  { %v350_v46 = vpop.xlane.xlu1 %349 }
 0x18f   :  { %v421_v0 = vsub.f32 %v389_v59, %v405_v57  ;;  %v390_v2 = vmul.f32 0.015625, %v350_v46  ;;  %v520_v5 = vadd.f32 %v3804_v56, %v500_v60 }
 0x190   :  { %v3287_v3 = vpop.eup %3286  ;;  %v304_v4 = vpop.xlane.xlu0 %303 }
 0x191   :  { %v453_v6 = vadd.f32 1e-05, %v421_v0  ;;  %v422_v8 = vsub.f32 %v390_v2, %v406_v63  ;;  %v3815_v9 = vmul.f32 0.015625, %v304_v4  ;;  %v481_v12 = vmul.f32 %v3287_v3, %v433_v61 }
 0x192   :  { %v3289_v15 = vpop.eup %3288  ;;  %v306_v16 = vpop.xlane.xlu1 %305  ;;  %v535_v20 = vpack.c.bf16 %v520_v5, %v519_v19 }
 0x193   :  { %3294 = vrsqrt.f32 %v453_v6  ;;  %v454_v22 = vadd.f32 1e-05, %v422_v8  ;;  %v3819_v25 = vmul.f32 0.015625, %v306_v16  ;;  %v482_v30 = vmul.f32 %v3289_v15, %v434_v55 }
 0x194   :  { %752 = vmatmul.mubr.bf16.vlgmr.msra.gmra.mxu1 %v535_v20  ;;  %3043 = vmatprep.mubr.bf16.mxu0 %v535_v20  ;;  %v352_v28 = vpop.xlane.xlu0 %351  ;;  %v501_v33 = vmul.f32 %v3792_v38, %v481_v12  ;;  %v407_v36 = vmul.f32 %v3815_v9, %v3815_v9  ;;  %v437_v15 = vsub.f32 %v3659_v50, %v3795_v45 }
 0x195   :  { %3296 = vrsqrt.f32 %v454_v22  ;;  %v391_v37 = vmul.f32 0.015625, %v352_v28  ;;  %761 = vmatprep.mubr.bf16.mxu1 %v4990_v24  ;;  %v502_v43 = vmul.f32 %v3792_v38, %v482_v30  ;;  %v408_v21 = vmul.f32 %v3819_v25, %v3819_v25 }
 0x196   :  { %v354_v58 = vpop.xlane.xlu1 %353  ;;  %v521_v52 = vadd.f32 %v3804_v56, %v501_v33  ;;  %v438_v45 = vsub.f32 %v3671_v54, %v3798_v49 }
 0x197   :  { %v423_v40 = vsub.f32 %v391_v37, %v407_v36  ;;  %v392_v47 = vmul.f32 0.015625, %v354_v58  ;;  %v522_v53 = vadd.f32 %v3804_v56, %v502_v43 }
 0x198   :  { %v3291_v48 = vpop.eup %3290  ;;  %v308_v51 = vpop.xlane.xlu0 %307 }
 0x199   :  { %v455_v57 = vadd.f32 1e-05, %v423_v40  ;;  %v424_v59 = vsub.f32 %v392_v47, %v408_v21  ;;  %v3832_v46 = vmul.f32 0.015625, %v308_v51  ;;  %v483_v60 = vmul.f32 %v3291_v48, %v435_v44 }
 0x19a   :  { %v3293_v61 = vpop.eup %3292  ;;  %v310_v63 = vpop.xlane.xlu1 %309  ;;  %v536_v0 = vpack.c.bf16 %v522_v53, %v521_v52 }
 0x19b   :  { %3298 = vrsqrt.f32 %v455_v57  ;;  %v456_v2 = vadd.f32 1e-05, %v424_v59  ;;  %v3836_v3 = vmul.f32 0.015625, %v310_v63  ;;  %v484_v19 = vmul.f32 %v3293_v61, %v436_v7 }
 0x19c   :  { %762 = vmatmul.mubr.bf16.gmra.mxu1 %v536_v0  ;;  %3044 = vmatmul.mubr.bf16.vlgmr.msra.gmra.mxu0 %v536_v0  ;;  %v356_v4 = vpop.xlane.xlu0 %355  ;;  %v503_v5 = vmul.f32 %v3792_v38, %v483_v60  ;;  %v409_v6 = vmul.f32 %v3832_v46, %v3832_v46  ;;  %v439_v61 = vsub.f32 %v3689_v62, %v3815_v9 }
 0x19d   :  { %3300 = vrsqrt.f32 %v456_v2  ;;  %v393_v8 = vmul.f32 0.015625, %v356_v4  ;;  %771 = vmatprep.mubr.bf16.mxu1 %v4990_v24  ;;  %v504_v12 = vmul.f32 %v3792_v38, %v484_v19  ;;  %v410_v55 = vmul.f32 %v3836_v3, %v3836_v3 }
 0x19e   :  { %v358_v11 = vpop.xlane.xlu1 %357  ;;  %v523_v30 = vadd.f32 %v3804_v56, %v503_v5  ;;  %v440_v9 = vsub.f32 %v3698_v1, %v3819_v25 }
 0x19f   :  { %v425_v16 = vsub.f32 %v393_v8, %v409_v6  ;;  %v394_v20 = vmul.f32 0.015625, %v358_v11  ;;  %v524_v33 = vadd.f32 %v3804_v56, %v504_v12 }
 0x1a0   :  { %v3295_v22 = vpop.eup %3294  ;;  %v312_v28 = vpop.xlane.xlu0 %311 }
 0x1a1   :  { %v457_v36 = vadd.f32 1e-05, %v425_v16  ;;  %v426_v37 = vsub.f32 %v394_v20, %v410_v55  ;;  %v3849_v58 = vmul.f32 0.015625, %v312_v28  ;;  %v485_v43 = vmul.f32 %v3295_v22, %v437_v15 }
 0x1a2   :  { %v3297_v44 = vpop.eup %3296  ;;  %v314_v21 = vpop.xlane.xlu1 %313  ;;  %v537_v40 = vpack.c.bf16 %v524_v33, %v523_v30 }
 0x1a3   :  { %3302 = vrsqrt.f32 %v457_v36  ;;  %v458_v47 = vadd.f32 1e-05, %v426_v37  ;;  %v3853_v48 = vmul.f32 0.015625, %v314_v21  ;;  %v486_v52 = vmul.f32 %v3297_v44, %v438_v45 }
 0x1a4   :  { %772 = vmatmul.mubr.bf16.gmra.mxu1 %v537_v40  ;;  %3047 = vmatprep.mubr.bf16.mxu0 %v537_v40  ;;  %v360_v51 = vpop.xlane.xlu0 %359  ;;  %v505_v53 = vmul.f32 %v3792_v38, %v485_v43  ;;  %v411_v57 = vmul.f32 %v3849_v58, %v3849_v58  ;;  %v441_v44 = vsub.f32 %v3719_v10, %v3832_v46 }
 0x1a5   :  { %3304 = vrsqrt.f32 %v458_v47  ;;  %v395_v59 = vmul.f32 0.015625, %v360_v51  ;;  %781 = vmatprep.mubr.bf16.mxu1 %v4990_v24  ;;  %v506_v60 = vmul.f32 %v3792_v38, %v486_v52  ;;  %v412_v7 = vmul.f32 %v3853_v48, %v3853_v48 }
 0x1a6   :  { %v362_v49 = vpop.xlane.xlu1 %361  ;;  %v525_v19 = vadd.f32 %v3804_v56, %v505_v53  ;;  %v442_v53 = vsub.f32 %v3728_v13, %v3836_v3  ;;  %v443_v3 = vsub.f32 %v3744_v26, %v3849_v58 }
 0x1a7   :  { %v427_v63 = vsub.f32 %v395_v59, %v411_v57  ;;  %v396_v0 = vmul.f32 0.015625, %v362_v49  ;;  %v526_v5 = vadd.f32 %v3804_v56, %v506_v60 }
 0x1a8   :  { %v3299_v2 = vpop.eup %3298  ;;  %v316_v4 = vpop.xlane.xlu0 %315 }
 0x1a9   :  { %v459_v6 = vadd.f32 1e-05, %v427_v63  ;;  %v428_v8 = vsub.f32 %v396_v0, %v412_v7  ;;  %v3866_v11 = vmul.f32 0.015625, %v316_v4  ;;  %v487_v12 = vmul.f32 %v3299_v2, %v439_v61 }
 0x1aa   :  { %v3301_v15 = vpop.eup %3300  ;;  %v318_v55 = vpop.xlane.xlu1 %317  ;;  %v538_v16 = vpack.c.bf16 %v526_v5, %v525_v19  ;;  %v444_v5 = vsub.f32 %v3750_v29, %v3853_v48 }
 0x1ab   :  { %3306 = vrsqrt.f32 %v459_v6  ;;  %v460_v20 = vadd.f32 1e-05, %v428_v8  ;;  %v382_v22 = vmul.f32 0.015625, %v318_v55  ;;  %v488_v30 = vmul.f32 %v3301_v15, %v440_v9 }
 0x1ac   :  { %782 = vmatmul.mubr.bf16.gmra.mxu1 %v538_v16  ;;  %3048 = vmatmul.mubr.bf16.gmra.mxu0 %v538_v16  ;;  %v364_v28 = vpop.xlane.xlu0 %363  ;;  %v507_v33 = vmul.f32 %v3792_v38, %v487_v12  ;;  %v413_v36 = vmul.f32 %v3866_v11, %v3866_v11  ;;  %v445_v55 = vsub.f32 %v3759_v34, %v3866_v11 }
 0x1ad   :  { %3308 = vrsqrt.f32 %v460_v20  ;;  %v397_v37 = vmul.f32 0.015625, %v364_v28  ;;  %791 = vmatprep.mubr.bf16.mxu1 %v4990_v24  ;;  %v508_v25 = vmul.f32 %v3792_v38, %v488_v30  ;;  %v414_v45 = vmul.f32 %v382_v22, %v382_v22 }
 0x1ae   :  { %v366_v43 = vpop.xlane.xlu1 %365  ;;  %v527_v51 = vadd.f32 %v3804_v56, %v507_v33  ;;  %v446_v28 = vsub.f32 %v3762_v35, %v382_v22  ;;  %v3906_v22 = vld [vmem:[%s4982_s3] sm:$0x7] }
 0x1af   :  { %v429_v21 = vsub.f32 %v397_v37, %v413_v36  ;;  %v398_v40 = vmul.f32 0.015625, %v366_v43  ;;  %v528_v52 = vadd.f32 %v3804_v56, %v508_v25 }
 0x1b0   :  { %v3303_v47 = vpop.eup %3302 }
 0x1b1   :  { %v461_v57 = vadd.f32 1e-05, %v429_v21  ;;  %v430_v59 = vsub.f32 %v398_v40, %v414_v45  ;;  %v489_v49 = vmul.f32 %v3303_v47, %v441_v44  ;;  %v539_v61 = vpack.c.bf16 %v528_v52, %v527_v51 }
 0x1b2   :  { %v3305_v60 = vpop.eup %3304  ;;  %v3910_v40 = vrot.slane %v3906_v22, %v3590_v18 }
 0x1b3   :  { %3310 = vrsqrt.f32 %v461_v57  ;;  %v462_v7 = vadd.f32 1e-05, %v430_v59  ;;  %v490_v63 = vmul.f32 %v3305_v60, %v442_v53  ;;  %v509_v46 = vmul.f32 %v3792_v38, %v489_v49  ;;  %3051 = vmatprep.mubr.bf16.mxu0 %v539_v61 }
 0x1b4   :  { %792 = vmatmul.mubr.bf16.gmra.mxu1 %v539_v61 }
 0x1b5   :  { %3312 = vrsqrt.f32 %v462_v7  ;;  %801 = vmatprep.mubr.bf16.mxu1 %v4990_v24  ;;  %v510_v0 = vmul.f32 %v3792_v38, %v490_v63  ;;  %v529_v2 = vadd.f32 %v3804_v56, %v509_v46 }
 0x1b7   :  { %v530_v4 = vadd.f32 %v3804_v56, %v510_v0 }
 0x1b8   :  { %v3307_v19 = vpop.eup %3306 }
 0x1b9   :  { %v540_v6 = vpack.c.bf16 %v530_v4, %v529_v2  ;;  %v491_v8 = vmul.f32 %v3307_v19, %v443_v3 }
 0x1ba   :  { %v3309_v12 = vpop.eup %3308 }
 0x1bb   :  { %3052 = vmatmul.mubr.bf16.gmra.mxu0 %v540_v6  ;;  %v492_v15 = vmul.f32 %v3309_v12, %v444_v5  ;;  %v511_v9 = vmul.f32 %v3792_v38, %v491_v8 }
 0x1bc   :  { %802 = vmatmul.mubr.bf16.gmra.mxu1 %v540_v6 }
 0x1bd   :  { %811 = vmatprep.mubr.bf16.mxu1 %v4990_v24  ;;  %v512_v58 = vmul.f32 %v3792_v38, %v492_v15  ;;  %v531_v16 = vadd.f32 %v3804_v56, %v511_v9 }
 0x1bf   :  { %v532_v20 = vadd.f32 %v3804_v56, %v512_v58 }
 0x1c0   :  { %v3311_v48 = vpop.eup %3310 }
 0x1c1   :  { %v541_v30 = vpack.c.bf16 %v532_v20, %v531_v16  ;;  %v493_v33 = vmul.f32 %v3311_v48, %v445_v55 }
 0x1c2   :  { %v3313_v36 = vpop.eup %3312 }
 0x1c3   :  { %3055 = vmatprep.mubr.bf16.mxu0 %v541_v30  ;;  %v494_v37 = vmul.f32 %v3313_v36, %v446_v28  ;;  %v513_v43 = vmul.f32 %v3792_v38, %v493_v33 }
 0x1c4   :  { %812 = vmatmul.mubr.bf16.gmra.mxu1 %v541_v30 }
 0x1c5   :  { %821 = vmatprep.mubr.bf16.mxu1 %v4990_v24  ;;  %v514_v25 = vmul.f32 %v3792_v38, %v494_v37  ;;  %v533_v11 = vadd.f32 %v3804_v56, %v513_v43  ;;  %v3914_v38 = vrot.slane %v3906_v22, %v3783_v14  ;;  %v5025_v14 = vsub.s32 2, %v3587_v17 }
 0x1c7   :  { %v534_v44 = vadd.f32 %v3804_v56, %v514_v25 }
 0x1c9   :  { %v542_v45 = vpack.c.bf16 %v534_v44, %v533_v11 }
 0x1cb   :  { %3056 = vmatmul.mubr.bf16.gmra.mxu0 %v542_v45 }
 0x1cc   :  { %822 = vmatmul.mubr.bf16.gmra.mxu1 %v542_v45 }
 0x254   :  { %v753_v21 = vpop.f32.mrf.mxu1 }
 0x255   :  { %v754_v56 = vadd.f32 %v753_v21, %v3910_v40 }
 0x256   :  { %v755_v47 = vpop.f32.mrf.mxu1 }
 0x257   :  { %v756_v57 = vadd.f32 %v755_v47, %v3914_v38 }
 0x258   :  { %v757_v51 = vpop.f32.mrf.mxu1 }
 0x259   :  { %v758_v52 = vadd.f32 %v757_v51, %v3910_v40 }
 0x25a   :  { %v759_v53 = vpop.f32.mrf.mxu1 }
 0x25b   :  { %v929_v59 = vpack.c.bf16 %v758_v52, %v754_v56  ;;  %v760_v49 = vadd.f32 %v759_v53, %v3914_v38 }
 0x25c   :  { %v763_v60 = vpop.f32.mrf.mxu1  ;;  %v3925_v0 = vpop.f32.mrf.mxu0 }
 0x25d   :  { %v3920_v61 = vpack.c.bf16 %v760_v49, %v756_v57  ;;  %v3923_v7 = vadd.f32 %v763_v60, %v3910_v40  ;;  %3075 = vmatprep.mubr.bf16.mxu1 %v929_v59 }
 0x25e   :  { %v765_v63 = vpop.f32.mrf.mxu1  ;;  %v3934_v8 = vpop.f32.mrf.mxu0 }
 0x25f   :  { %v766_v4 = vadd.f32 %v765_v63, %v3914_v38 }
 0x260   :  { %v767_v46 = vpop.f32.mrf.mxu1  ;;  %v3941_v55 = vpop.f32.mrf.mxu0 }
 0x261   :  { %v3928_v3 = vadd.f32 %v767_v46, %v3910_v40 }
 0x262   :  { %v769_v2 = vpop.f32.mrf.mxu1  ;;  %v3950_v36 = vpop.f32.mrf.mxu0 }
 0x263   :  { %v770_v5 = vadd.f32 %v769_v2, %v3914_v38 }
 0x264   :  { %v773_v6 = vpop.f32.mrf.mxu1 }
 0x265   :  { %v3936_v12 = vpack.c.bf16 %v770_v5, %v766_v4  ;;  %v3939_v15 = vadd.f32 %v773_v6, %v3910_v40 }
 0x266   :  { %v775_v9 = vpop.f32.mrf.mxu1 }
 0x267   :  { %v776_v48 = vadd.f32 %v775_v9, %v3914_v38 }
 0x268   :  { %v777_v58 = vpop.f32.mrf.mxu1 }
 0x269   :  { %v3944_v16 = vadd.f32 %v777_v58, %v3910_v40 }
 0x26a   :  { %v779_v20 = vpop.f32.mrf.mxu1 }
 0x26b   :  { %v780_v30 = vadd.f32 %v779_v20, %v3914_v38 }
 0x26c   :  { %v783_v33 = vpop.f32.mrf.mxu1  ;;  %v3959_v11 = vpop.f32.mrf.mxu0 }
 0x26d   :  { %v3952_v37 = vpack.c.bf16 %v780_v30, %v776_v48  ;;  %v3955_v43 = vadd.f32 %v783_v33, %v3910_v40 }
 0x26e   :  { %v3957_v25 = vpop.f32.mrf.mxu1  ;;  %v3966_v47 = vpop.f32.mrf.mxu0 }
 0x270   :  { %v787_v44 = vpop.f32.mrf.mxu1  ;;  %v3050_v57 = vpop.f32.mrf.mxu0 }
 0x271   :  { %v3962_v45 = vadd.f32 %v787_v44, %v3910_v40 }
 0x272   :  { %v3964_v21 = vpop.f32.mrf.mxu1  ;;  %v3980_v63 = vpop.f32.mrf.mxu0 }
 0x274   :  { %v793_v56 = vpop.f32.mrf.mxu1 }
 0x275   :  { %v3971_v52 = vadd.f32 %v793_v56, %v3910_v40 }
 0x276   :  { %v3973_v53 = vpop.f32.mrf.mxu1 }
 0x278   :  { %v797_v59 = vpop.f32.mrf.mxu1 }
 0x279   :  { %v3976_v49 = vadd.f32 %v797_v59, %v3910_v40 }
 0x27a   :  { %v3978_v60 = vpop.f32.mrf.mxu1 }
 0x27b   :  { %v3053_v5 = vpop.f32.mrf.mxu0 }
 0x27c   :  { %v803_v2 = vpop.f32.mrf.mxu1 }
 0x27d   :  { %v3985_v4 = vadd.f32 %v803_v2, %v3910_v40  ;;  %v898_v58 = vpop.f32.mrf.mxu0 }
 0x27e   :  { %v805_v6 = vpop.f32.mrf.mxu1 }
 0x27f   :  { %v3054_v44 = vpop.f32.mrf.mxu0 }
 0x280   :  { %v807_v9 = vpop.f32.mrf.mxu1 }
 0x281   :  { %v3988_v20 = vadd.f32 %v807_v9, %v3910_v40  ;;  %v901_v2 = vpop.f32.mrf.mxu0 }
 0x282   :  { %v809_v48 = vpop.f32.mrf.mxu1 }
 0x284   :  { %v813_v33 = vpop.f32.mrf.mxu1 }
 0x285   :  { %v3993_v56 = vadd.f32 %v813_v33, %v3910_v40  ;;  %v587_v33 = vrot.slane %v3906_v22, %v5025_v14 }
 0x286   :  { %v815_v59 = vpop.f32.mrf.mxu1 }
 0x288   :  { %v817_v24 = vpop.f32.mrf.mxu1 }
 0x289   :  { %v3996_v46 = vadd.f32 %v817_v24, %v3910_v40 }
 0x28a   :  { %v819_v51 = vpop.f32.mrf.mxu1 }
 0x28b   :  { %v3057_v28 = vpop.f32.mrf.mxu0 }
 0x28c   :  { %v823_v19 = vpop.f32.mrf.mxu1  ;;  %v923_v34 = vadd.f32 %v3057_v28, %v587_v33  ;;  %v910_v28 = vadd.f32 %v3054_v44, %v587_v33  ;;  %v806_v44 = vadd.f32 %v805_v6, %v3914_v38 }
 0x28d   :  { %v4001_v41 = vadd.f32 %v823_v19, %v3910_v40  ;;  %v914_v30 = vpop.f32.mrf.mxu0  ;;  %v820_v19 = vadd.f32 %v819_v51, %v3914_v38  ;;  %v902_v51 = vadd.f32 %v901_v2, %v587_v33 }
 0x28e   :  { %v825_v18 = vpop.f32.mrf.mxu1  ;;  %v915_v9 = vadd.f32 %v914_v30, %v587_v33  ;;  %v894_v30 = vadd.f32 %v3050_v57, %v587_v33  ;;  %v800_v57 = vadd.f32 %v3978_v60, %v3914_v38 }
 0x28f   :  { %v3058_v35 = vpop.f32.mrf.mxu0  ;;  %v826_v54 = vadd.f32 %v825_v18, %v3914_v38  ;;  %v899_v18 = vadd.f32 %v898_v58, %v587_v33  ;;  %v878_v58 = vadd.f32 %v3941_v55, %v587_v33  ;;  %v790_v55 = vadd.f32 %v3964_v21, %v3914_v38 }
 0x290   :  { %v827_v29 = vpop.f32.mrf.mxu1  ;;  %v926_v24 = vadd.f32 %v3058_v35, %v587_v33 }
 0x291   :  { %v4007_v26 = vadd.f32 %v827_v29, %v3910_v40  ;;  %v917_v13 = vpop.f32.mrf.mxu0  ;;  %v816_v29 = vadd.f32 %v815_v59, %v3914_v38  ;;  %v907_v40 = vadd.f32 %v3053_v5, %v587_v33  ;;  %v886_v59 = vadd.f32 %v3980_v63, %v587_v33 }
 0x292   :  { %v952_v10 = vpack.c.bf16 %v926_v24, %v923_v34  ;;  %v829_v1 = vpop.f32.mrf.mxu1  ;;  %v918_v62 = vadd.f32 %v917_v13, %v587_v33  ;;  %v48_v24 = vld [vmem:[%s4983_s10 + $0x30] sm:$0xff] }
 0x293   :  { %v936_v14 = vpack.c.bf16 %v4007_v26, %v4001_v41  ;;  %v830_v22 = vadd.f32 %v829_v1, %v3914_v38  ;;  %v943_v34 = vpack.c.bf16 %v820_v19, %v816_v29  ;;  %v950_v13 = vpack.c.bf16 %v910_v28, %v907_v40  ;;  %v43_v26 = vld [vmem:[%s4983_s10 + $0x8] sm:$0xff] }
 0x294   :  { %v951_v50 = vpack.c.bf16 %v918_v62, %v915_v9  ;;  %3091 = vmatprep.subr.bf16.mxu0 %v952_v10  ;;  %v810_v1 = vadd.f32 %v809_v48, %v3914_v38  ;;  %v949_v62 = vpack.c.bf16 %v902_v51, %v899_v18  ;;  %v875_v48 = vadd.f32 %v3925_v0, %v587_v33 }
 0x295   :  { %v944_v35 = vpack.c.bf16 %v830_v22, %v826_v54  ;;  %3092 = vmatpush3.bf16.msra.mxu0 %v952_v10  ;;  %v891_v54 = vadd.f32 %v3959_v11, %v587_v33  ;;  %v796_v11 = vadd.f32 %v3973_v53, %v3914_v38  ;;  %v870_v9 = vadd.f32 %v3950_v36, %v587_v33 }
 0x296   :  { %3093 = vmatprep.subr.bf16.mxu0 %v951_v50  ;;  %v942_v10 = vpack.c.bf16 %v810_v1, %v806_v44  ;;  %v946_v2 = vpack.c.bf16 %v878_v58, %v875_v48  ;;  %v786_v53 = vadd.f32 %v3957_v25, %v3914_v38  ;;  %v5026_v38 = vpack.c.bf16 %v3928_v3, %v3923_v7  ;;  %v44_v25 = vld [vmem:[%s4983_s10 + $0x10] sm:$0xff] }
 0x297   :  { %3059 = vmatprep.subr.bf16.mxu1 %v944_v35  ;;  %v948_v5 = vpack.c.bf16 %v894_v30, %v891_v54  ;;  %v941_v63 = vpack.c.bf16 %v800_v57, %v796_v11  ;;  %v5028_v36 = vpack.c.bf16 %v3962_v45, %v3955_v43  ;;  %v5032_v7 = vmov 0   ;;  %v52_v1 = vld [vmem:[%s4983_s10 + $0x50] sm:$0xff] }
 0x298   :  { %3060 = vmatpush3.bf16.xpose.msra.mxu1 %v944_v35  ;;  %v940_v0 = vpack.c.bf16 %v790_v55, %v786_v53  ;;  %v49_v35 = vld [vmem:[%s4983_s10 + $0x38] sm:$0xff]  ;;  %v56_v11 = vld [vmem:[%s4983_s10 + $0x70] sm:$0xff] }
 0x299   :  { %3061 = vmatprep.subr.bf16.mxu1 %v943_v34  ;;  %3094 = vmatpush3.bf16.msra.mxu0 %v951_v50  ;;  %v883_v50 = vadd.f32 %v3966_v47, %v587_v33  ;;  %v867_v47 = vadd.f32 %v3934_v8, %v587_v33  ;;  %v5027_v8 = vpack.c.bf16 %v3944_v16, %v3939_v15  ;;  %v42_v15 = vld [vmem:[%s4983_s10] sm:$0xff]  ;;  %v57_v55 = vld [vmem:[%s4983_s10 + $0x78] sm:$0xff] }
 0x29a   :  { %3095 = vmatprep.subr.bf16.mxu0 %v950_v13 }
 0x29b   :  { %v947_v6 = vpack.c.bf16 %v886_v59, %v883_v50  ;;  %v945_v60 = vpack.c.bf16 %v870_v9, %v867_v47  ;;  %v54_v50 = vld [vmem:[%s4983_s10 + $0x60] sm:$0xff] }
 0x29d   :  { %3096 = vmatpush3.bf16.msra.mxu0 %v950_v13 }
 0x29e   :  { %3097 = vmatprep.subr.bf16.mxu0 %v949_v62 }
 0x2a0   :  { %3062 = vmatpush3.bf16.xpose.msra.mxu1 %v943_v34  ;;  %v50_v34 = vld [vmem:[%s4983_s10 + $0x40] sm:$0xff] }
 0x2a1   :  { %3063 = vmatprep.subr.bf16.mxu1 %v942_v10  ;;  %3098 = vmatpush3.bf16.msra.mxu0 %v949_v62  ;;  %v51_v62 = vld [vmem:[%s4983_s10 + $0x48] sm:$0xff] }
 0x2a2   :  { %3099 = vmatprep.subr.bf16.mxu0 %v948_v5 }
 0x2a5   :  { %3100 = vmatpush3.bf16.msra.mxu0 %v948_v5  ;;  %v53_v5 = vld [vmem:[%s4983_s10 + $0x58] sm:$0xff] }
 0x2a6   :  { %3101 = vmatprep.subr.bf16.mxu0 %v947_v6 }
 0x2a8   :  { %3064 = vmatpush3.bf16.xpose.msra.mxu1 %v942_v10 }
 0x2a9   :  { %3065 = vmatprep.subr.bf16.mxu1 %v941_v63  ;;  %3102 = vmatpush3.bf16.msra.mxu0 %v947_v6 }
 0x2aa   :  { %3103 = vmatprep.subr.bf16.mxu0 %v946_v2 }
 0x2ad   :  { %3104 = vmatpush3.bf16.msra.mxu0 %v946_v2 }
 0x2ae   :  { %3105 = vmatprep.subr.bf16.mxu0 %v945_v60 }
 0x2b0   :  { %3066 = vmatpush3.bf16.xpose.msra.mxu1 %v941_v63  ;;  %v55_v63 = vld [vmem:[%s4983_s10 + $0x68] sm:$0xff] }
 0x2b1   :  { %3067 = vmatprep.subr.bf16.mxu1 %v940_v0  ;;  %3106 = vmatpush3.bf16.msra.mxu0 %v945_v60 }
 0x2b8   :  { %3068 = vmatpush3.bf16.xpose.msra.mxu1 %v940_v0 }
 0x2b9   :  { %3069 = vmatprep.subr.bf16.mxu1 %v3952_v37 }
 0x2c0   :  { %3070 = vmatpush3.bf16.xpose.msra.mxu1 %v3952_v37  ;;  %v5029_v37 = vpack.c.bf16 %v3976_v49, %v3971_v52  ;;  %v45_v49 = vld [vmem:[%s4983_s10 + $0x18] sm:$0xff] }
 0x2c1   :  { %3071 = vmatprep.subr.bf16.mxu1 %v3936_v12 }
 0x2c8   :  { %3072 = vmatpush3.bf16.xpose.msra.mxu1 %v3936_v12  ;;  %v5030_v12 = vpack.c.bf16 %v3988_v20, %v3985_v4  ;;  %v46_v4 = vld [vmem:[%s4983_s10 + $0x20] sm:$0xff] }
 0x2c9   :  { %3073 = vmatprep.subr.bf16.mxu1 %v3920_v61 }
 0x2d0   :  { %3074 = vmatpush3.bf16.xpose.msra.mxu1 %v3920_v61  ;;  %v5031_v61 = vpack.c.bf16 %v3996_v46, %v3993_v56 }
 0x2d7   :  { %3076 = vmatmul.mubr.bf16.vlgmr.msra.gmra.mxu1 %v5026_v38 }
 0x2d8   :  { %3079 = vmatprep.mubr.bf16.mxu1 %v5027_v8 }
 0x2df   :  { %3080 = vmatmul.mubr.bf16.gmra.mxu1 %v5028_v36 }
 0x2e0   :  { %3083 = vmatprep.mubr.bf16.mxu1 %v5029_v37 }
 0x2e7   :  { %3084 = vmatmul.mubr.bf16.gmra.mxu1 %v5030_v12 }
 0x2e8   :  { %3087 = vmatprep.mubr.bf16.mxu1 %v5031_v61 }
 0x2ef   :  { %3088 = vmatmul.mubr.bf16.gmra.mxu1 %v936_v14  ;;  %v47_v14 = vld [vmem:[%s4983_s10 + $0x28] sm:$0xff] }
 0x2f0   :  { %1899 = vmatprep.mubr.bf16.mxu1 %v5032_v7 }
 0x397   :  { %v3077_v3 = vpop.f32.mrf.mxu1 }
 0x398   :  { %v4072_v21 = vadd.f32 %v3077_v3, %v44_v25 }
 0x399   :  { %v987_v16 = vpop.f32.mrf.mxu1 }
 0x39a   :  { %v4063_v43 = vadd.f32 %v987_v16, %v42_v15 }
 0x39b   :  { %v3078_v45 = vpop.f32.mrf.mxu1 }
 0x39c   :  { %1050 = vmax.xlane.f32.xlu0 %v4063_v43  ;;  %v4081_v56 = vadd.f32 %v3078_v45, %v45_v49 }
 0x39d   :  { %v990_v41 = vpop.f32.mrf.mxu1 }
 0x39e   :  { %v991_v52 = vadd.f32 %v990_v41, %v43_v26 }
 0x39f   :  { %v3081_v46 = vpop.f32.mrf.mxu1 }
 0x3a0   :  { %1052 = vmax.xlane.f32.xlu1 %v991_v52  ;;  %1054 = vmax.xlane.f32.xlu0 %v4072_v21  ;;  %v4093_v28 = vadd.f32 %v3081_v46, %v48_v24 }
 0x3a1   :  { %v1003_v20 = vpop.f32.mrf.mxu1 }
 0x3a2   :  { %v4083_v33 = vadd.f32 %v1003_v20, %v46_v4 }
 0x3a3   :  { %v3082_v19 = vpop.f32.mrf.mxu1 }
 0x3a4   :  { %1056 = vmax.xlane.f32.xlu1 %v4081_v56  ;;  %1058 = vmax.xlane.f32.xlu0 %v4083_v33  ;;  %v4102_v51 = vadd.f32 %v3082_v19, %v49_v35 }
 0x3a5   :  { %v1006_v22 = vpop.f32.mrf.mxu1 }
 0x3a6   :  { %v1007_v29 = vadd.f32 %v1006_v22, %v47_v14 }
 0x3a7   :  { %v3085_v40 = vpop.f32.mrf.mxu1 }
 0x3a8   :  { %1060 = vmax.xlane.f32.xlu1 %v1007_v29  ;;  %1062 = vmax.xlane.f32.xlu0 %v4093_v28  ;;  %v4114_v54 = vadd.f32 %v3085_v40, %v52_v1 }
 0x3a9   :  { %v1019_v13 = vpop.f32.mrf.mxu1 }
 0x3aa   :  { %v4104_v18 = vadd.f32 %v1019_v13, %v50_v34 }
 0x3ab   :  { %v3086_v30 = vpop.f32.mrf.mxu1 }
 0x3ac   :  { %1064 = vmax.xlane.f32.xlu1 %v4102_v51  ;;  %1066 = vmax.xlane.f32.xlu0 %v4104_v18  ;;  %v4126_v58 = vadd.f32 %v3086_v30, %v53_v5 }
 0x3ad   :  { %v1022_v44 = vpop.f32.mrf.mxu1 }
 0x3ae   :  { %v4116_v10 = vadd.f32 %v1022_v44, %v51_v62 }
 0x3af   :  { %v3089_v59 = vpop.f32.mrf.mxu1 }
 0x3b0   :  { %1068 = vmax.xlane.f32.xlu1 %v4116_v10  ;;  %1070 = vmax.xlane.f32.xlu0 %v4114_v54  ;;  %v4138_v9 = vadd.f32 %v3089_v59, %v56_v11 }
 0x3b1   :  { %v1035_v57 = vpop.f32.mrf.mxu1 }
 0x3b2   :  { %v4128_v6 = vadd.f32 %v1035_v57, %v54_v50 }
 0x3b3   :  { %v3090_v48 = vpop.f32.mrf.mxu1 }
 0x3b4   :  { %1072 = vmax.xlane.f32.xlu1 %v4126_v58  ;;  %1074 = vmax.xlane.f32.xlu0 %v4128_v6  ;;  %v4147_v60 = vadd.f32 %v3090_v48, %v57_v55 }
 0x3b5   :  { %v1038_v2 = vpop.f32.mrf.mxu1 }
 0x3b6   :  { %v4140_v47 = vadd.f32 %v1038_v2, %v55_v63 }
 0x3b8   :  { %1076 = vmax.xlane.f32.xlu1 %v4140_v47  ;;  %1078 = vmax.xlane.f32.xlu0 %v4138_v9 }
 0x3bc   :  { %1080 = vmax.xlane.f32.xlu1 %v4147_v60 }
 0x425   :  { %v1051_v53 = vpop.xlane.xlu0 %1050 }
 0x426   :  { %v1082_v0 = vsub.f32 %v4063_v43, %v1051_v53 }
 0x428   :  { %v1098_v38 = vmul.f32 1.442695, %v1082_v0 }
 0x429   :  { %v1053_v8 = vpop.xlane.xlu1 %1052  ;;  %v1055_v36 = vpop.xlane.xlu0 %1054 }
 0x42a   :  { %3314 = vpow2.f32 %v1098_v38  ;;  %v1083_v37 = vsub.f32 %v991_v52, %v1053_v8  ;;  %v1084_v12 = vsub.f32 %v4072_v21, %v1055_v36 }
 0x42c   :  { %v1100_v61 = vmul.f32 1.442695, %v1083_v37  ;;  %v1102_v3 = vmul.f32 1.442695, %v1084_v12 }
 0x42d   :  { %v1057_v15 = vpop.xlane.xlu1 %1056  ;;  %v1059_v16 = vpop.xlane.xlu0 %1058 }
 0x42e   :  { %3316 = vpow2.f32 %v1100_v61  ;;  %v1085_v25 = vsub.f32 %v4081_v56, %v1057_v15  ;;  %v1086_v45 = vsub.f32 %v4083_v33, %v1059_v16 }
 0x42f   :  { %3318 = vpow2.f32 %v1102_v3  ;;  %v3226_v3 = vld [vmem:[%s4984_s4 + $0x38] sm:$0xff]  }
 0x430   :  { %v1104_v26 = vmul.f32 1.442695, %v1085_v25  ;;  %v1106_v41 = vmul.f32 1.442695, %v1086_v45  ;;  %3123 = vmatprep.subr.bf16.mxu0 %v3226_v3 }
 0x431   :  { %v1061_v43 = vpop.xlane.xlu1 %1060  ;;  %v1063_v49 = vpop.xlane.xlu0 %1062 }
 0x432   :  { %3320 = vpow2.f32 %v1104_v26  ;;  %v1087_v46 = vsub.f32 %v1007_v29, %v1061_v43  ;;  %v1088_v52 = vsub.f32 %v4093_v28, %v1063_v49 }
 0x433   :  { %3322 = vpow2.f32 %v1106_v41 }
 0x434   :  { %v1108_v21 = vmul.f32 1.442695, %v1087_v46  ;;  %v1110_v4 = vmul.f32 1.442695, %v1088_v52 }
 0x435   :  { %v1065_v20 = vpop.xlane.xlu1 %1064  ;;  %v1067_v24 = vpop.xlane.xlu0 %1066 }
 0x436   :  { %3324 = vpow2.f32 %v1108_v21  ;;  %v1089_v19 = vsub.f32 %v4102_v51, %v1065_v20  ;;  %v1090_v56 = vsub.f32 %v4104_v18, %v1067_v24 }
 0x437   :  { %v4157_v33 = vpop.eup %3314  ;;  %3326 = vpow2.f32 %v1110_v4 }
 0x438   :  { %v1112_v14 = vmul.f32 1.442695, %v1089_v19  ;;  %v1114_v22 = vmul.f32 1.442695, %v1090_v56  ;;  %1130 = vadd.xlane.f32.xlu0 %v4157_v33 }
 0x439   :  { %v1069_v29 = vpop.xlane.xlu1 %1068  ;;  %v1071_v35 = vpop.xlane.xlu0 %1070 }
 0x43a   :  { %3328 = vpow2.f32 %v1112_v14  ;;  %v1091_v28 = vsub.f32 %v4116_v10, %v1069_v29  ;;  %v1092_v40 = vsub.f32 %v4114_v54, %v1071_v35 }
 0x43b   :  { %v4162_v34 = vpop.eup %3316  ;;  %3330 = vpow2.f32 %v1114_v22 }
 0x43c   :  { %v4164_v13 = vpop.eup %3318  ;;  %v1116_v51 = vmul.f32 1.442695, %v1091_v28  ;;  %v1118_v18 = vmul.f32 1.442695, %v1092_v40  ;;  %1132 = vadd.xlane.f32.xlu1 %v4162_v34 }
 0x43d   :  { %1134 = vadd.xlane.f32.xlu0 %v4164_v13  ;;  %v1073_v1 = vpop.xlane.xlu1 %1072  ;;  %v1075_v30 = vpop.xlane.xlu0 %1074 }
 0x43e   :  { %3332 = vpow2.f32 %v1116_v51  ;;  %v1093_v62 = vsub.f32 %v4126_v58, %v1073_v1  ;;  %v1094_v44 = vsub.f32 %v4128_v6, %v1075_v30 }
 0x43f   :  { %v4170_v10 = vpop.eup %3320  ;;  %3334 = vpow2.f32 %v1118_v18 }
 0x440   :  { %v4172_v54 = vpop.eup %3322  ;;  %v1120_v5 = vmul.f32 1.442695, %v1093_v62  ;;  %v1122_v59 = vmul.f32 1.442695, %v1094_v44  ;;  %1136 = vadd.xlane.f32.xlu1 %v4170_v10 }
 0x441   :  { %1138 = vadd.xlane.f32.xlu0 %v4172_v54  ;;  %v1077_v50 = vpop.xlane.xlu1 %1076  ;;  %v1079_v57 = vpop.xlane.xlu0 %1078 }
 0x442   :  { %3336 = vpow2.f32 %v1120_v5  ;;  %v1095_v11 = vsub.f32 %v4140_v47, %v1077_v50  ;;  %v1096_v58 = vsub.f32 %v4138_v9, %v1079_v57  ;;  %v3228_v5 = vld [vmem:[%s4984_s4 + $0x28] sm:$0xff]  }
 0x443   :  { %v4178_v48 = vpop.eup %3324  ;;  %3338 = vpow2.f32 %v1122_v59 }
 0x444   :  { %v4180_v6 = vpop.eup %3326  ;;  %v1124_v63 = vmul.f32 1.442695, %v1095_v11  ;;  %v1126_v2 = vmul.f32 1.442695, %v1096_v58  ;;  %1140 = vadd.xlane.f32.xlu1 %v4178_v48 }
 0x445   :  { %1142 = vadd.xlane.f32.xlu0 %v4180_v6  ;;  %v1081_v55 = vpop.xlane.xlu1 %1080 }
 0x446   :  { %3340 = vpow2.f32 %v1124_v63  ;;  %v1097_v53 = vsub.f32 %v4147_v60, %v1081_v55 }
 0x447   :  { %v4185_v0 = vpop.eup %3328  ;;  %3342 = vpow2.f32 %v1126_v2 }
 0x448   :  { %v4187_v47 = vpop.eup %3330  ;;  %v1128_v9 = vmul.f32 1.442695, %v1097_v53  ;;  %1144 = vadd.xlane.f32.xlu1 %v4185_v0 }
 0x449   :  { %1146 = vadd.xlane.f32.xlu0 %v4187_v47 }
 0x44a   :  { %3344 = vpow2.f32 %v1128_v9 }
 0x44b   :  { %v4191_v38 = vpop.eup %3332 }
 0x44c   :  { %v4193_v8 = vpop.eup %3334  ;;  %1148 = vadd.xlane.f32.xlu1 %v4191_v38 }
 0x44d   :  { %1150 = vadd.xlane.f32.xlu0 %v4193_v8 }
 0x44f   :  { %v4197_v60 = vpop.eup %3336 }
 0x450   :  { %v4199_v36 = vpop.eup %3338  ;;  %1152 = vadd.xlane.f32.xlu1 %v4197_v60 }
 0x451   :  { %1154 = vadd.xlane.f32.xlu0 %v4199_v36 }
 0x453   :  { %v4203_v37 = vpop.eup %3340 }
 0x454   :  { %v4205_v12 = vpop.eup %3342  ;;  %1156 = vadd.xlane.f32.xlu1 %v4203_v37 }
 0x455   :  { %1158 = vadd.xlane.f32.xlu0 %v4205_v12 }
 0x457   :  { %v4209_v61 = vpop.eup %3344 }
 0x458   :  { %1160 = vadd.xlane.f32.xlu1 %v4209_v61 }
 0x4c1   :  { %v1131_v15 = vpop.xlane.xlu0 %1130 }
 0x4c2   :  { %3346 = vrcp.f32 %v1131_v15 }
 0x4c5   :  { %v1133_v16 = vpop.xlane.xlu1 %1132 }
 0x4c6   :  { %3348 = vrcp.f32 %v1133_v16  ;;  %v1135_v25 = vpop.xlane.xlu0 %1134 }
 0x4c7   :  { %3350 = vrcp.f32 %v1135_v25 }
 0x4c9   :  { %v1137_v45 = vpop.xlane.xlu1 %1136 }
 0x4ca   :  { %3352 = vrcp.f32 %v1137_v45  ;;  %v1139_v26 = vpop.xlane.xlu0 %1138 }
 0x4cb   :  { %3354 = vrcp.f32 %v1139_v26 }
 0x4cd   :  { %v1141_v41 = vpop.xlane.xlu1 %1140 }
 0x4ce   :  { %3356 = vrcp.f32 %v1141_v41  ;;  %v1143_v43 = vpop.xlane.xlu0 %1142 }
 0x4cf   :  { %3358 = vrcp.f32 %v1143_v43  ;;  %v3347_v49 = vpop.eup %3346 }
 0x4d0   :  { %v1178_v4 = vmul.f32 %v3347_v49, %v4157_v33  ;;  %v3227_v33 = vld [vmem:[%s4984_s4 + $0x30] sm:$0xff]  }
 0x4d1   :  { %v1145_v46 = vpop.xlane.xlu1 %1144 }
 0x4d2   :  { %3360 = vrcp.f32 %v1145_v46  ;;  %v1147_v52 = vpop.xlane.xlu0 %1146 }
 0x4d3   :  { %v3349_v21 = vpop.eup %3348  ;;  %3362 = vrcp.f32 %v1147_v52  ;;  %v3232_v52 = vld [vmem:[%s4984_s4 + $0x8] sm:$0xff]  }
 0x4d4   :  { %v1179_v20 = vmul.f32 %v3349_v21, %v4162_v34  ;;  %v3351_v24 = vpop.eup %3350 }
 0x4d5   :  { %v1149_v19 = vpop.xlane.xlu1 %1148  ;;  %v1180_v29 = vmul.f32 %v3351_v24, %v4164_v13 }
 0x4d6   :  { %3364 = vrcp.f32 %v1149_v19  ;;  %v1151_v56 = vpop.xlane.xlu0 %1150  ;;  %v1194_v14 = vpack.c.bf16 %v1179_v20, %v1178_v4 }
 0x4d7   :  { %v3353_v22 = vpop.eup %3352  ;;  %3366 = vrcp.f32 %v1151_v56 }
 0x4d8   :  { %3107 = vmatprep.mubr.bf16.mxu0 %v1194_v14  ;;  %v1181_v35 = vmul.f32 %v3353_v22, %v4170_v10  ;;  %v3355_v28 = vpop.eup %3354 }
 0x4d9   :  { %v1153_v40 = vpop.xlane.xlu1 %1152  ;;  %v1182_v1 = vmul.f32 %v3355_v28, %v4172_v54 }
 0x4da   :  { %3368 = vrcp.f32 %v1153_v40  ;;  %v1155_v51 = vpop.xlane.xlu0 %1154  ;;  %v1195_v18 = vpack.c.bf16 %v1181_v35, %v1180_v29 }
 0x4db   :  { %v3357_v34 = vpop.eup %3356  ;;  %3370 = vrcp.f32 %v1155_v51 }
 0x4dc   :  { %3108 = vmatmul.mubr.bf16.vlgmr.msra.gmra.mxu0 %v1195_v18  ;;  %v1183_v30 = vmul.f32 %v3357_v34, %v4178_v48  ;;  %v3359_v62 = vpop.eup %3358  ;;  %v3229_v48 = vld [vmem:[%s4984_s4 + $0x20] sm:$0xff]  }
 0x4dd   :  { %v1157_v13 = vpop.xlane.xlu1 %1156  ;;  %3124 = vmatpush3.bf16.msra.mxu0 %v3226_v3  ;;  %v1184_v50 = vmul.f32 %v3359_v62, %v4180_v6 }
 0x4de   :  { %3372 = vrcp.f32 %v1157_v13  ;;  %v1159_v44 = vpop.xlane.xlu0 %1158  ;;  %v1196_v10 = vpack.c.bf16 %v1183_v30, %v1182_v1  ;;  %3125 = vmatprep.subr.bf16.mxu0 %v3227_v33 }
 0x4df   :  { %v3361_v59 = vpop.eup %3360  ;;  %3374 = vrcp.f32 %v1159_v44 }
 0x4e0   :  { %3111 = vmatprep.mubr.bf16.mxu0 %v1196_v10  ;;  %v1185_v54 = vmul.f32 %v3361_v59, %v4185_v0  ;;  %v3363_v57 = vpop.eup %3362  ;;  %v3230_v0 = vld [vmem:[%s4984_s4 + $0x18] sm:$0xff]   ;;  %v1486_v10 = vsub.s32 3, %v3587_v17 }
 0x4e1   :  { %v1161_v11 = vpop.xlane.xlu1 %1160  ;;  %3126 = vmatpush3.bf16.msra.mxu0 %v3227_v33  ;;  %v1186_v2 = vmul.f32 %v3363_v57, %v4187_v47  ;;  %v3231_v47 = vld [vmem:[%s4984_s4 + $0x10] sm:$0xff]  }
 0x4e2   :  { %3376 = vrcp.f32 %v1161_v11  ;;  %v1197_v58 = vpack.c.bf16 %v1185_v54, %v1184_v50  ;;  %3127 = vmatprep.subr.bf16.mxu0 %v3228_v5  ;;  %v4256_v50 = vld [vmem:[%s4980_s9] sm:$0xff] }
 0x4e3   :  { %v3365_v63 = vpop.eup %3364  ;;  %v4259_v54 = vrot.slane %v4256_v50, %v1486_v10  ;;  %v3249_v10 = vld [vmem:[%s4985_s5 + $0x20] ss:$8 sps:$4 sm:$0xff]  }
 0x4e4   :  { %3112 = vmatmul.mubr.bf16.gmra.mxu0 %v1197_v58  ;;  %v1187_v55 = vmul.f32 %v3365_v63, %v4191_v38  ;;  %v3367_v53 = vpop.eup %3366 }
 0x4e5   :  { %3128 = vmatpush3.bf16.msra.mxu0 %v3228_v5  ;;  %v1188_v3 = vmul.f32 %v3367_v53, %v4193_v8 }
 0x4e6   :  { %v1198_v6 = vpack.c.bf16 %v1187_v55, %v1186_v2  ;;  %3129 = vmatprep.subr.bf16.mxu0 %v3229_v48 }
 0x4e7   :  { %v3369_v9 = vpop.eup %3368 }
 0x4e8   :  { %3115 = vmatprep.mubr.bf16.mxu0 %v1198_v6  ;;  %v1189_v15 = vmul.f32 %v3369_v9, %v4197_v60  ;;  %v3371_v16 = vpop.eup %3370 }
 0x4e9   :  { %3130 = vmatpush3.bf16.msra.mxu0 %v3229_v48  ;;  %v1190_v45 = vmul.f32 %v3371_v16, %v4199_v36  ;;  %v3233_v36 = vld [vmem:[%s4984_s4] sm:$0xff]  }
 0x4ea   :  { %v1199_v25 = vpack.c.bf16 %v1189_v15, %v1188_v3  ;;  %3131 = vmatprep.subr.bf16.mxu0 %v3230_v0 }
 0x4eb   :  { %v3373_v38 = vpop.eup %3372 }
 0x4ec   :  { %3116 = vmatmul.mubr.bf16.gmra.mxu0 %v1199_v25  ;;  %v1191_v26 = vmul.f32 %v3373_v38, %v4203_v37  ;;  %v3375_v41 = vpop.eup %3374 }
 0x4ed   :  { %3132 = vmatpush3.bf16.msra.mxu0 %v3230_v0  ;;  %v1192_v60 = vmul.f32 %v3375_v41, %v4205_v12  ;;  %v3239_v41 = vld [vmem:[%s4985_s5 + $0x64] ss:$8 sps:$4 sm:$0xff]  }
 0x4ee   :  { %v1200_v43 = vpack.c.bf16 %v1191_v26, %v1190_v45  ;;  %3133 = vmatprep.subr.bf16.mxu0 %v3231_v47 }
 0x4ef   :  { %v3377_v8 = vpop.eup %3376 }
 0x4f0   :  { %3119 = vmatprep.mubr.bf16.mxu0 %v1200_v43  ;;  %v1193_v49 = vmul.f32 %v3377_v8, %v4209_v61  ;;  %v5033_v43 = vld [vmem:[#allocation3_spill] sm:$0xff] }
 0x4f1   :  { %3134 = vmatpush3.bf16.msra.mxu0 %v3231_v47 }
 0x4f2   :  { %v1201_v46 = vpack.c.bf16 %v1193_v49, %v1192_v60  ;;  %3135 = vmatprep.subr.bf16.mxu0 %v3232_v52  ;;  %v3237_v49 = vld [vmem:[%s4985_s5 + $0x60] ss:$8 sps:$4 sm:$0xff]  }
 0x4f4   :  { %3120 = vmatmul.mubr.bf16.gmra.mxu0 %v1201_v46 }
 0x4f5   :  { %3136 = vmatpush3.bf16.msra.mxu0 %v3232_v52  ;;  %v3242_v52 = vld [vmem:[%s4985_s5 + $0x54] ss:$8 sps:$4 sm:$0xff]  }
 0x4f6   :  { %3137 = vmatprep.subr.bf16.mxu0 %v3233_v36 }
 0x4f9   :  { %3138 = vmatpush3.bf16.msra.mxu0 %v3233_v36 }
 0x59c   :  { %v3109_v37 = vpop.f32.mrf.mxu0 }
 0x59e   :  { %v1236_v21 = vpop.f32.mrf.mxu0 }
 0x5a0   :  { %v3110_v12 = vpop.f32.mrf.mxu0 }
 0x5a1   :  { %v1300_v20 = vpack.c.bf16 %v3110_v12, %v3109_v37  ;;  %v5034_v37 = vld [vmem:[#allocation4_spill] sm:$0xff] }
 0x5a2   :  { %v1239_v4 = vpop.f32.mrf.mxu0 }
 0x5a3   :  { %v1299_v61 = vpack.c.bf16 %v1239_v4, %v1236_v21  ;;  %v3240_v4 = vld [vmem:[%s4985_s5 + $0x50] ss:$8 sps:$4 sm:$0xff]  }
 0x5a4   :  { %v3113_v24 = vpop.f32.mrf.mxu0 }
 0x5a5   :  { %3139 = vmatprep.mubr.bf16.mxu0 %v1299_v61 }
 0x5a6   :  { %v1252_v19 = vpop.f32.mrf.mxu0  ;;  %3140 = vmatmul.mubr.bf16.vlgmr.msra.gmra.mxu0 %v1300_v20  ;;  %v3245_v20 = vld [vmem:[%s4985_s5 + $0x44] ss:$8 sps:$4 sm:$0xff]  }
 0x5a8   :  { %v3114_v56 = vpop.f32.mrf.mxu0 }
 0x5a9   :  { %v1302_v29 = vpack.c.bf16 %v3114_v56, %v3113_v24 }
 0x5aa   :  { %v1255_v14 = vpop.f32.mrf.mxu0 }
 0x5ab   :  { %v1301_v22 = vpack.c.bf16 %v1255_v14, %v1252_v19  ;;  %v5035_v19 = vld [vmem:[#allocation5_spill] sm:$0xff] }
 0x5ac   :  { %v3117_v35 = vpop.f32.mrf.mxu0 }
 0x5ad   :  { %3143 = vmatprep.mubr.bf16.mxu0 %v1301_v22  ;;  %v3243_v22 = vld [vmem:[%s4985_s5 + $0x40] ss:$8 sps:$4 sm:$0xff]  }
 0x5ae   :  { %v1268_v28 = vpop.f32.mrf.mxu0  ;;  %3144 = vmatmul.mubr.bf16.gmra.mxu0 %v1302_v29 }
 0x5b0   :  { %v3118_v40 = vpop.f32.mrf.mxu0 }
 0x5b1   :  { %v1304_v33 = vpack.c.bf16 %v3118_v40, %v3117_v35  ;;  %v3248_v35 = vld [vmem:[%s4985_s5 + $0x34] ss:$8 sps:$4 sm:$0xff]   ;;  %v5037_v40 = vld [vmem:[#allocation6_spill] sm:$0xff] }
 0x5b2   :  { %v1271_v51 = vpop.f32.mrf.mxu0 }
 0x5b3   :  { %v1303_v18 = vpack.c.bf16 %v1271_v51, %v1268_v28 }
 0x5b4   :  { %v3121_v34 = vpop.f32.mrf.mxu0 }
 0x5b5   :  { %3147 = vmatprep.mubr.bf16.mxu0 %v1303_v18 }
 0x5b6   :  { %v1284_v1 = vpop.f32.mrf.mxu0  ;;  %3148 = vmatmul.mubr.bf16.gmra.mxu0 %v1304_v33  ;;  %v3246_v33 = vld [vmem:[%s4985_s5 + $0x30] ss:$8 sps:$4 sm:$0xff]  }
 0x5b8   :  { %v3122_v30 = vpop.f32.mrf.mxu0 }
 0x5b9   :  { %v1306_v44 = vpack.c.bf16 %v3122_v30, %v3121_v34  ;;  %v5038_v30 = vld [vmem:[#allocation7_spill] sm:$0xff] }
 0x5ba   :  { %v1287_v62 = vpop.f32.mrf.mxu0 }
 0x5bb   :  { %v1305_v13 = vpack.c.bf16 %v1287_v62, %v1284_v1  ;;  %v3251_v1 = vld [vmem:[%s4985_s5 + $0x24] ss:$8 sps:$4 sm:$0xff]  }
 0x5bd   :  { %3151 = vmatprep.mubr.bf16.mxu0 %v1305_v13 }
 0x5be   :  { %3152 = vmatmul.mubr.bf16.gmra.mxu0 %v1306_v44 }
 0x666   :  { %v3141_v5 = vpop.f32.mrf.mxu0 }
 0x667   :  { %v1470_v55 = vadd.f32 %v3141_v5, %v3614_v31 }
 0x668   :  { %v1405_v59 = vpop.f32.mrf.mxu0 }
 0x669   :  { %v1468_v57 = vadd.f32 %v1405_v59, %v3602_v23  ;;  %v4275_v23 = vadd.f32 %v4259_v54, %v1470_v55  ;;  %v3254_v59 = vld [vmem:[%s4985_s5 + $0x14] ss:$8 sps:$4 sm:$0xff]  }
 0x66a   :  { %v3142_v11 = vpop.f32.mrf.mxu0 }
 0x66b   :  { %v4263_v58 = vadd.f32 %v4259_v54, %v1468_v57  ;;  %v1538_v16 = vmul.f32 %v4275_v23, %v4275_v23 }
 0x66c   :  { %v1408_v48 = vpop.f32.mrf.mxu0 }
 0x66d   :  { %v1469_v63 = vadd.f32 %v1408_v48, %v3608_v27  ;;  %1504 = vadd.xlane.f32.xlu0 %v4263_v58  ;;  %v1536_v6 = vmul.f32 %v4263_v58, %v4263_v58  ;;  %v1471_v27 = vadd.f32 %v3142_v11, %v3617_v32  ;;  %v3236_v32 = vld [vmem:[%s4985_s5 + $0x74] ss:$8 sps:$4 sm:$0xff]  }
 0x66e   :  { %v3145_v2 = vpop.f32.mrf.mxu0  ;;  %1867 = vmatprep.subr.bf16.mxu1 %v3236_v32  ;;  %v5041_v11 = vld [vmem:[#allocation8_spill] sm:$0xff]  ;;  %v5045_v32 = vld [vmem:[#allocation10_spill] sm:$0xff] }
 0x66f   :  { %v4269_v53 = vadd.f32 %v4259_v54, %v1469_v63  ;;  %v4282_v31 = vadd.f32 %v4259_v54, %v1471_v27  ;;  %v1474_v8 = vadd.f32 %v3145_v2, %v5033_v43  ;;  %v3252_v2 = vld [vmem:[%s4985_s5 + $0x10] ss:$8 sps:$4 sm:$0xff]  }
 0x670   :  { %v1421_v0 = vpop.f32.mrf.mxu0  ;;  %v5043_v27 = vld [vmem:[#allocation9_spill] sm:$0xff] }
 0x671   :  { %1552 = vadd.xlane.f32.xlu0 %v1536_v6  ;;  %1506 = vadd.xlane.f32.xlu1 %v4269_v53  ;;  %v1537_v9 = vmul.f32 %v4269_v53, %v4269_v53  ;;  %v1472_v15 = vadd.f32 %v1421_v0, %v3632_v39  ;;  %v1539_v45 = vmul.f32 %v4282_v31, %v4282_v31  ;;  %v3234_v39 = vld [vmem:[%s4985_s5 + $0x70] ss:$8 sps:$4 sm:$0xff]   ;;  %v3257_v6 = vld [vmem:[%s4985_s5 + $0x4] ss:$8 sps:$4 sm:$0xff]  }
 0x672   :  { %v3146_v3 = vpop.f32.mrf.mxu0  ;;  %1868 = vmatpush1.bf16.msra.mxu1 %v3234_v39  ;;  %v4318_v36 = vadd.f32 %v4259_v54, %v1474_v8  ;;  %v5046_v39 = vld [vmem:[#allocation11_spill] sm:$0xff] }
 0x673   :  { %v4292_v47 = vadd.f32 %v4259_v54, %v1472_v15  ;;  %1869 = vmatprep.subr.bf16.mxu1 %v3239_v41  ;;  %v1475_v21 = vadd.f32 %v3146_v3, %v5034_v37  ;;  %v3255_v15 = vld [vmem:[%s4985_s5] ss:$8 sps:$4 sm:$0xff]  }
 0x674   :  { %v1424_v25 = vpop.f32.mrf.mxu0  ;;  %v1542_v14 = vmul.f32 %v4318_v36, %v4318_v36 }
 0x675   :  { %1508 = vadd.xlane.f32.xlu0 %v4275_v23  ;;  %1554 = vadd.xlane.f32.xlu1 %v1537_v9  ;;  %v1473_v38 = vadd.f32 %v1424_v25, %v3641_v42  ;;  %v1540_v60 = vmul.f32 %v4292_v47, %v4292_v47  ;;  %v4331_v24 = vadd.f32 %v4259_v54, %v1475_v21 }
 0x676   :  { %v3149_v26 = vpop.f32.mrf.mxu0  ;;  %1870 = vmatpush1.bf16.msra.mxu1 %v3237_v49 }
 0x677   :  { %v4306_v42 = vadd.f32 %v4259_v54, %v1473_v38  ;;  %1871 = vmatprep.subr.bf16.mxu1 %v3242_v52  ;;  %v1543_v18 = vmul.f32 %v4331_v24, %v4331_v24  ;;  %v1478_v62 = vadd.f32 %v3149_v26, %v5038_v30 }
 0x678   :  { %v1437_v46 = vpop.f32.mrf.mxu0 }
 0x679   :  { %1556 = vadd.xlane.f32.xlu0 %v1538_v16  ;;  %1510 = vadd.xlane.f32.xlu1 %v4282_v31  ;;  %v1541_v12 = vmul.f32 %v4306_v42, %v4306_v42  ;;  %v1476_v56 = vadd.f32 %v1437_v46, %v5035_v19  ;;  %v4370_v57 = vadd.f32 %v4259_v54, %v1478_v62 }
 0x67a   :  { %v3150_v61 = vpop.f32.mrf.mxu0  ;;  %1872 = vmatpush1.bf16.msra.mxu1 %v3240_v4 }
 0x67b   :  { %1873 = vmatprep.subr.bf16.mxu1 %v3245_v20  ;;  %v4344_v28 = vadd.f32 %v4259_v54, %v1476_v56  ;;  %5040 = vst [vmem:[#allocation5_spill] sm:$0xff] %v4370_v57  ;;  %v1479_v48 = vadd.f32 %v3150_v61, %v5041_v11  ;;  %v1546_v3 = vmul.f32 %v4370_v57, %v4370_v57 }
 0x67c   :  { %v1440_v29 = vpop.f32.mrf.mxu0 }
 0x67d   :  { %1558 = vadd.xlane.f32.xlu1 %v1539_v45  ;;  %1512 = vadd.xlane.f32.xlu0 %v4292_v47  ;;  %5036 = vst [vmem:[#allocation3_spill] sm:$0xff] %v4344_v28  ;;  %v1477_v51 = vadd.f32 %v1440_v29, %v5037_v40  ;;  %v1544_v44 = vmul.f32 %v4344_v28, %v4344_v28 }
 0x67e   :  { %1874 = vmatpush1.bf16.msra.mxu1 %v3243_v22  ;;  %v3153_v34 = vpop.f32.mrf.mxu0  ;;  %v4383_v0 = vadd.f32 %v4259_v54, %v1479_v48 }
 0x67f   :  { %1875 = vmatprep.subr.bf16.mxu1 %v3248_v35  ;;  %v4358_v13 = vadd.f32 %v4259_v54, %v1477_v51  ;;  %v1482_v26 = vadd.f32 %v3153_v34, %v5046_v39 }
 0x680   :  { %v1453_v5 = vpop.f32.mrf.mxu0  ;;  %5042 = vst [vmem:[#allocation6_spill] sm:$0xff] %v4383_v0  ;;  %v1547_v45 = vmul.f32 %v4383_v0, %v4383_v0 }
 0x681   :  { %1560 = vadd.xlane.f32.xlu0 %v1540_v60  ;;  %1514 = vadd.xlane.f32.xlu1 %v4306_v42  ;;  %5039 = vst [vmem:[#allocation4_spill] sm:$0xff] %v4358_v13  ;;  %v1545_v63 = vmul.f32 %v4358_v13, %v4358_v13  ;;  %v1480_v9 = vadd.f32 %v1453_v5, %v5043_v27  ;;  %v5049_v60 = vld [vmem:[#allocation12_spill] sm:$0xff] }
 0x682   :  { %1876 = vmatpush1.bf16.msra.mxu1 %v3246_v33  ;;  %v3154_v55 = vpop.f32.mrf.mxu0  ;;  %v4407_v8 = vadd.f32 %v4259_v54, %v1482_v26 }
 0x683   :  { %1877 = vmatprep.subr.bf16.mxu1 %v3251_v1  ;;  %v4393_v25 = vadd.f32 %v4259_v54, %v1480_v9  ;;  %v1483_v49 = vadd.f32 %v3154_v55, %v5049_v60 }
 0x684   :  { %v1456_v16 = vpop.f32.mrf.mxu0  ;;  %5048 = vst [vmem:[#allocation9_spill] sm:$0xff] %v4407_v8  ;;  %v1550_v37 = vmul.f32 %v4407_v8, %v4407_v8 }
 0x685   :  { %1516 = vadd.xlane.f32.xlu0 %v4318_v36  ;;  %1562 = vadd.xlane.f32.xlu1 %v1541_v12  ;;  %5044 = vst [vmem:[#allocation7_spill] sm:$0xff] %v4393_v25  ;;  %v1481_v38 = vadd.f32 %v1456_v16, %v5045_v32  ;;  %v1548_v43 = vmul.f32 %v4393_v25, %v4393_v25 }
 0x686   :  { %1878 = vmatpush1.bf16.msra.mxu1 %v3249_v10  ;;  %v4414_v52 = vadd.f32 %v4259_v54, %v1483_v49 }
 0x687   :  { %1879 = vmatprep.subr.bf16.mxu1 %v3254_v59  ;;  %v4401_v41 = vadd.f32 %v4259_v54, %v1481_v38  ;;  %v1714_v38 = vsub.s32 4, %v3587_v17 }
 0x688   :  { %5050 = vst [vmem:[#allocation10_spill] sm:$0xff] %v4414_v52  ;;  %v1551_v21 = vmul.f32 %v4414_v52, %v4414_v52 }
 0x689   :  { %1564 = vadd.xlane.f32.xlu0 %v1542_v14  ;;  %1518 = vadd.xlane.f32.xlu1 %v4331_v24  ;;  %5047 = vst [vmem:[#allocation8_spill] sm:$0xff] %v4401_v41  ;;  %v1549_v46 = vmul.f32 %v4401_v41, %v4401_v41 }
 0x68a   :  { %1880 = vmatpush1.bf16.msra.mxu1 %v3252_v2 }
 0x68b   :  { %1881 = vmatprep.subr.bf16.mxu1 %v3257_v6 }
 0x68d   :  { %1566 = vadd.xlane.f32.xlu1 %v1543_v18  ;;  %1520 = vadd.xlane.f32.xlu0 %v4344_v28 }
 0x68e   :  { %1882 = vmatpush1.bf16.msra.mxu1 %v3255_v15 }
 0x691   :  { %1568 = vadd.xlane.f32.xlu0 %v1544_v44  ;;  %1522 = vadd.xlane.f32.xlu1 %v4358_v13 }
 0x695   :  { %1524 = vadd.xlane.f32.xlu0 %v4370_v57  ;;  %1570 = vadd.xlane.f32.xlu1 %v1545_v63 }
 0x699   :  { %1572 = vadd.xlane.f32.xlu0 %v1546_v3  ;;  %1526 = vadd.xlane.f32.xlu1 %v4383_v0 }
 0x69d   :  { %1574 = vadd.xlane.f32.xlu1 %v1547_v45  ;;  %1528 = vadd.xlane.f32.xlu0 %v4393_v25 }
 0x6a1   :  { %1576 = vadd.xlane.f32.xlu0 %v1548_v43  ;;  %1530 = vadd.xlane.f32.xlu1 %v4401_v41 }
 0x6a5   :  { %1532 = vadd.xlane.f32.xlu0 %v4407_v8  ;;  %1578 = vadd.xlane.f32.xlu1 %v1549_v46 }
 0x6a9   :  { %1580 = vadd.xlane.f32.xlu0 %v1550_v37  ;;  %1534 = vadd.xlane.f32.xlu1 %v4414_v52 }
 0x6ad   :  { %1582 = vadd.xlane.f32.xlu1 %v1551_v21 }
 0x6f6   :  { %v1505_v12 = vpop.xlane.xlu0 %1504 }
 0x6f7   :  { %v1584_v4 = vmul.f32 0.015625, %v1505_v12 }
 0x6f9   :  { %v1616_v19 = vmul.f32 %v1584_v4, %v1584_v4  ;;  %v1648_v26 = vsub.f32 %v4263_v58, %v1584_v4 }
 0x6fa   :  { %v1553_v61 = vpop.xlane.xlu0 %1552  ;;  %v1507_v20 = vpop.xlane.xlu1 %1506 }
 0x6fb   :  { %v1600_v56 = vmul.f32 0.015625, %v1553_v61  ;;  %v1585_v14 = vmul.f32 0.015625, %v1507_v20  ;;  %v4442_v61 = vrot.slane %v4256_v50, %v1714_v38  ;;  %v1734_v20 = vsub.s32 5, %v3587_v17 }
 0x6fd   :  { %v1632_v22 = vsub.f32 %v1600_v56, %v1616_v19  ;;  %v1617_v40 = vmul.f32 %v1585_v14, %v1585_v14  ;;  %v1649_v19 = vsub.f32 %v4269_v53, %v1585_v14 }
 0x6fe   :  { %v1509_v54 = vpop.xlane.xlu0 %1508  ;;  %v1555_v29 = vpop.xlane.xlu1 %1554 }
 0x6ff   :  { %v1664_v35 = vadd.f32 1e-05, %v1632_v22  ;;  %v4421_v51 = vmul.f32 0.015625, %v1509_v54  ;;  %v1601_v18 = vmul.f32 0.015625, %v1555_v29 }
 0x701   :  { %3378 = vrsqrt.f32 %v1664_v35  ;;  %v1633_v33 = vsub.f32 %v1601_v18, %v1617_v40  ;;  %v1618_v30 = vmul.f32 %v4421_v51, %v4421_v51 }
 0x702   :  { %v1557_v34 = vpop.xlane.xlu0 %1556  ;;  %v1511_v1 = vpop.xlane.xlu1 %1510 }
 0x703   :  { %v1665_v62 = vadd.f32 1e-05, %v1633_v33  ;;  %v1602_v44 = vmul.f32 0.015625, %v1557_v34  ;;  %v4425_v10 = vmul.f32 0.015625, %v1511_v1  ;;  %v4452_v1 = vrot.slane %v4256_v50, %v1734_v20 }
 0x705   :  { %3380 = vrsqrt.f32 %v1665_v62  ;;  %v1634_v5 = vsub.f32 %v1602_v44, %v1618_v30  ;;  %v1619_v63 = vmul.f32 %v4425_v10, %v4425_v10  ;;  %v1650_v62 = vsub.f32 %v4275_v23, %v4421_v51 }
 0x706   :  { %v1559_v59 = vpop.xlane.xlu1 %1558  ;;  %v1513_v11 = vpop.xlane.xlu0 %1512 }
 0x707   :  { %v1666_v48 = vadd.f32 1e-05, %v1634_v5  ;;  %v1603_v2 = vmul.f32 0.015625, %v1559_v59  ;;  %v4429_v55 = vmul.f32 0.015625, %v1513_v11 }
 0x709   :  { %3382 = vrsqrt.f32 %v1666_v48  ;;  %v1635_v6 = vsub.f32 %v1603_v2, %v1619_v63  ;;  %v1620_v15 = vmul.f32 %v4429_v55, %v4429_v55 }
 0x70a   :  { %v1561_v27 = vpop.xlane.xlu0 %1560  ;;  %v1515_v9 = vpop.xlane.xlu1 %1514 }
 0x70b   :  { %v1667_v3 = vadd.f32 1e-05, %v1635_v6  ;;  %v1604_v16 = vmul.f32 0.015625, %v1561_v27  ;;  %v4433_v32 = vmul.f32 0.015625, %v1515_v9  ;;  %v1651_v9 = vsub.f32 %v4282_v31, %v4425_v10 }
 0x70d   :  { %3384 = vrsqrt.f32 %v1667_v3  ;;  %v1636_v45 = vsub.f32 %v1604_v16, %v1620_v15  ;;  %v1621_v46 = vmul.f32 %v4433_v32, %v4433_v32 }
 0x70e   :  { %v3379_v39 = vpop.eup %3378  ;;  %v1517_v43 = vpop.xlane.xlu0 %1516 }
 0x70f   :  { %v1563_v60 = vpop.xlane.xlu1 %1562  ;;  %v1668_v49 = vadd.f32 1e-05, %v1636_v45  ;;  %v4439_v37 = vmul.f32 0.015625, %v1517_v43  ;;  %v1696_v12 = vmul.f32 %v3379_v39, %v1648_v26 }
 0x710   :  { %v1605_v21 = vmul.f32 0.015625, %v1563_v60 }
 0x711   :  { %3386 = vrsqrt.f32 %v1668_v49  ;;  %v1622_v22 = vmul.f32 %v4439_v37, %v4439_v37  ;;  %v1716_v34 = vmul.f32 %v4442_v61, %v1696_v12 }
 0x712   :  { %v1637_v56 = vsub.f32 %v1605_v21, %v1621_v46  ;;  %v3381_v4 = vpop.eup %3380  ;;  %v1565_v54 = vpop.xlane.xlu0 %1564  ;;  %v1652_v21 = vsub.f32 %v4292_v47, %v4429_v55 }
 0x713   :  { %v1519_v29 = vpop.xlane.xlu1 %1518  ;;  %v1697_v35 = vmul.f32 %v3381_v4, %v1649_v19  ;;  %v1606_v18 = vmul.f32 0.015625, %v1565_v54  ;;  %v1736_v50 = vadd.f32 %v4452_v1, %v1716_v34 }
 0x714   :  { %v1669_v40 = vadd.f32 1e-05, %v1637_v56  ;;  %v4448_v33 = vmul.f32 0.015625, %v1519_v29 }
 0x715   :  { %v1638_v14 = vsub.f32 %v1606_v18, %v1622_v22  ;;  %v1717_v59 = vmul.f32 %v4442_v61, %v1697_v35  ;;  %v1653_v18 = vsub.f32 %v4306_v42, %v4433_v32 }
 0x716   :  { %3388 = vrsqrt.f32 %v1669_v40  ;;  %v3383_v30 = vpop.eup %3382  ;;  %v1521_v5 = vpop.xlane.xlu0 %1520  ;;  %v1623_v48 = vmul.f32 %v4448_v33, %v4448_v33 }
 0x717   :  { %v1567_v44 = vpop.xlane.xlu1 %1566  ;;  %v1670_v11 = vadd.f32 1e-05, %v1638_v14  ;;  %v4459_v2 = vmul.f32 0.015625, %v1521_v5  ;;  %v1737_v6 = vadd.f32 %v4452_v1, %v1717_v59  ;;  %v1698_v27 = vmul.f32 %v3383_v30, %v1650_v62 }
 0x718   :  { %v1607_v63 = vmul.f32 0.015625, %v1567_v44 }
 0x719   :  { %3390 = vrsqrt.f32 %v1670_v11  ;;  %v1624_v15 = vmul.f32 %v4459_v2, %v4459_v2  ;;  %v1752_v45 = vpack.c.bf16 %v1737_v6, %v1736_v50  ;;  %v1718_v49 = vmul.f32 %v4442_v61, %v1698_v27 }
 0x71a   :  { %v1639_v51 = vsub.f32 %v1607_v63, %v1623_v48  ;;  %v3385_v3 = vpop.eup %3384  ;;  %v1569_v16 = vpop.xlane.xlu0 %1568  ;;  %v1654_v6 = vsub.f32 %v4318_v36, %v4439_v37 }
 0x71b   :  { %v1523_v38 = vpop.xlane.xlu1 %1522  ;;  %v1608_v26 = vmul.f32 0.015625, %v1569_v16  ;;  %v1699_v60 = vmul.f32 %v3385_v3, %v1651_v9  ;;  %1900 = vmatmul.mubr.bf16.vlgmr.msra.gmra.mxu1 %v1752_v45  ;;  %v1738_v29 = vadd.f32 %v4452_v1, %v1718_v49 }
 0x71c   :  { %v1671_v39 = vadd.f32 1e-05, %v1639_v51  ;;  %v4467_v43 = vmul.f32 0.015625, %v1523_v38  ;;  %1909 = vmatprep.mubr.bf16.mxu1 %v5032_v7 }
 0x71d   :  { %v1640_v46 = vsub.f32 %v1608_v26, %v1624_v15  ;;  %v1719_v19 = vmul.f32 %v4442_v61, %v1699_v60  ;;  %v1655_v60 = vsub.f32 %v4331_v24, %v4448_v33 }
 0x71e   :  { %3392 = vrsqrt.f32 %v1671_v39  ;;  %v3387_v10 = vpop.eup %3386  ;;  %v1525_v12 = vpop.xlane.xlu0 %1524  ;;  %v1625_v4 = vmul.f32 %v4467_v43, %v4467_v43 }
 0x71f   :  { %v1571_v20 = vpop.xlane.xlu1 %1570  ;;  %v1672_v56 = vadd.f32 1e-05, %v1640_v46  ;;  %v4476_v22 = vmul.f32 0.015625, %v1525_v12  ;;  %v1739_v35 = vadd.f32 %v4452_v1, %v1719_v19  ;;  %v1700_v40 = vmul.f32 %v3387_v10, %v1652_v21 }
 0x720   :  { %v1609_v54 = vmul.f32 0.015625, %v1571_v20 }
 0x721   :  { %3394 = vrsqrt.f32 %v1672_v56  ;;  %v1626_v14 = vmul.f32 %v4476_v22, %v4476_v22  ;;  %v1753_v44 = vpack.c.bf16 %v1739_v35, %v1738_v29  ;;  %v1720_v63 = vmul.f32 %v4442_v61, %v1700_v40 }
 0x722   :  { %v1641_v55 = vsub.f32 %v1609_v54, %v1625_v4  ;;  %v1573_v30 = vpop.xlane.xlu0 %1572  ;;  %v1656_v35 = vsub.f32 %v4344_v28, %v4459_v2 }
 0x723   :  { %v3389_v34 = vpop.eup %3388  ;;  %v1527_v62 = vpop.xlane.xlu1 %1526  ;;  %v1610_v59 = vmul.f32 0.015625, %v1573_v30  ;;  %1910 = vmatmul.mubr.bf16.gmra.mxu1 %v1753_v44  ;;  %v1740_v45 = vadd.f32 %v4452_v1, %v1720_v63 }
 0x724   :  { %v1673_v5 = vadd.f32 1e-05, %v1641_v55  ;;  %v4484_v11 = vmul.f32 0.015625, %v1527_v62  ;;  %v1701_v48 = vmul.f32 %v3389_v34, %v1653_v18  ;;  %1919 = vmatprep.mubr.bf16.mxu1 %v5032_v7 }
 0x725   :  { %v1642_v50 = vsub.f32 %v1610_v59, %v1626_v14 }
 0x726   :  { %3396 = vrsqrt.f32 %v1673_v5  ;;  %v3391_v32 = vpop.eup %3390  ;;  %v1529_v9 = vpop.xlane.xlu0 %1528  ;;  %v1721_v51 = vmul.f32 %v4442_v61, %v1701_v48  ;;  %v1627_v15 = vmul.f32 %v4484_v11, %v4484_v11  ;;  %v1657_v48 = vsub.f32 %v4358_v13, %v4467_v43 }
 0x727   :  { %v1575_v27 = vpop.xlane.xlu1 %1574  ;;  %v1674_v3 = vadd.f32 1e-05, %v1642_v50  ;;  %v4493_v38 = vmul.f32 0.015625, %v1529_v9  ;;  %v1702_v26 = vmul.f32 %v3391_v32, %v1654_v6 }
 0x728   :  { %v1611_v16 = vmul.f32 0.015625, %v1575_v27  ;;  %v1741_v39 = vadd.f32 %v4452_v1, %v1721_v51 }
 0x729   :  { %3398 = vrsqrt.f32 %v1674_v3  ;;  %v1628_v46 = vmul.f32 %v4493_v38, %v4493_v38  ;;  %v1722_v54 = vmul.f32 %v4442_v61, %v1702_v26 }
 0x72a   :  { %v1643_v37 = vsub.f32 %v1611_v16, %v1627_v15  ;;  %v1577_v10 = vpop.xlane.xlu0 %1576  ;;  %v1754_v12 = vpack.c.bf16 %v1741_v39, %v1740_v45  ;;  %v1658_v45 = vsub.f32 %v4370_v57, %v4476_v22 }
 0x72b   :  { %v3393_v49 = vpop.eup %3392  ;;  %v1531_v21 = vpop.xlane.xlu1 %1530  ;;  %v1612_v19 = vmul.f32 0.015625, %v1577_v10  ;;  %v1742_v44 = vadd.f32 %v4452_v1, %v1722_v54 }
 0x72c   :  { %v1675_v20 = vadd.f32 1e-05, %v1643_v37  ;;  %v4501_v56 = vmul.f32 0.015625, %v1531_v21  ;;  %v1703_v4 = vmul.f32 %v3393_v49, %v1655_v60  ;;  %1920 = vmatmul.mubr.bf16.gmra.mxu1 %v1754_v12 }
 0x72d   :  { %v1644_v29 = vsub.f32 %v1612_v19, %v1628_v46  ;;  %1929 = vmatprep.mubr.bf16.mxu1 %v5032_v7 }
 0x72e   :  { %3400 = vrsqrt.f32 %v1675_v20  ;;  %v3395_v33 = vpop.eup %3394  ;;  %v1533_v40 = vpop.xlane.xlu0 %1532  ;;  %v1723_v55 = vmul.f32 %v4442_v61, %v1703_v4  ;;  %v1629_v14 = vmul.f32 %v4501_v56, %v4501_v56  ;;  %v1659_v20 = vsub.f32 %v4383_v0, %v4484_v11 }
 0x72f   :  { %v1579_v18 = vpop.xlane.xlu1 %1578  ;;  %v1676_v34 = vadd.f32 1e-05, %v1644_v29  ;;  %v1598_v30 = vmul.f32 0.015625, %v1533_v40  ;;  %v1704_v59 = vmul.f32 %v3395_v33, %v1656_v35  ;;  %v1660_v35 = vsub.f32 %v4393_v25, %v4493_v38 }
 0x730   :  { %v1613_v62 = vmul.f32 0.015625, %v1579_v18  ;;  %v1743_v5 = vadd.f32 %v4452_v1, %v1723_v55 }
 0x731   :  { %3402 = vrsqrt.f32 %v1676_v34  ;;  %v1630_v50 = vmul.f32 %v1598_v30, %v1598_v30  ;;  %v1724_v16 = vmul.f32 %v4442_v61, %v1704_v59  ;;  %v1662_v38 = vsub.f32 %v4407_v8, %v1598_v30 }
 0x732   :  { %v1645_v2 = vsub.f32 %v1613_v62, %v1629_v14  ;;  %v1581_v32 = vpop.xlane.xlu0 %1580  ;;  %v1755_v27 = vpack.c.bf16 %v1743_v5, %v1742_v44  ;;  %v1661_v14 = vsub.f32 %v4401_v41, %v4501_v56 }
 0x733   :  { %v3397_v63 = vpop.eup %3396  ;;  %v1535_v6 = vpop.xlane.xlu1 %1534  ;;  %v1614_v51 = vmul.f32 0.015625, %v1581_v32  ;;  %v1744_v21 = vadd.f32 %v4452_v1, %v1724_v16 }
 0x734   :  { %v1677_v9 = vadd.f32 1e-05, %v1645_v2  ;;  %v1599_v3 = vmul.f32 0.015625, %v1535_v6  ;;  %v1705_v15 = vmul.f32 %v3397_v63, %v1657_v48  ;;  %1930 = vmatmul.mubr.bf16.gmra.mxu1 %v1755_v27 }
 0x735   :  { %v1646_v39 = vsub.f32 %v1614_v51, %v1630_v50  ;;  %1939 = vmatprep.mubr.bf16.mxu1 %v5032_v7 }
 0x736   :  { %3404 = vrsqrt.f32 %v1677_v9  ;;  %v3399_v43 = vpop.eup %3398  ;;  %v1725_v60 = vmul.f32 %v4442_v61, %v1705_v15  ;;  %v1631_v49 = vmul.f32 %v1599_v3, %v1599_v3  ;;  %v1663_v56 = vsub.f32 %v4414_v52, %v1599_v3  ;;  %v3258_v3 = vld [vmem:[%s4986_s7 + $0x78] sm:$0xff]  }
 0x737   :  { %v1583_v26 = vpop.xlane.xlu1 %1582  ;;  %v1678_v37 = vadd.f32 1e-05, %v1646_v39  ;;  %v1706_v10 = vmul.f32 %v3399_v43, %v1658_v45  ;;  %v3259_v39 = vld [vmem:[%s4986_s7 + $0x38] sm:$0xff]   ;;  %2922 = vmatprep.subr.bf16.mxu0 %v3258_v3  ;;  %v3263_v43 = vld [vmem:[%s4986_s7 + $0x28] sm:$0xff]  }
 0x738   :  { %v1615_v46 = vmul.f32 0.015625, %v1583_v26  ;;  %v1745_v12 = vadd.f32 %v4452_v1, %v1725_v60  ;;  %2923 = vmatpush3.bf16.msra.mxu0 %v3259_v39  ;;  %v3264_v26 = vld [vmem:[%s4986_s7 + $0x60] sm:$0xff]  }
 0x739   :  { %3406 = vrsqrt.f32 %v1678_v37  ;;  %v1726_v33 = vmul.f32 %v4442_v61, %v1706_v10  ;;  %v3265_v60 = vld [vmem:[%s4986_s7 + $0x20] sm:$0xff]   ;;  %v3266_v37 = vld [vmem:[%s4986_s7 + $0x58] sm:$0xff]   ;;  %v3269_v10 = vld [vmem:[%s4986_s7 + $0x10] sm:$0xff]  }
 0x73a   :  { %v1647_v22 = vsub.f32 %v1615_v46, %v1631_v49  ;;  %v1756_v4 = vpack.c.bf16 %v1745_v12, %v1744_v21  ;;  %v3267_v49 = vld [vmem:[%s4986_s7 + $0x18] sm:$0xff]   ;;  %v3268_v46 = vld [vmem:[%s4986_s7 + $0x50] sm:$0xff]   ;;  %v3270_v21 = vld [vmem:[%s4986_s7 + $0x48] sm:$0xff]  }
 0x73b   :  { %v3401_v19 = vpop.eup %3400  ;;  %v1746_v11 = vadd.f32 %v4452_v1, %v1726_v33  ;;  %v3271_v12 = vld [vmem:[%s4986_s7 + $0x8] sm:$0xff]  }
 0x73c   :  { %v1679_v54 = vadd.f32 1e-05, %v1647_v22  ;;  %v1707_v29 = vmul.f32 %v3401_v19, %v1659_v20  ;;  %1940 = vmatmul.mubr.bf16.gmra.mxu1 %v1756_v4  ;;  %v3272_v20 = vld [vmem:[%s4986_s7 + $0x40] sm:$0xff]  }
 0x73d   :  { %1949 = vmatprep.mubr.bf16.mxu1 %v5032_v7  ;;  %v3273_v22 = vld [vmem:[%s4986_s7] sm:$0xff]  }
 0x73e   :  { %3408 = vrsqrt.f32 %v1679_v54  ;;  %v1727_v40 = vmul.f32 %v4442_v61, %v1707_v29  ;;  %v3403_v18 = vpop.eup %3402  ;;  %v41_v19 = vld [vmem:[%s4987_s6] sm:$0x3]  ;;  %v5052_v29 = vld [vmem:[#allocation13_spill] sm:$0xff] }
 0x73f   :  { %v1708_v34 = vmul.f32 %v3403_v18, %v1660_v35  ;;  %v5051_v4 = vld [vmem:[#allocation2_spill] sm:$0xff]  ;;  %v4599_v33 = vrot.slane %v41_v19, %v5052_v29 }
 0x740   :  { %v1747_v55 = vadd.f32 %v4452_v1, %v1727_v40  ;;  %v4596_v54 = vrot.slane %v41_v19, %v5051_v4 }
 0x741   :  { %v1728_v59 = vmul.f32 %v4442_v61, %v1708_v34 }
 0x742   :  { %v1757_v62 = vpack.c.bf16 %v1747_v55, %v1746_v11 }
 0x743   :  { %v3405_v44 = vpop.eup %3404  ;;  %v1748_v63 = vadd.f32 %v4452_v1, %v1728_v59 }
 0x744   :  { %v1709_v5 = vmul.f32 %v3405_v44, %v1661_v14  ;;  %1950 = vmatmul.mubr.bf16.gmra.mxu1 %v1757_v62 }
 0x745   :  { %1959 = vmatprep.mubr.bf16.mxu1 %v5032_v7 }
 0x746   :  { %v1729_v48 = vmul.f32 %v4442_v61, %v1709_v5  ;;  %v3407_v2 = vpop.eup %3406 }
 0x747   :  { %v1710_v32 = vmul.f32 %v3407_v2, %v1662_v38 }
 0x748   :  { %v1749_v50 = vadd.f32 %v4452_v1, %v1729_v48 }
 0x749   :  { %v1730_v51 = vmul.f32 %v4442_v61, %v1710_v32 }
 0x74a   :  { %v1758_v6 = vpack.c.bf16 %v1749_v50, %v1748_v63 }
 0x74b   :  { %v3409_v27 = vpop.eup %3408  ;;  %v1750_v15 = vadd.f32 %v4452_v1, %v1730_v51 }
 0x74c   :  { %v1711_v9 = vmul.f32 %v3409_v27, %v1663_v56  ;;  %1960 = vmatmul.mubr.bf16.gmra.mxu1 %v1758_v6 }
 0x74d   :  { %1969 = vmatprep.mubr.bf16.mxu1 %v5032_v7  ;;  %v3260_v7 = vld [vmem:[%s4986_s7 + $0x70] sm:$0xff]  }
 0x74e   :  { %v1731_v30 = vmul.f32 %v4442_v61, %v1711_v9  ;;  %v3261_v61 = vld [vmem:[%s4986_s7 + $0x30] sm:$0xff]   ;;  %2924 = vmatprep.subr.bf16.mxu0 %v3260_v7 }
 0x74f   :  { %2925 = vmatpush3.bf16.msra.mxu0 %v3261_v61 }
 0x750   :  { %v1751_v16 = vadd.f32 %v4452_v1, %v1731_v30  ;;  %v3262_v1 = vld [vmem:[%s4986_s7 + $0x68] sm:$0xff]  }
 0x751   :  { %2926 = vmatprep.subr.bf16.mxu0 %v3262_v1 }
 0x752   :  { %v1759_v45 = vpack.c.bf16 %v1751_v16, %v1750_v15 }
 0x753   :  { %2927 = vmatpush3.bf16.msra.mxu0 %v3263_v43 }
 0x754   :  { %1970 = vmatmul.mubr.bf16.gmra.mxu1 %v1759_v45  ;;  %2928 = vmatprep.subr.bf16.mxu0 %v3264_v26 }
 0x757   :  { %2929 = vmatpush3.bf16.msra.mxu0 %v3265_v60 }
 0x758   :  { %2930 = vmatprep.subr.bf16.mxu0 %v3266_v37 }
 0x75b   :  { %2931 = vmatpush3.bf16.msra.mxu0 %v3267_v49 }
 0x75c   :  { %2932 = vmatprep.subr.bf16.mxu0 %v3268_v46 }
 0x75f   :  { %2933 = vmatpush3.bf16.msra.mxu0 %v3269_v10 }
 0x760   :  { %2934 = vmatprep.subr.bf16.mxu0 %v3270_v21 }
 0x763   :  { %2935 = vmatpush3.bf16.msra.mxu0 %v3271_v12 }
 0x764   :  { %2936 = vmatprep.subr.bf16.mxu0 %v3272_v20 }
 0x767   :  { %2937 = vmatpush3.bf16.msra.mxu0 %v3273_v22 }
 0x7db   :  { %v1901_v35 = vpop.f32.mrf.mxu1 }
 0x7dc   :  { %v4602_v40 = vadd.f32 %v1901_v35, %v4596_v54 }
 0x7dd   :  { %v1903_v18 = vpop.f32.mrf.mxu1 }
 0x7de   :  { %v1980_v11 = vmul.f32 %v4602_v40, %v4602_v40  ;;  %v4607_v55 = vadd.f32 %v1903_v18, %v4599_v33 }
 0x7df   :  { %v1905_v34 = vpop.f32.mrf.mxu1 }
 0x7e0   :  { %v2012_v14 = vmul.f32 %v1980_v11, %v4602_v40  ;;  %v1981_v62 = vmul.f32 %v4607_v55, %v4607_v55  ;;  %v4613_v44 = vadd.f32 %v1905_v34, %v4596_v54 }
 0x7e1   :  { %v1907_v5 = vpop.f32.mrf.mxu1 }
 0x7e2   :  { %v2044_v59 = vmul.f32 0.044715, %v2012_v14  ;;  %v2013_v38 = vmul.f32 %v1981_v62, %v4607_v55  ;;  %v1982_v48 = vmul.f32 %v4613_v44, %v4613_v44  ;;  %v4619_v2 = vadd.f32 %v1907_v5, %v4599_v33 }
 0x7e3   :  { %v1911_v63 = vpop.f32.mrf.mxu1 }
 0x7e4   :  { %v2076_v50 = vadd.f32 %v2044_v59, %v4602_v40  ;;  %v2045_v32 = vmul.f32 0.044715, %v2013_v38  ;;  %v2014_v56 = vmul.f32 %v1982_v48, %v4613_v44  ;;  %v1983_v6 = vmul.f32 %v4619_v2, %v4619_v2 }
 0x7e5   :  { %v4626_v27 = vadd.f32 %v1911_v63, %v4596_v54  ;;  %v1913_v9 = vpop.f32.mrf.mxu1 }
 0x7e6   :  { %v2108_v51 = vmul.f32 0.7978846, %v2076_v50  ;;  %v2046_v30 = vmul.f32 0.044715, %v2014_v56  ;;  %v2015_v15 = vmul.f32 %v1983_v6, %v4619_v2  ;;  %v2077_v16 = vadd.f32 %v2045_v32, %v4607_v55 }
 0x7e7   :  { %v1984_v45 = vmul.f32 %v4626_v27, %v4626_v27  ;;  %v4633_v3 = vadd.f32 %v1913_v9, %v4599_v33  ;;  %v1915_v39 = vpop.f32.mrf.mxu1 }
 0x7e8   :  { %3410 = vtanh.f32 %v2108_v51  ;;  %v2078_v7 = vadd.f32 %v2046_v30, %v4613_v44  ;;  %v2047_v61 = vmul.f32 0.044715, %v2015_v15  ;;  %v4640_v26 = vadd.f32 %v1915_v39, %v4596_v54 }
 0x7e9   :  { %v2016_v1 = vmul.f32 %v1984_v45, %v4626_v27  ;;  %v1985_v43 = vmul.f32 %v4633_v3, %v4633_v3  ;;  %v1917_v60 = vpop.f32.mrf.mxu1  ;;  %v2109_v10 = vmul.f32 0.7978846, %v2077_v16 }
 0x7ea   :  { %v2110_v37 = vmul.f32 0.7978846, %v2078_v7  ;;  %v2079_v49 = vadd.f32 %v2047_v61, %v4619_v2  ;;  %v4644_v46 = vadd.f32 %v1917_v60, %v4599_v33  ;;  %v1986_v20 = vmul.f32 %v4640_v26, %v4640_v26 }
 0x7eb   :  { %v2048_v21 = vmul.f32 0.044715, %v2016_v1  ;;  %v2017_v12 = vmul.f32 %v1985_v43, %v4633_v3 }
 0x7ec   :  { %v1921_v22 = vpop.f32.mrf.mxu1  ;;  %3412 = vtanh.f32 %v2110_v37  ;;  %v1987_v19 = vmul.f32 %v4644_v46, %v4644_v46  ;;  %v2111_v29 = vmul.f32 0.7978846, %v2079_v49  ;;  %v2018_v11 = vmul.f32 %v1986_v20, %v4640_v26 }
 0x7ed   :  { %v4652_v4 = vadd.f32 %v1921_v22, %v4596_v54  ;;  %v2080_v35 = vadd.f32 %v2048_v21, %v4626_v27  ;;  %v2049_v18 = vmul.f32 0.044715, %v2017_v12  ;;  %3414 = vtanh.f32 %v2109_v10 }
 0x7ee   :  { %v1923_v34 = vpop.f32.mrf.mxu1  ;;  %v2019_v14 = vmul.f32 %v1987_v19, %v4644_v46  ;;  %v2050_v48 = vmul.f32 0.044715, %v2018_v11  ;;  %3416 = vtanh.f32 %v2111_v29 }
 0x7ef   :  { %v1988_v62 = vmul.f32 %v4652_v4, %v4652_v4  ;;  %v4660_v5 = vadd.f32 %v1923_v34, %v4599_v33  ;;  %v2112_v59 = vmul.f32 0.7978846, %v2080_v35  ;;  %v2081_v38 = vadd.f32 %v2049_v18, %v4633_v3 }
 0x7f0   :  { %v1925_v63 = vpop.f32.mrf.mxu1  ;;  %v2051_v50 = vmul.f32 0.044715, %v2019_v14  ;;  %v2082_v51 = vadd.f32 %v2050_v48, %v4640_v26 }
 0x7f1   :  { %v2020_v32 = vmul.f32 %v1988_v62, %v4652_v4  ;;  %v1989_v56 = vmul.f32 %v4660_v5, %v4660_v5  ;;  %v4667_v6 = vadd.f32 %v1925_v63, %v4596_v54  ;;  %v2113_v9 = vmul.f32 0.7978846, %v2081_v38 }
 0x7f2   :  { %v1927_v30 = vpop.f32.mrf.mxu1  ;;  %v2083_v15 = vadd.f32 %v2051_v50, %v4644_v46  ;;  %3418 = vtanh.f32 %v2112_v59  ;;  %v2114_v7 = vmul.f32 0.7978846, %v2082_v51 }
 0x7f3   :  { %v2052_v16 = vmul.f32 0.044715, %v2020_v32  ;;  %v2021_v45 = vmul.f32 %v1989_v56, %v4660_v5  ;;  %v1990_v39 = vmul.f32 %v4667_v6, %v4667_v6  ;;  %v4675_v61 = vadd.f32 %v1927_v30, %v4599_v33 }
 0x7f4   :  { %v1931_v1 = vpop.f32.mrf.mxu1  ;;  %v2115_v43 = vmul.f32 0.7978846, %v2083_v15  ;;  %3420 = vtanh.f32 %v2113_v9 }
 0x7f5   :  { %v2084_v60 = vadd.f32 %v2052_v16, %v4652_v4  ;;  %v2053_v37 = vmul.f32 0.044715, %v2021_v45  ;;  %v2022_v49 = vmul.f32 %v1990_v39, %v4667_v6  ;;  %v3411_v10 = vpop.eup %3410  ;;  %v1991_v21 = vmul.f32 %v4675_v61, %v4675_v61 }
 0x7f6   :  { %v4682_v12 = vadd.f32 %v1931_v1, %v4596_v54  ;;  %v1933_v20 = vpop.f32.mrf.mxu1  ;;  %v2172_v22 = vadd.f32 1.0, %v3411_v10  ;;  %3422 = vtanh.f32 %v2114_v7 }
 0x7f7   :  { %v2116_v19 = vmul.f32 0.7978846, %v2084_v60  ;;  %v2085_v29 = vadd.f32 %v2053_v37, %v4660_v5  ;;  %v2054_v35 = vmul.f32 0.044715, %v2022_v49  ;;  %v2023_v18 = vmul.f32 %v1991_v21, %v4675_v61 }
 0x7f8   :  { %v1992_v11 = vmul.f32 %v4682_v12, %v4682_v12  ;;  %v4689_v34 = vadd.f32 %v1933_v20, %v4599_v33  ;;  %v1935_v14 = vpop.f32.mrf.mxu1  ;;  %v2204_v62 = vmul.f32 0.5, %v2172_v22  ;;  %3424 = vtanh.f32 %v2115_v43 }
 0x7f9   :  { %v2117_v59 = vmul.f32 0.7978846, %v2085_v29  ;;  %v4692_v38 = vadd.f32 %v1935_v14, %v4596_v54  ;;  %v3413_v48 = vpop.eup %3412  ;;  %v2086_v63 = vadd.f32 %v2054_v35, %v4667_v6  ;;  %v2055_v50 = vmul.f32 0.044715, %v2023_v18 }
 0x7fa   :  { %v2024_v32 = vmul.f32 %v1992_v11, %v4682_v12  ;;  %v1993_v56 = vmul.f32 %v4689_v34, %v4689_v34  ;;  %v1937_v9 = vpop.f32.mrf.mxu1  ;;  %v4699_v51 = vmul.f32 %v2204_v62, %v4602_v40  ;;  %v2174_v30 = vadd.f32 1.0, %v3413_v48  ;;  %v3415_v43 = vpop.eup %3414 }
 0x7fb   :  { %3426 = vtanh.f32 %v2116_v19  ;;  %v1994_v15 = vmul.f32 %v4692_v38, %v4692_v38  ;;  %v2118_v16 = vmul.f32 0.7978846, %v2086_v63  ;;  %v2087_v45 = vadd.f32 %v2055_v50, %v4675_v61  ;;  %v3417_v19 = vpop.eup %3416 }
 0x7fc   :  { %v2056_v39 = vmul.f32 0.044715, %v2024_v32  ;;  %v2025_v7 = vmul.f32 %v1993_v56, %v4689_v34  ;;  %v1941_v1 = vpop.f32.mrf.mxu1  ;;  %v2206_v60 = vmul.f32 0.5, %v2174_v30  ;;  %v4707_v49 = vadd.f32 %v1937_v9, %v4599_v33 }
 0x7fd   :  { %v2026_v37 = vmul.f32 %v1994_v15, %v4692_v38  ;;  %v4710_v40 = vadd.f32 %v1941_v1, %v4596_v54  ;;  %3428 = vtanh.f32 %v2117_v59  ;;  %v2119_v10 = vmul.f32 0.7978846, %v2087_v45 }
 0x7fe   :  { %v2088_v21 = vadd.f32 %v2056_v39, %v4682_v12  ;;  %v2057_v20 = vmul.f32 0.044715, %v2025_v7  ;;  %v1943_v22 = vpop.f32.mrf.mxu1  ;;  %3430 = vtanh.f32 %v2118_v16  ;;  %v1995_v35 = vmul.f32 %v4707_v49, %v4707_v49 }
 0x7ff   :  { %v2058_v29 = vmul.f32 0.044715, %v2026_v37  ;;  %v1996_v18 = vmul.f32 %v4710_v40, %v4710_v40  ;;  %v4718_v11 = vmul.f32 %v2206_v60, %v4613_v44  ;;  %v4722_v59 = vadd.f32 %v1943_v22, %v4599_v33  ;;  %v4724_v63 = vpop.eup %3418 }
 0x800   :  { %v2120_v14 = vmul.f32 0.7978846, %v2088_v21  ;;  %v2089_v62 = vadd.f32 %v2057_v20, %v4689_v34  ;;  %v1945_v48 = vpop.f32.mrf.mxu1  ;;  %3432 = vtanh.f32 %v2119_v10  ;;  %v2027_v32 = vmul.f32 %v1995_v35, %v4707_v49 }
 0x801   :  { %v2090_v50 = vadd.f32 %v2058_v29, %v4692_v38  ;;  %v2028_v56 = vmul.f32 %v1996_v18, %v4710_v40  ;;  %v1997_v44 = vmul.f32 %v4722_v59, %v4722_v59  ;;  %v4732_v30 = vadd.f32 %v1945_v48, %v4596_v54  ;;  %v4734_v16 = vpop.eup %3420 }
 0x802   :  { %3434 = vtanh.f32 %v2120_v14  ;;  %v2121_v9 = vmul.f32 0.7978846, %v2089_v62  ;;  %v1947_v15 = vpop.f32.mrf.mxu1  ;;  %v2059_v39 = vmul.f32 0.044715, %v2027_v32  ;;  %v2173_v20 = vadd.f32 1.0, %v3415_v43 }
 0x803   :  { %v2122_v45 = vmul.f32 0.7978846, %v2090_v50  ;;  %v2060_v7 = vmul.f32 0.044715, %v2028_v56  ;;  %v4737_v1 = vadd.f32 %v1947_v15, %v4599_v33  ;;  %v4739_v60 = vpop.eup %3422  ;;  %v2029_v37 = vmul.f32 %v1997_v44, %v4722_v59 }
 0x804   :  { %3436 = vtanh.f32 %v2121_v9  ;;  %v1998_v10 = vmul.f32 %v4732_v30, %v4732_v30  ;;  %v1951_v21 = vpop.f32.mrf.mxu1  ;;  %v2091_v22 = vadd.f32 %v2059_v39, %v4707_v49  ;;  %v2175_v50 = vadd.f32 1.0, %v3417_v19 }
 0x805   :  { %3438 = vtanh.f32 %v2122_v45  ;;  %v2092_v29 = vadd.f32 %v2060_v7, %v4710_v40  ;;  %v1999_v35 = vmul.f32 %v4737_v1, %v4737_v1  ;;  %v3425_v18 = vpop.eup %3424  ;;  %v2061_v14 = vmul.f32 0.044715, %v2029_v37 }
 0x806   :  { %v2030_v62 = vmul.f32 %v1998_v10, %v4732_v30  ;;  %v4750_v48 = vadd.f32 %v1951_v21, %v4596_v54  ;;  %v1953_v32 = vpop.f32.mrf.mxu1  ;;  %v2123_v56 = vmul.f32 0.7978846, %v2091_v22  ;;  %v2205_v44 = vmul.f32 0.5, %v2173_v20 }
 0x807   :  { %v2124_v9 = vmul.f32 0.7978846, %v2092_v29  ;;  %v2031_v43 = vmul.f32 %v1999_v35, %v4737_v1  ;;  %v2093_v45 = vadd.f32 %v2061_v14, %v4722_v59  ;;  %v2207_v37 = vmul.f32 0.5, %v2175_v50 }
 0x808   :  { %v4753_v15 = vpop.eup %3426  ;;  %v2062_v39 = vmul.f32 0.044715, %v2030_v62  ;;  %v2000_v7 = vmul.f32 %v4750_v48, %v4750_v48  ;;  %v1955_v10 = vpop.f32.mrf.mxu1  ;;  %v2268_v21 = vpack.c.bf16 %v4718_v11, %v4699_v51  ;;  %3440 = vtanh.f32 %v2123_v56 }
 0x809   :  { %v2063_v19 = vmul.f32 0.044715, %v2031_v43  ;;  %v4761_v22 = vadd.f32 %v1953_v32, %v4599_v33  ;;  %v2125_v29 = vmul.f32 0.7978846, %v2093_v45  ;;  %v2237_v14 = vmul.f32 %v2205_v44, %v4607_v55 }
 0x80a   :  { %v2094_v20 = vadd.f32 %v2062_v39, %v4732_v30  ;;  %v2032_v35 = vmul.f32 %v2000_v7, %v4750_v48  ;;  %v1957_v62 = vpop.f32.mrf.mxu1  ;;  %v4766_v52 = vpop.eup %3428  ;;  %v2239_v8 = vmul.f32 %v2207_v37, %v4619_v2  ;;  %v4773_v11 = vadd.f32 %v1955_v10, %v4596_v54 }
 0x80b   :  { %v2095_v50 = vadd.f32 %v2063_v19, %v4737_v1  ;;  %v2001_v51 = vmul.f32 %v4761_v22, %v4761_v22  ;;  %v4775_v32 = vpop.eup %3430  ;;  %3442 = vtanh.f32 %v2124_v9  ;;  %v4778_v55 = vadd.f32 %v1957_v62, %v4599_v33 }
 0x80c   :  { %v2126_v56 = vmul.f32 0.7978846, %v2094_v20  ;;  %v2064_v43 = vmul.f32 0.044715, %v2032_v35  ;;  %v1961_v44 = vpop.f32.mrf.mxu1  ;;  %3444 = vtanh.f32 %v2125_v29  ;;  %v2269_v45 = vpack.c.bf16 %v2239_v8, %v2237_v14 }
 0x80d   :  { %v2033_v39 = vmul.f32 %v2001_v51, %v4761_v22  ;;  %v2002_v2 = vmul.f32 %v4773_v11, %v4773_v11  ;;  %v4783_v7 = vpop.eup %3432  ;;  %v2127_v37 = vmul.f32 0.7978846, %v2095_v50  ;;  %v2003_v9 = vmul.f32 %v4778_v55, %v4778_v55 }
 0x80e   :  { %v2096_v10 = vadd.f32 %v2064_v43, %v4750_v48  ;;  %v4789_v19 = vadd.f32 %v1961_v44, %v4596_v54  ;;  %v1963_v20 = vpop.f32.mrf.mxu1  ;;  %3446 = vtanh.f32 %v2126_v56  ;;  %2444 = vmatprep.mubr.bf16.mxu0 %v2269_v45  ;;  %v2177_v14 = vadd.f32 1.0, %v4734_v16 }
 0x80f   :  { %v4791_v35 = vpop.eup %3434  ;;  %v2065_v8 = vmul.f32 0.044715, %v2033_v39  ;;  %v2034_v29 = vmul.f32 %v2002_v2, %v4773_v11  ;;  %2445 = vmatmul.mubr.bf16.vlgmr.msra.gmra.mxu0 %v2268_v21  ;;  %v2035_v50 = vmul.f32 %v2003_v9, %v4778_v55  ;;  %v2179_v43 = vadd.f32 1.0, %v3425_v18 }
 0x810   :  { %v2128_v62 = vmul.f32 0.7978846, %v2096_v10  ;;  %v2004_v51 = vmul.f32 %v4789_v19, %v4789_v19  ;;  %v1965_v44 = vpop.f32.mrf.mxu1  ;;  %v2209_v45 = vmul.f32 0.5, %v2177_v14  ;;  %v4802_v39 = vadd.f32 %v1963_v20, %v4599_v33 }
 0x811   :  { %v4798_v41 = vpop.eup %3436  ;;  %v2097_v25 = vadd.f32 %v2065_v8, %v4761_v22  ;;  %v2066_v56 = vmul.f32 0.044715, %v2034_v29  ;;  %3448 = vtanh.f32 %v2127_v37  ;;  %v2067_v16 = vmul.f32 0.044715, %v2035_v50 }
 0x812   :  { %v4804_v2 = vpop.eup %3438  ;;  %v2036_v21 = vmul.f32 %v2004_v51, %v4789_v19  ;;  %v2211_v10 = vmul.f32 0.5, %v2179_v43  ;;  %v1967_v9 = vpop.f32.mrf.mxu1  ;;  %v2241_v57 = vmul.f32 %v2209_v45, %v4633_v3  ;;  %v2005_v8 = vmul.f32 %v4802_v39, %v4802_v39 }
 0x813   :  { %v2129_v0 = vmul.f32 0.7978846, %v2097_v25  ;;  %v2098_v18 = vadd.f32 %v2066_v56, %v4773_v11  ;;  %v2099_v29 = vadd.f32 %v2067_v16, %v4778_v55  ;;  %v2176_v37 = vadd.f32 1.0, %v4724_v63 }
 0x814   :  { %v2068_v20 = vmul.f32 0.044715, %v2036_v21  ;;  %v2243_v14 = vmul.f32 %v2211_v10, %v4644_v46  ;;  %v1971_v50 = vpop.f32.mrf.mxu1  ;;  %3450 = vtanh.f32 %v2128_v62  ;;  %v2037_v51 = vmul.f32 %v2005_v8, %v4802_v39 }
 0x815   :  { %v2178_v25 = vadd.f32 1.0, %v4739_v60  ;;  %v4816_v43 = vpop.eup %3440  ;;  %v2130_v56 = vmul.f32 0.7978846, %v2098_v18  ;;  %v2131_v3 = vmul.f32 0.7978846, %v2099_v29  ;;  %v2208_v28 = vmul.f32 0.5, %v2176_v37 }
 0x816   :  { %v2271_v45 = vpack.c.bf16 %v2243_v14, %v2241_v57  ;;  %v2100_v13 = vadd.f32 %v2068_v20, %v4789_v19  ;;  %v2069_v16 = vmul.f32 0.044715, %v2037_v51  ;;  %v4820_v46 = vadd.f32 %v1965_v44, %v4596_v54  ;;  %v1973_v63 = vpop.f32.mrf.mxu1 }
 0x817   :  { %v2210_v21 = vmul.f32 0.5, %v2178_v25  ;;  %3452 = vtanh.f32 %v2129_v0  ;;  %v2240_v62 = vmul.f32 %v2208_v28, %v4626_v27  ;;  %v4824_v60 = vadd.f32 %v1967_v9, %v4599_v33 }
 0x818   :  { %2452 = vmatprep.mubr.bf16.mxu0 %v2271_v45  ;;  %v4826_v10 = vpop.eup %3442  ;;  %v2101_v57 = vadd.f32 %v2069_v16, %v4802_v39  ;;  %v2006_v8 = vmul.f32 %v4820_v46, %v4820_v46  ;;  %v4833_v44 = vadd.f32 %v1971_v50, %v4596_v54  ;;  %3454 = vtanh.f32 %v2130_v56  ;;  %v1975_v14 = vpop.f32.mrf.mxu1 }
 0x819   :  { %v2242_v18 = vmul.f32 %v2210_v21, %v4640_v26  ;;  %v4835_v29 = vpop.eup %3444  ;;  %v2007_v28 = vmul.f32 %v4824_v60, %v4824_v60  ;;  %v2181_v0 = vadd.f32 1.0, %v4766_v52  ;;  %v2183_v27 = vadd.f32 1.0, %v4783_v7 }
 0x81a   :  { %3456 = vtanh.f32 %v2131_v3  ;;  %v2132_v9 = vmul.f32 0.7978846, %v2100_v13  ;;  %v2038_v26 = vmul.f32 %v2006_v8, %v4820_v46  ;;  %v4846_v56 = vadd.f32 %v1973_v63, %v4599_v33 }
 0x81b   :  { %v2270_v20 = vpack.c.bf16 %v2242_v18, %v2240_v62  ;;  %v4842_v37 = vpop.eup %3446  ;;  %v2039_v50 = vmul.f32 %v2007_v28, %v4824_v60  ;;  %v2213_v51 = vmul.f32 0.5, %v2181_v0  ;;  %v2215_v25 = vmul.f32 0.5, %v2183_v27  ;;  %v1977_v28 = vpop.f32.mrf.mxu1 }
 0x81c   :  { %v2133_v45 = vmul.f32 0.7978846, %v2101_v57  ;;  %v2070_v52 = vmul.f32 0.044715, %v2038_v26  ;;  %v2008_v7 = vmul.f32 %v4833_v44, %v4833_v44  ;;  %v2180_v13 = vadd.f32 1.0, %v4753_v15 }
 0x81d   :  { %2453 = vmatmul.mubr.bf16.gmra.mxu0 %v2270_v20  ;;  %v2071_v3 = vmul.f32 0.044715, %v2039_v50  ;;  %v2245_v16 = vmul.f32 %v2213_v51, %v4660_v5  ;;  %v2247_v21 = vmul.f32 %v2215_v25, %v4675_v61  ;;  %v2009_v62 = vmul.f32 %v4846_v56, %v4846_v56 }
 0x81e   :  { %v3449_v18 = vpop.eup %3448  ;;  %3458 = vtanh.f32 %v2132_v9  ;;  %v2102_v63 = vadd.f32 %v2070_v52, %v4820_v46  ;;  %v2182_v57 = vadd.f32 1.0, %v4775_v32  ;;  %v2212_v8 = vmul.f32 0.5, %v2180_v13 }
 0x81f   :  { %v2103_v0 = vadd.f32 %v2071_v3, %v4824_v60  ;;  %v2273_v27 = vpack.c.bf16 %v2247_v21, %v2245_v16  ;;  %v2041_v15 = vmul.f32 %v2009_v62, %v4846_v56  ;;  %v4860_v5 = vadd.f32 %v1975_v14, %v4596_v54 }
 0x820   :  { %3460 = vtanh.f32 %v2133_v45  ;;  %v2040_v61 = vmul.f32 %v2008_v7, %v4833_v44  ;;  %v2214_v20 = vmul.f32 0.5, %v2182_v57  ;;  %v4868_v51 = vadd.f32 %v1977_v28, %v4599_v33 }
 0x821   :  { %v4863_v26 = vpop.eup %3450  ;;  %v2135_v9 = vmul.f32 0.7978846, %v2103_v0  ;;  %2460 = vmatprep.mubr.bf16.mxu0 %v2273_v27  ;;  %v2073_v50 = vmul.f32 0.044715, %v2041_v15  ;;  %v2010_v32 = vmul.f32 %v4860_v5, %v4860_v5  ;;  %v2134_v25 = vmul.f32 0.7978846, %v2102_v63 }
 0x822   :  { %v2244_v52 = vmul.f32 %v2212_v8, %v4652_v4  ;;  %v2246_v54 = vmul.f32 %v2214_v20, %v4667_v6  ;;  %v2185_v14 = vadd.f32 1.0, %v4798_v41  ;;  %v2011_v13 = vmul.f32 %v4868_v51, %v4868_v51 }
 0x823   :  { %3462 = vtanh.f32 %v2135_v9  ;;  %v2105_v45 = vadd.f32 %v2073_v50, %v4846_v56  ;;  %v2042_v7 = vmul.f32 %v2010_v32, %v4860_v5  ;;  %v2072_v16 = vmul.f32 0.044715, %v2040_v61 }
 0x824   :  { %v3453_v3 = vpop.eup %3452  ;;  %v2272_v21 = vpack.c.bf16 %v2246_v54, %v2244_v52  ;;  %v2187_v33 = vadd.f32 1.0, %v4816_v43  ;;  %v2217_v62 = vmul.f32 0.5, %v2185_v14  ;;  %v2043_v6 = vmul.f32 %v2011_v13, %v4868_v51 }
 0x825   :  { %v2137_v63 = vmul.f32 0.7978846, %v2105_v45  ;;  %v2074_v4 = vmul.f32 0.044715, %v2042_v7  ;;  %v2184_v41 = vadd.f32 1.0, %v4791_v35  ;;  %v3455_v57 = vpop.eup %3454  ;;  %3464 = vtanh.f32 %v2134_v25 }
 0x826   :  { %2461 = vmatmul.mubr.bf16.gmra.mxu0 %v2272_v21  ;;  %v2219_v8 = vmul.f32 0.5, %v2187_v33  ;;  %v2186_v28 = vadd.f32 1.0, %v4804_v2  ;;  %v2189_v0 = vadd.f32 1.0, %v4835_v29  ;;  %v2075_v61 = vmul.f32 0.044715, %v2043_v6 }
 0x827   :  { %v3457_v27 = vpop.eup %3456  ;;  %v2106_v15 = vadd.f32 %v2074_v4, %v4860_v5  ;;  %v2249_v43 = vmul.f32 %v2217_v62, %v4689_v34  ;;  %v2216_v20 = vmul.f32 0.5, %v2184_v41  ;;  %v2191_v32 = vadd.f32 1.0, %v3449_v18 }
 0x828   :  { %v2251_v9 = vmul.f32 %v2219_v8, %v4707_v49  ;;  %v2218_v50 = vmul.f32 0.5, %v2186_v28  ;;  %v2221_v35 = vmul.f32 0.5, %v2189_v0  ;;  %v2104_v25 = vadd.f32 %v2072_v16, %v4833_v44 }
 0x829   :  { %3466 = vtanh.f32 %v2137_v63  ;;  %v2107_v52 = vadd.f32 %v2075_v61, %v4868_v51  ;;  %v2248_v2 = vmul.f32 %v2216_v20, %v4682_v12  ;;  %v2223_v14 = vmul.f32 0.5, %v2191_v32 }
 0x82a   :  { %v2275_v29 = vpack.c.bf16 %v2251_v9, %v2249_v43  ;;  %v2250_v54 = vmul.f32 %v2218_v50, %v4692_v38  ;;  %v2188_v45 = vadd.f32 1.0, %v4826_v10  ;;  %v2138_v7 = vmul.f32 0.7978846, %v2106_v15 }
 0x82b   :  { %v3459_v34 = vpop.eup %3458  ;;  %v2139_v13 = vmul.f32 0.7978846, %v2107_v52  ;;  %v2253_v49 = vmul.f32 %v2221_v35, %v4722_v59  ;;  %v2190_v18 = vadd.f32 1.0, %v4842_v37  ;;  %v2255_v21 = vmul.f32 %v2223_v14, %v4737_v1 }
 0x82c   :  { %2468 = vmatprep.mubr.bf16.mxu0 %v2275_v29  ;;  %v2274_v16 = vpack.c.bf16 %v2250_v54, %v2248_v2  ;;  %v2193_v33 = vadd.f32 1.0, %v3453_v3  ;;  %v2195_v62 = vadd.f32 1.0, %v3457_v27  ;;  %v2136_v63 = vmul.f32 0.7978846, %v2104_v25 }
 0x82d   :  { %v3461_v12 = vpop.eup %3460  ;;  %3468 = vtanh.f32 %v2139_v13  ;;  %v2222_v38 = vmul.f32 0.5, %v2190_v18  ;;  %v2277_v4 = vpack.c.bf16 %v2255_v21, %v2253_v49  ;;  %v2220_v10 = vmul.f32 0.5, %v2188_v45 }
 0x82e   :  { %2469 = vmatmul.mubr.bf16.gmra.mxu0 %v2274_v16  ;;  %v2225_v6 = vmul.f32 0.5, %v2193_v33  ;;  %v2227_v41 = vmul.f32 0.5, %v2195_v62  ;;  %3470 = vtanh.f32 %v2138_v7  ;;  %v2194_v28 = vadd.f32 1.0, %v3455_v57 }
 0x82f   :  { %2476 = vmatprep.mubr.bf16.mxu0 %v2277_v4  ;;  %v2254_v59 = vmul.f32 %v2222_v38, %v4732_v30  ;;  %v2197_v3 = vadd.f32 1.0, %v3461_v12  ;;  %3472 = vtanh.f32 %v2136_v63  ;;  %v2252_v27 = vmul.f32 %v2220_v10, %v4710_v40 }
 0x830   :  { %v3463_v8 = vpop.eup %3462  ;;  %v2259_v37 = vmul.f32 %v2227_v41, %v4778_v55  ;;  %v2257_v1 = vmul.f32 %v2225_v6, %v4761_v22  ;;  %v2192_v15 = vadd.f32 1.0, %v4863_v26  ;;  %v2226_v50 = vmul.f32 0.5, %v2194_v28  ;;  %v3279_v6 = vld [vmem:[%s4988_s8 + $0x10] sm:$0xff]   ;;  %v3280_v41 = vld [vmem:[%s4988_s8 + $0x8] sm:$0xff]  }
 0x831   :  { %v2199_v0 = vadd.f32 1.0, %v3463_v8  ;;  %v2276_v9 = vpack.c.bf16 %v2254_v59, %v2252_v27  ;;  %v2229_v32 = vmul.f32 0.5, %v2197_v3  ;;  %v2196_v2 = vadd.f32 1.0, %v3459_v34  ;;  %v3281_v8 = vld [vmem:[%s4988_s8] sm:$0xff]  }
 0x832   :  { %v3465_v61 = vpop.eup %3464  ;;  %v2279_v43 = vpack.c.bf16 %v2259_v37, %v2257_v1  ;;  %v2224_v30 = vmul.f32 0.5, %v2192_v15  ;;  %v2258_v22 = vmul.f32 %v2226_v50, %v4773_v11 }
 0x833   :  { %v2231_v20 = vmul.f32 0.5, %v2199_v0  ;;  %v2198_v57 = vadd.f32 1.0, %v3465_v61  ;;  %v2261_v25 = vmul.f32 %v2229_v32, %v4802_v39  ;;  %v2228_v18 = vmul.f32 0.5, %v2196_v2 }
 0x834   :  { %v2256_v26 = vmul.f32 %v2224_v30, %v4750_v48 }
 0x835   :  { %v2263_v55 = vmul.f32 %v2231_v20, %v4824_v60  ;;  %v2230_v45 = vmul.f32 0.5, %v2198_v57  ;;  %v2260_v48 = vmul.f32 %v2228_v18, %v4789_v19  ;;  %v3275_v19 = vld [vmem:[%s4988_s8 + $0x30] sm:$0xff]  }
 0x836   :  { %v3467_v35 = vpop.eup %3466  ;;  %2477 = vmatmul.mubr.bf16.gmra.mxu0 %v2276_v9  ;;  %v2278_v14 = vpack.c.bf16 %v2258_v22, %v2256_v26 }
 0x837   :  { %2484 = vmatprep.mubr.bf16.mxu0 %v2279_v43  ;;  %v2201_v40 = vadd.f32 1.0, %v3467_v35  ;;  %v2281_v29 = vpack.c.bf16 %v2263_v55, %v2261_v25  ;;  %v2262_v39 = vmul.f32 %v2230_v45, %v4820_v46  ;;  %v3274_v46 = vld [vmem:[%s4988_s8 + $0x38] sm:$0xff]  }
 0x839   :  { %v2233_v13 = vmul.f32 0.5, %v2201_v40  ;;  %v2280_v62 = vpack.c.bf16 %v2262_v39, %v2260_v48 }
 0x83a   :  { %v3469_v52 = vpop.eup %3468 }
 0x83b   :  { %v2203_v54 = vadd.f32 1.0, %v3469_v52  ;;  %v3471_v7 = vpop.eup %3470  ;;  %v2265_v21 = vmul.f32 %v2233_v13, %v4846_v56  ;;  %v3277_v56 = vld [vmem:[%s4988_s8 + $0x20] sm:$0xff]   ;;  %v2527_v52 = vsub.s32 6, %v3587_v17 }
 0x83c   :  { %v3473_v60 = vpop.eup %3472  ;;  %v2202_v16 = vadd.f32 1.0, %v3471_v7 }
 0x83d   :  { %v2235_v49 = vmul.f32 0.5, %v2203_v54  ;;  %v2200_v34 = vadd.f32 1.0, %v3473_v60 }
 0x83e   :  { %2485 = vmatmul.mubr.bf16.gmra.mxu0 %v2278_v14  ;;  %v2234_v12 = vmul.f32 0.5, %v2202_v16 }
 0x83f   :  { %2492 = vmatprep.mubr.bf16.mxu0 %v2281_v29  ;;  %v2267_v11 = vmul.f32 %v2235_v49, %v4868_v51  ;;  %v2232_v63 = vmul.f32 0.5, %v2200_v34  ;;  %v3477_v51 = vmov 0.0  }
 0x840   :  { %v2266_v38 = vmul.f32 %v2234_v12, %v4860_v5  ;;  %3155 = vmatprep.subr.bf16.mxu1 %v3477_v51  ;;  %v3278_v5 = vld [vmem:[%s4988_s8 + $0x18] sm:$0xff]   ;;  %3171 = vmatprep.mubr.msk.bf16.mxu1 %vm3478_vm0, %v3477_v51 }
 0x841   :  { %v2283_v33 = vpack.c.bf16 %v2267_v11, %v2265_v21  ;;  %v2264_v4 = vmul.f32 %v2232_v63, %v4833_v44  ;;  %3156 = vmatpush3.bf16.msra.mxu1 %v3274_v46  ;;  %v3276_v44 = vld [vmem:[%s4988_s8 + $0x28] sm:$0xff]   ;;  %v4939_v11 = vld [vmem:[%s4980_s9] sm:$0xff] }
 0x842   :  { %3157 = vmatprep.subr.bf16.mxu1 %v3477_v51  ;;  %v4942_v39 = vrot.slane %v4939_v11, %v2527_v52 }
 0x843   :  { %v2282_v10 = vpack.c.bf16 %v2266_v38, %v2264_v4  ;;  %v5054_v4 = vld [vmem:[#allocation3_spill] sm:$0xff] }
 0x845   :  { %3158 = vmatpush3.bf16.msra.mxu1 %v3275_v19 }
 0x846   :  { %2493 = vmatmul.mubr.bf16.gmra.mxu0 %v2280_v62  ;;  %3159 = vmatprep.subr.bf16.mxu1 %v3477_v51  ;;  %v5053_v62 = vld [vmem:[#allocation4_spill] sm:$0xff] }
 0x847   :  { %2500 = vmatprep.mubr.bf16.mxu0 %v2283_v33 }
 0x849   :  { %3160 = vmatpush3.bf16.msra.mxu1 %v3276_v44 }
 0x84a   :  { %3161 = vmatprep.subr.bf16.mxu1 %v3477_v51 }
 0x84d   :  { %3162 = vmatpush3.bf16.msra.mxu1 %v3277_v56 }
 0x84e   :  { %2501 = vmatmul.mubr.bf16.gmra.mxu0 %v2282_v10  ;;  %3163 = vmatprep.subr.bf16.mxu1 %v3477_v51 }
 0x851   :  { %3164 = vmatpush3.bf16.msra.mxu1 %v3278_v5 }
 0x852   :  { %3165 = vmatprep.subr.bf16.mxu1 %v3477_v51 }
 0x855   :  { %3166 = vmatpush3.bf16.msra.mxu1 %v3279_v6 }
 0x856   :  { %3167 = vmatprep.subr.bf16.mxu1 %v3477_v51 }
 0x859   :  { %3168 = vmatpush3.bf16.msra.mxu1 %v3280_v41 }
 0x85a   :  { %3169 = vmatprep.subr.bf16.mxu1 %v3477_v51 }
 0x85d   :  { %3170 = vmatpush3.bf16.msra.mxu1 %v3281_v8 }
 0x8cf   :  { %v2938_v59 = vpop.f32.mrf.mxu0 }
 0x8d1   :  { %v2939_v37 = vpop.f32.mrf.mxu0 }
 0x8d2   :  { %v2940_v29 = vadd.f32 %v2939_v37, %v2938_v59 }
 0x8d3   :  { %v2941_v28 = vpop.f32.mrf.mxu0 }
 0x8d4   :  { %v2509_v48 = vadd.f32 %v2940_v29, %v4263_v58  ;;  %v5057_v29 = vld [vmem:[#allocation7_spill] sm:$0xff] }
 0x8d5   :  { %v2942_v1 = vpop.f32.mrf.mxu0 }
 0x8d6   :  { %v2943_v57 = vadd.f32 %v2942_v1, %v2941_v28  ;;  %v5055_v28 = vld [vmem:[#allocation5_spill] sm:$0xff] }
 0x8d8   :  { %v2510_v13 = vadd.f32 %v2943_v57, %v4269_v53 }
 0x8da   :  { %v2530_v63 = vadd.f32 %v4942_v39, %v2510_v13 }
 0x8dd   :  { %v2944_v3 = vpop.f32.mrf.mxu0 }
 0x8df   :  { %v2945_v0 = vpop.f32.mrf.mxu0 }
 0x8e0   :  { %v2946_v26 = vadd.f32 %v2945_v0, %v2944_v3 }
 0x8e1   :  { %v2947_v27 = vpop.f32.mrf.mxu0 }
 0x8e2   :  { %v2511_v16 = vadd.f32 %v2946_v26, %v4275_v23 }
 0x8e3   :  { %v2948_v15 = vpop.f32.mrf.mxu0 }
 0x8e4   :  { %v2949_v22 = vadd.f32 %v2948_v15, %v2947_v27 }
 0x8e6   :  { %v2950_v61 = vpop.f32.mrf.mxu0  ;;  %v2512_v45 = vadd.f32 %v2949_v22, %v4282_v31 }
 0x8e8   :  { %v2951_v43 = vpop.f32.mrf.mxu0  ;;  %v2532_v34 = vadd.f32 %v4942_v39, %v2512_v45 }
 0x8e9   :  { %v2952_v54 = vadd.f32 %v2951_v43, %v2950_v61  ;;  %v5056_v43 = vld [vmem:[#allocation6_spill] sm:$0xff] }
 0x8ea   :  { %v2953_v20 = vpop.f32.mrf.mxu0 }
 0x8eb   :  { %v2513_v53 = vadd.f32 %v2952_v54, %v4292_v47  ;;  %v2529_v47 = vadd.f32 %v4942_v39, %v2509_v48 }
 0x8ec   :  { %v2954_v9 = vpop.f32.mrf.mxu0 }
 0x8ed   :  { %v2955_v25 = vadd.f32 %v2954_v9, %v2953_v20  ;;  %v2533_v51 = vadd.f32 %v4942_v39, %v2513_v53  ;;  %v2545_v5 = vadd.f32 %v2530_v63, %v2529_v47 }
 0x8ee   :  { %v2956_v50 = vpop.f32.mrf.mxu0 }
 0x8ef   :  { %v2514_v49 = vadd.f32 %v2955_v25, %v4306_v42  ;;  %v2546_v15 = vrot.slane %v2545_v5, 4 }
 0x8f0   :  { %v2957_v32 = vpop.f32.mrf.mxu0 }
 0x8f1   :  { %v2958_v7 = vadd.f32 %v2957_v32, %v2956_v50  ;;  %v2534_v38 = vadd.f32 %v4942_v39, %v2514_v49  ;;  %v2547_v25 = vadd.f32 %v2546_v15, %v2545_v5 }
 0x8f2   :  { %v2959_v35 = vpop.f32.mrf.mxu0 }
 0x8f3   :  { %v2515_v33 = vadd.f32 %v2958_v7, %v4318_v36  ;;  %v2559_v6 = vadd.f32 %v2534_v38, %v2533_v51  ;;  %v5059_v51 = vld [vmem:[#allocation9_spill] sm:$0xff] }
 0x8f4   :  { %v2960_v30 = vpop.f32.mrf.mxu0 }
 0x8f5   :  { %v2961_v2 = vadd.f32 %v2960_v30, %v2959_v35  ;;  %v2535_v56 = vadd.f32 %v4942_v39, %v2515_v33  ;;  %v2560_v61 = vrot.slane %v2559_v6, 4 }
 0x8f6   :  { %v2962_v55 = vpop.f32.mrf.mxu0 }
 0x8f7   :  { %v2516_v21 = vadd.f32 %v2961_v2, %v4331_v24  ;;  %v2531_v24 = vadd.f32 %v4942_v39, %v2511_v16  ;;  %v2548_v16 = vrot.slane %v2547_v25, 2 }
 0x8f8   :  { %v2963_v40 = vpop.f32.mrf.mxu0 }
 0x8f9   :  { %v2964_v18 = vadd.f32 %v2963_v40, %v2962_v55  ;;  %v2536_v58 = vadd.f32 %v4942_v39, %v2516_v21  ;;  %v2552_v44 = vadd.f32 %v2532_v34, %v2531_v24  ;;  %v2561_v40 = vadd.f32 %v2560_v61, %v2559_v6  ;;  %v5060_v6 = vld [vmem:[#allocation10_spill] sm:$0xff] }
 0x8fa   :  { %v2965_v14 = vpop.f32.mrf.mxu0 }
 0x8fb   :  { %v2517_v23 = vadd.f32 %v2964_v18, %v5054_v4  ;;  %v2566_v59 = vadd.f32 %v2536_v58, %v2535_v56  ;;  %v2553_v27 = vrot.slane %v2552_v44, 4  ;;  %v5058_v18 = vld [vmem:[#allocation8_spill] sm:$0xff]  ;;  %v2562_v21 = vrot.slane %v2561_v40, 2 }
 0x8fc   :  { %v2966_v60 = vpop.f32.mrf.mxu0 }
 0x8fd   :  { %v2967_v31 = vadd.f32 %v2966_v60, %v2965_v14  ;;  %v2537_v41 = vadd.f32 %v4942_v39, %v2517_v23  ;;  %v2567_v50 = vrot.slane %v2566_v59, 4  ;;  %v2554_v57 = vadd.f32 %v2553_v27, %v2552_v44 }
 0x8fe   :  { %v2968_v42 = vpop.f32.mrf.mxu0  ;;  %v2549_v23 = vadd.f32 %v2548_v16, %v2547_v25 }
 0x8ff   :  { %v2518_v12 = vadd.f32 %v2967_v31, %v5053_v62  ;;  %v2568_v2 = vadd.f32 %v2567_v50, %v2566_v59  ;;  %v2555_v49 = vrot.slane %v2554_v57, 2 }
 0x900   :  { %v2969_v10 = vpop.f32.mrf.mxu0 }
 0x901   :  { %v2538_v46 = vadd.f32 %v4942_v39, %v2518_v12  ;;  %v2970_v36 = vadd.f32 %v2969_v10, %v2968_v42  ;;  %v2569_v53 = vrot.slane %v2568_v2, 2  ;;  %v2556_v63 = vadd.f32 %v2555_v49, %v2554_v57 }
 0x902   :  { %v2971_v19 = vpop.f32.mrf.mxu0  ;;  %v2563_v10 = vadd.f32 %v2562_v21, %v2561_v40 }
 0x903   :  { %v2573_v37 = vadd.f32 %v2538_v46, %v2537_v41  ;;  %v2519_v1 = vadd.f32 %v2970_v36, %v5055_v28  ;;  %v2570_v58 = vadd.f32 %v2569_v53, %v2568_v2  ;;  %v2557_v44 = vrot.slane %v2556_v63, 1 }
 0x904   :  { %v2972_v8 = vpop.f32.mrf.mxu0  ;;  %v2564_v59 = vrot.slane %v2563_v10, 1 }
 0x905   :  { %v2973_v3 = vadd.f32 %v2972_v8, %v2971_v19  ;;  %v2574_v35 = vrot.slane %v2573_v37, 4  ;;  %v2539_v30 = vadd.f32 %v4942_v39, %v2519_v1  ;;  %v2550_v8 = vrot.slane %v2549_v23, 1 }
 0x906   :  { %v2974_v0 = vpop.f32.mrf.mxu0  ;;  %v2558_v27 = vadd.f32 %v2557_v44, %v2556_v63 }
 0x907   :  { %v2520_v20 = vadd.f32 %v2973_v3, %v5056_v43  ;;  %v2575_v45 = vadd.f32 %v2574_v35, %v2573_v37  ;;  %v2571_v37 = vrot.slane %v2570_v58, 1 }
 0x908   :  { %v2975_v9 = vpop.f32.mrf.mxu0 }
 0x909   :  { %v2976_v32 = vadd.f32 %v2975_v9, %v2974_v0  ;;  %v2540_v55 = vadd.f32 %v4942_v39, %v2520_v20  ;;  %v2576_v62 = vrot.slane %v2575_v45, 2  ;;  %v2565_v20 = vadd.f32 %v2564_v59, %v2563_v10 }
 0x90a   :  { %v2977_v22 = vpop.f32.mrf.mxu0  ;;  %v2551_v9 = vadd.f32 %v2550_v8, %v2549_v23  ;;  %v2572_v50 = vadd.f32 %v2571_v37, %v2570_v58  ;;  %v2627_v23 = vsub.s32 7, %v3587_v17 }
 0x90b   :  { %v2580_v52 = vadd.f32 %v2540_v55, %v2539_v30  ;;  %v2521_v54 = vadd.f32 %v2976_v32, %v5057_v29  ;;  %v2577_v19 = vadd.f32 %v2576_v62, %v2575_v45  ;;  %v2602_v55 = vpack.c.bf16 %v2558_v27, %v2558_v27 }
 0x90c   :  { %v2978_v26 = vpop.f32.mrf.mxu0  ;;  %v2603_v25 = vpack.c.bf16 %v2565_v20, %v2565_v20  ;;  %v2628_v10 = vrot.slane %v4939_v11, %v2627_v23 }
 0x90d   :  { %v2979_v14 = vadd.f32 %v2978_v26, %v2977_v22  ;;  %v2581_v7 = vrot.slane %v2580_v52, 4  ;;  %v2541_v42 = vadd.f32 %v4942_v39, %v2521_v54  ;;  %v2578_v0 = vrot.slane %v2577_v19, 1 }
 0x90e   :  { %v2980_v13 = vpop.f32.mrf.mxu0  ;;  %v2604_v26 = vpack.c.bf16 %v2572_v50, %v2572_v50  ;;  %v2638_v29 = vunpack.c.l.b16 %v2602_v55  ;;  %v2639_v45 = vunpack.c.l.b16 %v2603_v25 }
 0x90f   :  { %v2522_v60 = vadd.f32 %v2979_v14, %v5058_v18  ;;  %v2582_v31 = vadd.f32 %v2581_v7, %v2580_v52  ;;  %v2579_v30 = vadd.f32 %v2578_v0, %v2577_v19  ;;  %v2601_v52 = vpack.c.bf16 %v2551_v9, %v2551_v9 }
 0x910   :  { %v2981_v48 = vpop.f32.mrf.mxu0  ;;  %v2640_v49 = vunpack.c.l.b16 %v2604_v26 }
 0x911   :  { %v2542_v34 = vadd.f32 %v4942_v39, %v2522_v60  ;;  %v2982_v33 = vadd.f32 %v2981_v48, %v2980_v13  ;;  %v2583_v38 = vrot.slane %v2582_v31, 2  ;;  %v2637_v13 = vunpack.c.l.b16 %v2601_v52 }
 0x912   :  { %v2983_v12 = vpop.f32.mrf.mxu0 }
 0x913   :  { %v2587_v4 = vadd.f32 %v2542_v34, %v2541_v42  ;;  %v2523_v46 = vadd.f32 %v2982_v33, %v5059_v51  ;;  %v2584_v56 = vadd.f32 %v2583_v38, %v2582_v31  ;;  %v2646_v16 = vsel %vm2645_vm1, %v2638_v29, %v2637_v13 }
 0x914   :  { %v2984_v24 = vpop.f32.mrf.mxu0  ;;  %v2648_v48 = vsel %vm2647_vm2, %v2639_v45, %v2646_v16 }
 0x915   :  { %v2588_v47 = vrot.slane %v2587_v4, 4  ;;  %v2985_v36 = vadd.f32 %v2984_v24, %v2983_v12  ;;  %v2543_v1 = vadd.f32 %v4942_v39, %v2523_v46  ;;  %v2585_v15 = vrot.slane %v2584_v56, 1 }
 0x916   :  { %v2650_v42 = vsel %vm2649_vm3, %v2640_v49, %v2648_v48 }
 0x917   :  { %v2589_v5 = vadd.f32 %v2588_v47, %v2587_v4  ;;  %v2524_v41 = vadd.f32 %v2985_v36, %v5060_v6  ;;  %v2586_v22 = vadd.f32 %v2585_v15, %v2584_v56 }
 0x919   :  { %v2590_v28 = vrot.slane %v2589_v5, 2  ;;  %v2544_v3 = vadd.f32 %v4942_v39, %v2524_v41  ;;  %v2605_v39 = vpack.c.bf16 %v2579_v30, %v2579_v30  ;;  %v2606_v54 = vpack.c.bf16 %v2586_v22, %v2586_v22 }
 0x91b   :  { %v2591_v61 = vadd.f32 %v2590_v28, %v2589_v5  ;;  %v2594_v43 = vadd.f32 %v2544_v3, %v2543_v1  ;;  %v2641_v60 = vunpack.c.l.b16 %v2605_v39  ;;  %v2642_v21 = vunpack.c.l.b16 %v2606_v54 }
 0x91d   :  { %v2592_v32 = vrot.slane %v2591_v61, 1  ;;  %v2595_v35 = vrot.slane %v2594_v43, 4  ;;  %v2652_v33 = vsel %vm2651_vm4, %v2641_v60, %v2650_v42 }
 0x91e   :  { %v2654_v12 = vsel %vm2653_vm5, %v2642_v21, %v2652_v33 }
 0x91f   :  { %v2596_v57 = vadd.f32 %v2595_v35, %v2594_v43  ;;  %v2593_v40 = vadd.f32 %v2592_v32, %v2591_v61 }
 0x921   :  { %v2597_v2 = vrot.slane %v2596_v57, 2  ;;  %v2607_v7 = vpack.c.bf16 %v2593_v40, %v2593_v40 }
 0x923   :  { %v2598_v14 = vadd.f32 %v2597_v2, %v2596_v57  ;;  %v2643_v53 = vunpack.c.l.b16 %v2607_v7 }
 0x925   :  { %v2599_v18 = vrot.slane %v2598_v14, 1  ;;  %v2656_v63 = vsel %vm2655_vm6, %v2643_v53, %v2654_v12 }
 0x927   :  { %v2600_v31 = vadd.f32 %v2599_v18, %v2598_v14 }
 0x929   :  { %v2608_v34 = vpack.c.bf16 %v2600_v31, %v2600_v31 }
 0x92b   :  { %v2644_v62 = vunpack.c.l.b16 %v2608_v34 }
 0x92d   :  { %v2658_v38 = vsel %vm2657_vm7, %v2644_v62, %v2656_v63 }
 0x92e   :  { %v2659_v4 = vpack.c.b16 %v2658_v38, %v2658_v38 }
 0x930   :  { %3172 = vmatmul.mubr.bf16.vlgmr.msra.gmra.mxu1 %v2659_v4 }
 0x9f0   :  { %v2743_v24 = vpop.f32.mrf.mxu1 }
 0x9f1   :  { %v2744_v58 = vadd.f32 %v2743_v24, %v2628_v10 }
 0x9f2   :  { %v3173_v47 = vpop.f32.mrf.mxu1 }
 0x9f3   :  { %2749 = vst [vmem:[%s4989_s11] sm:$0xff] %v2744_v58 }
 0x9f4   :  { %v2746_v51 = vpop.f32.mrf.mxu1 }
 0x9f6   :  { %v3174_v46 = vpop.f32.mrf.mxu1 }

</bundles_post_ra>
